<compile_context>
chip_gen: v7x
topology: tpu7x:2x2x1
jax: 0.10.0
libtpu: 0.0.40
codegen_flags: <defaults>
</compile_context>

<pallas_src>
import math

import jax
import jax.numpy as jnp
from jax.experimental import pallas as pl
from jax.experimental.pallas import tpu as pltpu

D_IN = 384
D_H1 = 1024
D_H2 = 1024
D_OUT = 384


def mlp_kernel(x_ref, w1_ref, b1_ref, w2_ref, b2_ref, w3_ref, b3_ref, o_ref):
    # Layer 1: (TB, 384) @ (384, 1024) + (1, 1024), ReLU
    h1 = jnp.dot(x_ref[...], w1_ref[...], preferred_element_type=jnp.float32)
    h1 = jnp.maximum(h1 + b1_ref[...], 0.0)
    # Layer 2: (TB, 1024) @ (1024, 1024) + (1, 1024), ReLU
    h2 = jnp.dot(h1, w2_ref[...], preferred_element_type=jnp.float32)
    h2 = jnp.maximum(h2 + b2_ref[...], 0.0)
    # Layer 3: (TB, 1024) @ (1024, 384) + (1, 384), no activation
    y = jnp.dot(h2, w3_ref[...], preferred_element_type=jnp.float32)
    o_ref[...] = (y + b3_ref[...]).astype(o_ref.dtype)


def _round_up(n, m):
    return ((n + m - 1) // m) * m


def stealing_model_task2(x, params, *, tb=256):
    """Fused 3-layer MLP. x: (B, 384) float32 -> (B, 384) float32."""
    w1, b1, w2, b2, w3, b3 = params
    B, d = x.shape
    assert d == D_IN

    # Tile selection:
    #  - small batch (B <= tb): single grid step, rows rounded to sublane (8).
    #  - large batch: MXU-height tiles of `tb` rows, batch padded to multiple.
    if B <= tb:
        tb_eff = max(8, _round_up(B, 8))
    else:
        tb_eff = tb
    Bp = _round_up(B, tb_eff)
    if Bp != B:
        x = jnp.pad(x, ((0, Bp - B), (0, 0)))

    grid = (Bp // tb_eff,)

    # Weights/biases never change across the grid: single-buffer them.
    def const(shape):
        return pl.BlockSpec(shape, lambda i: (0, 0),
                            pipeline_mode=pl.Buffered(1))

    # Explicit VMEM budget (matters on v7x with 64 MiB physical VMEM):
    #   single-buffered weights+biases + double-buffered x/out tiles +
    #   h1/h2 activation temporaries + fixed headroom.
    weight_bytes = 4 * (D_IN * D_H1 + D_H1 * D_H2 + D_H2 * D_OUT
                        + D_H1 + D_H2 + D_OUT)
    io_bytes = 2 * 2 * tb_eff * (D_IN + D_OUT) * 4
    act_bytes = tb_eff * (D_H1 + D_H2) * 4
    vmem_budget = min(weight_bytes + io_bytes + act_bytes + (12 << 20),
                      48 << 20)

    out = pl.pallas_call(
        mlp_kernel,
        out_shape=jax.ShapeDtypeStruct((Bp, D_OUT), jnp.float32),
        grid_spec=pltpu.PrefetchScalarGridSpec(
            num_scalar_prefetch=0,
            grid=grid,
            in_specs=[
                pl.BlockSpec((tb_eff, D_IN), lambda i: (i, 0)),  # x tile
                const((D_IN, D_H1)),                             # W1
                const((1, D_H1)),                                # b1
                const((D_H1, D_H2)),                             # W2
                const((1, D_H2)),                                # b2
                const((D_H2, D_OUT)),                            # W3
                const((1, D_OUT)),                               # b3
            ],
            out_specs=pl.BlockSpec((tb_eff, D_OUT), lambda i: (i, 0)),
        ),
        compiler_params=pltpu.CompilerParams(
            dimension_semantics=("parallel",),
            vmem_limit_bytes=vmem_budget,
        ),
    )(x, w1, b1, w2, b2, w3, b3)

    return out[:B]


def init_params(key):
    """Deterministic init mimicking PyTorch nn.Linear default
    (U(-1/sqrt(in), 1/sqrt(in))). Weights stored transposed as (in, out)."""
    def linear(k, din, dout):
        kw, kb = jax.random.split(k)
        bound = 1.0 / math.sqrt(din)
        w = jax.random.uniform(kw, (din, dout), jnp.float32, -bound, bound)
        b = jax.random.uniform(kb, (1, dout), jnp.float32, -bound, bound)
        return w, b

    k1, k2, k3 = jax.random.split(key, 3)
    w1, b1 = linear(k1, D_IN, D_H1)
    w2, b2 = linear(k2, D_H1, D_H2)
    w3, b3 = linear(k3, D_H2, D_OUT)
    return (w1, b1, w2, b2, w3, b3)


def reference(x, params):
    w1, b1, w2, b2, w3, b3 = params
    h = jnp.maximum(x @ w1 + b1, 0.0)
    h = jnp.maximum(h @ w2 + b2, 0.0)
    return h @ w3 + b3


if __name__ == "__main__":
    key = jax.random.PRNGKey(0)
    kx, kx2, kp = jax.random.split(key, 3)
    params = init_params(kp)

    # Small batch (single grid step path).
    B = 8
    x = jax.random.normal(kx, (B, D_IN), jnp.float32)
    y = stealing_model_task2(x, params)
    jax.block_until_ready(y)
    y_ref = reference(x, params)
    assert y.shape == (B, D_OUT), y.shape
    assert jnp.allclose(y, y_ref, atol=1e-4, rtol=1e-4), "small-batch mismatch"

    # Larger, non-multiple batch (tiled + padded path, >=2 parallel grid steps).
    B2 = 384
    x2 = jax.random.normal(kx2, (B2, D_IN), jnp.float32)
    y2 = stealing_model_task2(x2, params)
    jax.block_until_ready(y2)
    y2_ref = reference(x2, params)
    assert y2.shape == (B2, D_OUT), y2.shape
    assert jnp.allclose(y2, y2_ref, atol=1e-4, rtol=1e-4), "tiled-batch mismatch"

    print("KERNEL_OK")
</pallas_src>

<mosaic_0001>
module attributes {stable_mosaic.version = 11 : i64} {
  func.func @mlp_kernel(%arg0: i32, %arg1: memref<8x384xf32, #tpu.memory_space<vmem>>, %arg2: memref<384x1024xf32, #tpu.memory_space<vmem>>, %arg3: memref<1x1024xf32, #tpu.memory_space<vmem>>, %arg4: memref<1024x1024xf32, #tpu.memory_space<vmem>>, %arg5: memref<1x1024xf32, #tpu.memory_space<vmem>>, %arg6: memref<1024x384xf32, #tpu.memory_space<vmem>>, %arg7: memref<1x384xf32, #tpu.memory_space<vmem>>, %arg8: memref<8x384xf32, #tpu.memory_space<vmem>>) attributes {dimension_semantics = [#tpu.dimension_semantics<parallel>], iteration_bounds = array<i64: 1>, scalar_prefetch = 0 : i64, scratch_operands = 0 : i64, tpu.core_type = #tpu.core_type<tc>, window_params = [{transform_indices = @transform_0, window_bounds = array<i64: 8, 384>}, {pipeline_mode = #tpu.pipeline_mode<synchronous>, transform_indices = @transform_1, window_bounds = array<i64: 384, 1024>}, {pipeline_mode = #tpu.pipeline_mode<synchronous>, transform_indices = @transform_2, window_bounds = array<i64: 1, 1024>}, {pipeline_mode = #tpu.pipeline_mode<synchronous>, transform_indices = @transform_3, window_bounds = array<i64: 1024, 1024>}, {pipeline_mode = #tpu.pipeline_mode<synchronous>, transform_indices = @transform_4, window_bounds = array<i64: 1, 1024>}, {pipeline_mode = #tpu.pipeline_mode<synchronous>, transform_indices = @transform_5, window_bounds = array<i64: 1024, 384>}, {pipeline_mode = #tpu.pipeline_mode<synchronous>, transform_indices = @transform_6, window_bounds = array<i64: 1, 384>}, {transform_indices = @transform_7, window_bounds = array<i64: 8, 384>}]} {
    %c0 = arith.constant 0 : index
    %c0_0 = arith.constant 0 : index
    %0 = vector.load %arg1[%c0, %c0_0] : memref<8x384xf32, #tpu.memory_space<vmem>>, vector<8x384xf32>
    %c0_1 = arith.constant 0 : index
    %c0_2 = arith.constant 0 : index
    %1 = vector.load %arg2[%c0_1, %c0_2] : memref<384x1024xf32, #tpu.memory_space<vmem>>, vector<384x1024xf32>
    %cst = arith.constant dense<0.000000e+00> : vector<8x1024xf32>
    %2 = tpu.matmul %0, %1, %cst {dimension_numbers = #tpu.dot_dimension_numbers<[1], [0], [0], [1], [0, 0, 1, 1], [], []>} : vector<8x384xf32>, vector<384x1024xf32>, vector<8x1024xf32> -> vector<8x1024xf32>
    %c0_3 = arith.constant 0 : index
    %c0_4 = arith.constant 0 : index
    %3 = vector.load %arg3[%c0_3, %c0_4] : memref<1x1024xf32, #tpu.memory_space<vmem>>, vector<1x1024xf32>
    %4 = vector.broadcast %3 : vector<1x1024xf32> to vector<8x1024xf32>
    %5 = arith.addf %2, %4 : vector<8x1024xf32>
    %cst_5 = arith.constant 0.000000e+00 : f32
    %6 = vector.broadcast %cst_5 : f32 to vector<8x1024xf32>
    %7 = arith.maximumf %5, %6 : vector<8x1024xf32>
    %c0_6 = arith.constant 0 : index
    %c0_7 = arith.constant 0 : index
    %8 = vector.load %arg4[%c0_6, %c0_7] : memref<1024x1024xf32, #tpu.memory_space<vmem>>, vector<1024x1024xf32>
    %cst_8 = arith.constant dense<0.000000e+00> : vector<8x1024xf32>
    %9 = tpu.matmul %7, %8, %cst_8 {dimension_numbers = #tpu.dot_dimension_numbers<[1], [0], [0], [1], [0, 0, 1, 1], [], []>} : vector<8x1024xf32>, vector<1024x1024xf32>, vector<8x1024xf32> -> vector<8x1024xf32>
    %c0_9 = arith.constant 0 : index
    %c0_10 = arith.constant 0 : index
    %10 = vector.load %arg5[%c0_9, %c0_10] : memref<1x1024xf32, #tpu.memory_space<vmem>>, vector<1x1024xf32>
    %11 = vector.broadcast %10 : vector<1x1024xf32> to vector<8x1024xf32>
    %12 = arith.addf %9, %11 : vector<8x1024xf32>
    %cst_11 = arith.constant 0.000000e+00 : f32
    %13 = vector.broadcast %cst_11 : f32 to vector<8x1024xf32>
    %14 = arith.maximumf %12, %13 : vector<8x1024xf32>
    %c0_12 = arith.constant 0 : index
    %c0_13 = arith.constant 0 : index
    %15 = vector.load %arg6[%c0_12, %c0_13] : memref<1024x384xf32, #tpu.memory_space<vmem>>, vector<1024x384xf32>
    %cst_14 = arith.constant dense<0.000000e+00> : vector<8x384xf32>
    %16 = tpu.matmul %14, %15, %cst_14 {dimension_numbers = #tpu.dot_dimension_numbers<[1], [0], [0], [1], [0, 0, 1, 1], [], []>} : vector<8x1024xf32>, vector<1024x384xf32>, vector<8x384xf32> -> vector<8x384xf32>
    %c0_15 = arith.constant 0 : index
    %c0_16 = arith.constant 0 : index
    %17 = vector.load %arg7[%c0_15, %c0_16] : memref<1x384xf32, #tpu.memory_space<vmem>>, vector<1x384xf32>
    %18 = vector.broadcast %17 : vector<1x384xf32> to vector<8x384xf32>
    %19 = arith.addf %16, %18 : vector<8x384xf32>
    %c0_17 = arith.constant 0 : index
    %c0_18 = arith.constant 0 : index
    %20 = vector.load %arg8[%c0_17, %c0_18] : memref<8x384xf32, #tpu.memory_space<vmem>>, vector<8x384xf32>
    tpu.vector_store %arg8[%c0_17, %c0_18], %19 {strides = array<i32>} : memref<8x384xf32, #tpu.memory_space<vmem>>, vector<8x384xf32>,
    return
  }
  func.func @transform_0(%arg0: i32) -> (i32, i32) {
    %c0_i32 = arith.constant 0 : i32
    %c0_i32_0 = arith.constant 0 : i32
    return %arg0, %c0_i32 : i32, i32
  }
  func.func @transform_1(%arg0: i32) -> (i32, i32) {
    %c0_i32 = arith.constant 0 : i32
    %c0_i32_0 = arith.constant 0 : i32
    %c0_i32_1 = arith.constant 0 : i32
    return %c0_i32, %c0_i32_0 : i32, i32
  }
  func.func @transform_2(%arg0: i32) -> (i32, i32) {
    %c0_i32 = arith.constant 0 : i32
    %c0_i32_0 = arith.constant 0 : i32
    %c0_i32_1 = arith.constant 0 : i32
    return %c0_i32, %c0_i32_0 : i32, i32
  }
  func.func @transform_3(%arg0: i32) -> (i32, i32) {
    %c0_i32 = arith.constant 0 : i32
    %c0_i32_0 = arith.constant 0 : i32
    %c0_i32_1 = arith.constant 0 : i32
    return %c0_i32, %c0_i32_0 : i32, i32
  }
  func.func @transform_4(%arg0: i32) -> (i32, i32) {
    %c0_i32 = arith.constant 0 : i32
    %c0_i32_0 = arith.constant 0 : i32
    %c0_i32_1 = arith.constant 0 : i32
    return %c0_i32, %c0_i32_0 : i32, i32
  }
  func.func @transform_5(%arg0: i32) -> (i32, i32) {
    %c0_i32 = arith.constant 0 : i32
    %c0_i32_0 = arith.constant 0 : i32
    %c0_i32_1 = arith.constant 0 : i32
    return %c0_i32, %c0_i32_0 : i32, i32
  }
  func.func @transform_6(%arg0: i32) -> (i32, i32) {
    %c0_i32 = arith.constant 0 : i32
    %c0_i32_0 = arith.constant 0 : i32
    %c0_i32_1 = arith.constant 0 : i32
    return %c0_i32, %c0_i32_0 : i32, i32
  }
  func.func @transform_7(%arg0: i32) -> (i32, i32) {
    %c0_i32 = arith.constant 0 : i32
    %c0_i32_0 = arith.constant 0 : i32
    return %arg0, %c0_i32 : i32, i32
  }
}

</mosaic_0001>

<bundles_post_ra>
// kernel: tpu_custom_call.1
= control target key start
LH: loop header
LB: loop body
LE: loop exit
PB: predicated region body
PF: predicated region fallthrough
CT: control target
= control target key end

     0   :  { %12 = vsyncpa [#allocation3], 0  ;;  %s6841_s0 = inlined_call_operand.hbm [shape: f32[8,384], index: 0, kind: input, shape index: {}]   ;;  %s6842_s1 = inlined_call_operand.hbm [shape: f32[384,1024], index: 1, kind: input, shape index: {}]   ;;  %s6843_s2 = inlined_call_operand.hbm [shape: f32[1,1024], index: 2, kind: input, shape index: {}]   ;;  %s6844_s3 = inlined_call_operand.hbm [shape: f32[1024,1024], index: 3, kind: input, shape index: {}]   ;;  %s6845_s4 = inlined_call_operand.hbm [shape: f32[1,1024], index: 4, kind: input, shape index: {}]   ;;  %s6846_s5 = inlined_call_operand.hbm [shape: f32[1024,384], index: 5, kind: input, shape index: {}]   ;;  %s6847_s6 = inlined_call_operand.hbm [shape: f32[1,384], index: 6, kind: input, shape index: {}]   ;;  %s6848_s7 = inlined_call_operand.hbm [shape: f32[8,384], index: 7, kind: output, shape index: {}]  }
   0x1   :  { %13 = vsyncpa [#allocation6], 0 }
   0x2   :  { %14 = vsyncpa [#allocation9], 0 }
   0x3   :  { %15 = vsyncpa [#allocation12], 0 }
   0x4   :  { %16 = vsyncpa [#allocation4], 0  ;;  %s6507_s24 = smov [#allocation5]   ;;  %s6321_s28 = scalar_lea.hbm %s6842_s1, 49152 }
   0x5   :  { %s32_s25 = sshll.u32 %s6507_s24, 4  ;;  %p6322_p0 = scmp.ne.s32.totalorder %s6842_s1, %s6321_s28  ;;  %s33_s25 = int_to_ptr.vmem [resolvable:$true] %s32_s25 }
   0x6   :  { %p6325_p1 = scmp.lt.u32.totalorder %s6321_s28, %s6842_s1 }
   0x8   :  { %p6327_p2 = pnand %p6325_p1, %p6322_p0 }
   0xa   :  { %6330 = shalt.err (!%p6327_p2)
}
   0xb   :  { %s6331_s10 = scalar_lea.vmem %s33_s25, 49152  ;;  %p6336_p4 = scmp.lt.s32.totalorder %s33_s25, %s33_s25 }
   0xc   :  { %p6332_p3 = scmp.ne.s32.totalorder %s33_s25, %s6331_s10  ;;  %p6337_p5 = scmp.lt.s32.totalorder %s6331_s10, %s6331_s10 }
   0xe   :  { %p6338_p6 = por %p6337_p5, %p6336_p4 }
  0x10   :  { %p6339_p7 = pnand %p6338_p6, %p6332_p3 }
  0x12   :  { %6342 = shalt.err (!%p6339_p7)
}
  0x13   :  { %s6508_s11 = smov 1024   ;;  %s6509_s12 = smov 64  }
  0x14   :  { %38 = dma.hbm_to_vmem [thread:$0]  %s6842_s1, 49152, %s33_s25, [#allocation6], %s6508_s11, %s6508_s11, %s6509_s12  }
  0x15   :  { %s6510_s15 = smov [#allocation8]   ;;  %s6511_s17 = smov [#allocation11]  }
  0x16   :  { %s54_s16 = sshll.u32 %s6510_s15, 4  ;;  %s76_s18 = sshll.u32 %s6511_s17, 4  ;;  %s55_s16 = int_to_ptr.vmem [resolvable:$true] %s54_s16  ;;  %s77_s18 = int_to_ptr.vmem [resolvable:$true] %s76_s18 }
  0x17   :  { %s6343_s21 = scalar_lea.hbm %s6844_s3, 131072 }
  0x18   :  { %p6344_p8 = scmp.ne.s32.totalorder %s6844_s3, %s6343_s21  ;;  %p6347_p9 = scmp.lt.u32.totalorder %s6343_s21, %s6844_s3 }
  0x1a   :  { %p6349_p10 = pnand %p6347_p9, %p6344_p8 }
  0x1c   :  { %6352 = shalt.err (!%p6349_p10)
}
  0x1d   :  { %s6353_s1 = scalar_lea.vmem %s55_s16, 131072  ;;  %p6358_p12 = scmp.lt.s32.totalorder %s55_s16, %s55_s16 }
  0x1e   :  { %p6354_p11 = scmp.ne.s32.totalorder %s55_s16, %s6353_s1  ;;  %p6359_p13 = scmp.lt.s32.totalorder %s6353_s1, %s6353_s1 }
  0x20   :  { %p6360_p0 = por %p6359_p13, %p6358_p12 }
  0x22   :  { %p6361_p1 = pnand %p6360_p0, %p6354_p11 }
  0x24   :  { %6364 = shalt.err (!%p6361_p1)
}
  0x25   :  { %60 = dma.hbm_to_vmem [thread:$0]  %s6844_s3, 131072, %s55_s16, [#allocation9], %s6508_s11, %s6508_s11, %s6509_s12  }
  0x26   :  { %s6365_s30 = scalar_lea.hbm %s6846_s5, 49152 }
  0x27   :  { %p6366_p2 = scmp.ne.s32.totalorder %s6846_s5, %s6365_s30  ;;  %p6369_p3 = scmp.lt.u32.totalorder %s6365_s30, %s6846_s5 }
  0x29   :  { %p6371_p4 = pnand %p6369_p3, %p6366_p2 }
  0x2b   :  { %6374 = shalt.err (!%p6371_p4)
}
  0x2c   :  { %s6375_s14 = scalar_lea.vmem %s77_s18, 49152  ;;  %p6380_p6 = scmp.lt.s32.totalorder %s77_s18, %s77_s18 }
  0x2d   :  { %p6376_p5 = scmp.ne.s32.totalorder %s77_s18, %s6375_s14  ;;  %p6381_p7 = scmp.lt.s32.totalorder %s6375_s14, %s6375_s14 }
  0x2f   :  { %p6382_p8 = por %p6381_p7, %p6380_p6 }
  0x31   :  { %p6383_p9 = pnand %p6382_p8, %p6376_p5 }
  0x33   :  { %6386 = shalt.err (!%p6383_p9)
}
  0x34   :  { %s6512_s3 = smov 384   ;;  %s6513_s11 = smov 24  }
  0x35   :  { %82 = dma.hbm_to_vmem [thread:$0]  %s6846_s5, 49152, %s77_s18, [#allocation12], %s6512_s3, %s6512_s3, %s6513_s11  }
  0x36   :  { %s6514_s16 = smov [#allocation2]   ;;  %s6515_s19 = smov [#allocation7]  }
  0x37   :  { %s23_s17 = sshll.u32 %s6514_s16, 4  ;;  %s45_s20 = sshll.u32 %s6515_s19, 4  ;;  %s24_s17 = int_to_ptr.vmem [resolvable:$true] %s23_s17  ;;  %s46_s20 = int_to_ptr.vmem [resolvable:$true] %s45_s20 }
  0x38   :  { %s6387_s23 = scalar_lea.hbm %s6841_s0, 384 }
  0x39   :  { %p6388_p10 = scmp.ne.s32.totalorder %s6841_s0, %s6387_s23  ;;  %p6391_p11 = scmp.lt.u32.totalorder %s6387_s23, %s6841_s0 }
  0x3b   :  { %p6393_p12 = pnand %p6391_p11, %p6388_p10 }
  0x3d   :  { %6396 = shalt.err (!%p6393_p12)
}
  0x3e   :  { %s6397_s5 = scalar_lea.vmem %s24_s17, 384  ;;  %p6402_p0 = scmp.lt.s32.totalorder %s24_s17, %s24_s17 }
  0x3f   :  { %p6398_p13 = scmp.ne.s32.totalorder %s24_s17, %s6397_s5  ;;  %p6403_p1 = scmp.lt.s32.totalorder %s6397_s5, %s6397_s5 }
  0x41   :  { %p6404_p2 = por %p6403_p1, %p6402_p0 }
  0x43   :  { %p6405_p3 = pnand %p6404_p2, %p6398_p13 }
  0x45   :  { %6408 = shalt.err (!%p6405_p3)
}
  0x46   :  { %26 = dma.hbm_to_vmem [thread:$0]  %s6841_s0, 384, %s24_s17, [#allocation3]  }
  0x47   :  { %s6409_s30 = scalar_lea.hbm %s6843_s2, 128 }
  0x48   :  { %p6410_p4 = scmp.ne.s32.totalorder %s6843_s2, %s6409_s30  ;;  %p6413_p5 = scmp.lt.u32.totalorder %s6409_s30, %s6843_s2 }
  0x4a   :  { %p6415_p6 = pnand %p6413_p5, %p6410_p4 }
  0x4c   :  { %6418 = shalt.err (!%p6415_p6)
}
  0x4d   :  { %s6419_s14 = scalar_lea.vmem %s46_s20, 128  ;;  %p6424_p8 = scmp.lt.s32.totalorder %s46_s20, %s46_s20 }
  0x4e   :  { %p6420_p7 = scmp.ne.s32.totalorder %s46_s20, %s6419_s14  ;;  %p6425_p9 = scmp.lt.s32.totalorder %s6419_s14, %s6419_s14 }
  0x50   :  { %p6426_p10 = por %p6425_p9, %p6424_p8 }
  0x52   :  { %p6427_p11 = pnand %p6426_p10, %p6420_p7 }
  0x54   :  { %6430 = shalt.err (!%p6427_p11)
}
  0x55   :  { %48 = dma.hbm_to_vmem [thread:$0]  %s6843_s2, 128, %s46_s20, [#allocation6]  }
  0x56   :  { %s6516_s11 = smov [#allocation10]   ;;  %s6517_s15 = smov [#allocation13]  }
  0x57   :  { %s67_s12 = sshll.u32 %s6516_s11, 4  ;;  %s89_s16 = sshll.u32 %s6517_s15, 4  ;;  %s68_s12 = int_to_ptr.vmem [resolvable:$true] %s67_s12  ;;  %s90_s16 = int_to_ptr.vmem [resolvable:$true] %s89_s16 }
  0x58   :  { %s6431_s21 = scalar_lea.hbm %s6845_s4, 128 }
  0x59   :  { %p6432_p12 = scmp.ne.s32.totalorder %s6845_s4, %s6431_s21  ;;  %p6435_p13 = scmp.lt.u32.totalorder %s6431_s21, %s6845_s4 }
  0x5b   :  { %p6437_p0 = pnand %p6435_p13, %p6432_p12 }
  0x5d   :  { %6440 = shalt.err (!%p6437_p0)
}
  0x5e   :  { %s6441_s2 = scalar_lea.vmem %s68_s12, 128  ;;  %p6446_p2 = scmp.lt.s32.totalorder %s68_s12, %s68_s12 }
  0x5f   :  { %p6442_p1 = scmp.ne.s32.totalorder %s68_s12, %s6441_s2  ;;  %p6447_p3 = scmp.lt.s32.totalorder %s6441_s2, %s6441_s2 }
  0x61   :  { %p6448_p4 = por %p6447_p3, %p6446_p2 }
  0x63   :  { %p6449_p5 = pnand %p6448_p4, %p6442_p1 }
  0x65   :  { %6452 = shalt.err (!%p6449_p5)
}
  0x66   :  { %70 = dma.hbm_to_vmem [thread:$0]  %s6845_s4, 128, %s68_s12, [#allocation9]  }
  0x67   :  { %s6453_s18 = scalar_lea.hbm %s6847_s6, 48 }
  0x68   :  { %p6454_p6 = scmp.ne.s32.totalorder %s6847_s6, %s6453_s18  ;;  %p6457_p7 = scmp.lt.u32.totalorder %s6453_s18, %s6847_s6 }
  0x6a   :  { %p6459_p8 = pnand %p6457_p7, %p6454_p6 }
  0x6c   :  { %6462 = shalt.err (!%p6459_p8)
}
  0x6d   :  { %s6463_s8 = scalar_lea.vmem %s90_s16, 48  ;;  %s6467_s9 = scalar_lea.vmem %s90_s16, 64 }
  0x6e   :  { %p6464_p9 = scmp.ne.s32.totalorder %s90_s16, %s6463_s8  ;;  %p6468_p10 = scmp.lt.s32.totalorder %s90_s16, %s90_s16 }
  0x6f   :  { %p6469_p11 = scmp.lt.s32.totalorder %s6467_s9, %s6463_s8 }
  0x71   :  { %p6470_p12 = por %p6469_p11, %p6468_p10 }
  0x73   :  { %p6471_p13 = pnand %p6470_p12, %p6464_p9 }
  0x75   :  { %6474 = shalt.err (!%p6471_p13)
}
  0x76   :  { %92 = dma.hbm_to_vmem [thread:$0]  %s6847_s6, 48, %s90_s16, [#allocation12]  }
  0x77   :  { %6497 = dma.done.wait [#allocation3], 384  }
  0x78   :  { %6498 = vsyncadd [#allocation3], 4294966912 }
  0x79   :  { %6499 = dma.done.wait [#allocation6], 49280  }
  0x7a   :  { %6500 = vsyncadd [#allocation6], 4294918016 }
  0x7b   :  { %6501 = dma.done.wait [#allocation9], 131200  }
  0x7c   :  { %6502 = vsyncadd [#allocation9], 4294836096 }
  0x7d   :  { %6503 = dma.done.wait [#allocation12], 49200  }
  0x7e   :  { %6504 = vsyncadd [#allocation12], 4294918096  ;;  %v6518_v0 = vmov 0.0   ;;  %v118_v1 = vld [vmem:[#allocation5 + $0x8] sm:$0xff]  ;;  %v117_v3 = vld [vmem:[#allocation5] sm:$0xff]  ;;  %s6519_s6 = smov [#allocation14]  }
  0x7f   :  { %678 = vmatprep.mubr.f32.mxu0 %v6518_v0  ;;  %v126_v2 = vld [vmem:[#allocation5 + $0x48] sm:$0xff]  ;;  %v125_v5 = vld [vmem:[#allocation5 + $0x40] sm:$0xff]  ;;  %s4303_s13 = sshll.u32 %s6519_s6, 4  ;;  %s4304_s13 = int_to_ptr.vmem [resolvable:$true] %s4303_s13 }
  0x80   :  { %v4455_v4 = vpack.c.bf16 %v126_v2, %v118_v1  ;;  %v134_v6 = vld [vmem:[#allocation5 + $0x88] sm:$0xff]  ;;  %v4457_v8 = vpack.c.bf16 %v125_v5, %v117_v3  ;;  %v133_v10 = vld [vmem:[#allocation5 + $0x80] sm:$0xff]  ;;  %s6475_s14 = scalar_lea.vmem %s4304_s13, 384  ;;  %p6480_p1 = scmp.lt.s32.totalorder %s4304_s13, %s4304_s13 }
  0x81   :  { %v142_v7 = vld [vmem:[#allocation5 + $0xc8] sm:$0xff]  ;;  %v141_v11 = vld [vmem:[#allocation5 + $0xc0] sm:$0xff]  ;;  %p6476_p0 = scmp.ne.s32.totalorder %s4304_s13, %s6475_s14  ;;  %p6481_p2 = scmp.lt.s32.totalorder %s6475_s14, %s6475_s14 }
  0x82   :  { %v4459_v9 = vpack.c.bf16 %v142_v7, %v134_v6  ;;  %v150_v12 = vld [vmem:[#allocation5 + $0x108] sm:$0xff]  ;;  %4456 = vmatprep.subr.bf16.mxu1 %v4455_v4  ;;  %v4461_v14 = vpack.c.bf16 %v141_v11, %v133_v10  ;;  %v149_v16 = vld [vmem:[#allocation5 + $0x100] sm:$0xff] }
  0x83   :  { %v158_v13 = vld [vmem:[#allocation5 + $0x148] sm:$0xff]  ;;  %4458 = vmatpush1.bf16.msra.mxu1 %v4457_v8  ;;  %v157_v17 = vld [vmem:[#allocation5 + $0x140] sm:$0xff]  ;;  %p6482_p3 = por %p6481_p2, %p6480_p1 }
  0x84   :  { %4460 = vmatprep.subr.bf16.mxu1 %v4459_v9  ;;  %v4463_v15 = vpack.c.bf16 %v158_v13, %v150_v12  ;;  %v166_v18 = vld [vmem:[#allocation5 + $0x188] sm:$0xff]  ;;  %v4465_v20 = vpack.c.bf16 %v157_v17, %v149_v16  ;;  %v165_v22 = vld [vmem:[#allocation5 + $0x180] sm:$0xff] }
  0x85   :  { %v174_v19 = vld [vmem:[#allocation5 + $0x1c8] sm:$0xff]  ;;  %v173_v23 = vld [vmem:[#allocation5 + $0x1c0] sm:$0xff]  ;;  %p6483_p4 = pnand %p6482_p3, %p6476_p0 }
  0x86   :  { %v4467_v21 = vpack.c.bf16 %v174_v19, %v166_v18  ;;  %v182_v24 = vld [vmem:[#allocation5 + $0x208] sm:$0xff]  ;;  %v4469_v26 = vpack.c.bf16 %v173_v23, %v165_v22  ;;  %v373_v29 = vld [vmem:[#allocation5 + $0x800] sm:$0xff] }
  0x87   :  { %4462 = vmatpush1.bf16.msra.mxu1 %v4461_v14  ;;  %v190_v25 = vld [vmem:[#allocation5 + $0x248] sm:$0xff]  ;;  %v181_v31 = vld [vmem:[#allocation5 + $0x200] sm:$0xff] }
  0x88   :  { %4464 = vmatprep.subr.bf16.mxu1 %v4463_v15  ;;  %v374_v27 = vld [vmem:[#allocation5 + $0x808] sm:$0xff]  ;;  %v4471_v30 = vpack.c.bf16 %v190_v25, %v182_v24  ;;  %v189_v32 = vld [vmem:[#allocation5 + $0x240] sm:$0xff] }
  0x89   :  { %v382_v28 = vld [vmem:[#allocation5 + $0x848] sm:$0xff]  ;;  %v381_v34 = vld [vmem:[#allocation5 + $0x840] sm:$0xff]  ;;  %v4473_v42 = vpack.c.bf16 %v189_v32, %v181_v31 }
  0x8a   :  { %v4519_v33 = vpack.c.bf16 %v382_v28, %v374_v27  ;;  %v198_v35 = vld [vmem:[#allocation5 + $0x288] sm:$0xff]  ;;  %v4521_v37 = vpack.c.bf16 %v381_v34, %v373_v29  ;;  %v389_v40 = vld [vmem:[#allocation5 + $0x880] sm:$0xff] }
  0x8b   :  { %4466 = vmatpush1.bf16.msra.mxu1 %v4465_v20  ;;  %v206_v36 = vld [vmem:[#allocation5 + $0x2c8] sm:$0xff]  ;;  %v397_v41 = vld [vmem:[#allocation5 + $0x8c0] sm:$0xff] }
  0x8c   :  { %4468 = vmatprep.subr.bf16.mxu1 %v4467_v21  ;;  %v390_v38 = vld [vmem:[#allocation5 + $0x888] sm:$0xff]  ;;  %4520 = vmatprep.subr.bf16.mxu0 %v4519_v33  ;;  %v197_v43 = vld [vmem:[#allocation5 + $0x280] sm:$0xff]  ;;  %v4525_v46 = vpack.c.bf16 %v397_v41, %v389_v40  ;;  %v4475_v47 = vpack.c.bf16 %v206_v36, %v198_v35 }
  0x8d   :  { %v398_v39 = vld [vmem:[#allocation5 + $0x8c8] sm:$0xff]  ;;  %v205_v44 = vld [vmem:[#allocation5 + $0x2c0] sm:$0xff]  ;;  %4522 = vmatpush1.bf16.msra.mxu0 %v4521_v37 }
  0x8e   :  { %v4523_v45 = vpack.c.bf16 %v398_v39, %v390_v38  ;;  %v214_v48 = vld [vmem:[#allocation5 + $0x308] sm:$0xff]  ;;  %v405_v53 = vld [vmem:[#allocation5 + $0x900] sm:$0xff]  ;;  %v4477_v55 = vpack.c.bf16 %v205_v44, %v197_v43 }
  0x8f   :  { %4470 = vmatpush1.bf16.msra.mxu1 %v4469_v26  ;;  %v406_v49 = vld [vmem:[#allocation5 + $0x908] sm:$0xff]  ;;  %v413_v54 = vld [vmem:[#allocation5 + $0x940] sm:$0xff] }
  0x90   :  { %4472 = vmatprep.subr.bf16.mxu1 %v4471_v30  ;;  %v414_v50 = vld [vmem:[#allocation5 + $0x948] sm:$0xff]  ;;  %4524 = vmatprep.subr.bf16.mxu0 %v4523_v45  ;;  %v213_v56 = vld [vmem:[#allocation5 + $0x300] sm:$0xff]  ;;  %v4529_v57 = vpack.c.bf16 %v413_v54, %v405_v53  ;;  %v6645_v30 = vld [vmem:[#allocation2 + $0x8] sm:$0xff] }
  0x91   :  { %v222_v51 = vld [vmem:[#allocation5 + $0x348] sm:$0xff]  ;;  %v4527_v52 = vpack.c.bf16 %v414_v50, %v406_v49  ;;  %4526 = vmatpush1.bf16.msra.mxu0 %v4525_v46  ;;  %v221_v61 = vld [vmem:[#allocation5 + $0x340] sm:$0xff]  ;;  %607 = vmatprep.mubr.f32.mxu1 %v6645_v30 }
  0x92   :  { %v422_v58 = vld [vmem:[#allocation5 + $0x988] sm:$0xff]  ;;  %v4479_v60 = vpack.c.bf16 %v222_v51, %v214_v48  ;;  %v421_v63 = vld [vmem:[#allocation5 + $0x980] sm:$0xff]  ;;  %v4481_v6 = vpack.c.bf16 %v221_v61, %v213_v56  ;;  %v6648_v61 = vld [vmem:[#allocation2 + $0x10] sm:$0xff] }
  0x93   :  { %4474 = vmatpush1.bf16.msra.mxu1 %v4473_v42  ;;  %v430_v59 = vld [vmem:[#allocation5 + $0x9c8] sm:$0xff]  ;;  %4528 = vmatprep.subr.bf16.mxu0 %v4527_v52  ;;  %v429_v1 = vld [vmem:[#allocation5 + $0x9c0] sm:$0xff] }
  0x94   :  { %4476 = vmatprep.subr.bf16.mxu1 %v4475_v47  ;;  %v4531_v62 = vpack.c.bf16 %v430_v59, %v422_v58  ;;  %v230_v2 = vld [vmem:[#allocation5 + $0x388] sm:$0xff]  ;;  %v229_v7 = vld [vmem:[#allocation5 + $0x380] sm:$0xff]  ;;  %v4533_v9 = vpack.c.bf16 %v429_v1, %v421_v63 }
  0x95   :  { %v238_v3 = vld [vmem:[#allocation5 + $0x3c8] sm:$0xff]  ;;  %v237_v8 = vld [vmem:[#allocation5 + $0x3c0] sm:$0xff]  ;;  %4530 = vmatpush1.bf16.msra.mxu0 %v4529_v57 }
  0x96   :  { %v438_v4 = vld [vmem:[#allocation5 + $0xa08] sm:$0xff]  ;;  %v4483_v10 = vpack.c.bf16 %v238_v3, %v230_v2  ;;  %4532 = vmatprep.subr.bf16.mxu0 %v4531_v62  ;;  %v437_v13 = vld [vmem:[#allocation5 + $0xa00] sm:$0xff]  ;;  %v4485_v18 = vpack.c.bf16 %v237_v8, %v229_v7 }
  0x97   :  { %v446_v5 = vld [vmem:[#allocation5 + $0xa48] sm:$0xff]  ;;  %4478 = vmatpush1.bf16.msra.mxu1 %v4477_v55  ;;  %v445_v14 = vld [vmem:[#allocation5 + $0xa40] sm:$0xff] }
  0x98   :  { %4480 = vmatprep.subr.bf16.mxu1 %v4479_v60  ;;  %v246_v11 = vld [vmem:[#allocation5 + $0x408] sm:$0xff]  ;;  %v4535_v12 = vpack.c.bf16 %v446_v5, %v438_v4  ;;  %v245_v19 = vld [vmem:[#allocation5 + $0x400] sm:$0xff]  ;;  %v4537_v21 = vpack.c.bf16 %v445_v14, %v437_v13 }
  0x99   :  { %v254_v15 = vld [vmem:[#allocation5 + $0x448] sm:$0xff]  ;;  %v253_v20 = vld [vmem:[#allocation5 + $0x440] sm:$0xff]  ;;  %4534 = vmatpush1.bf16.msra.mxu0 %v4533_v9 }
  0x9a   :  { %v454_v16 = vld [vmem:[#allocation5 + $0xa88] sm:$0xff]  ;;  %v4487_v22 = vpack.c.bf16 %v254_v15, %v246_v11  ;;  %4536 = vmatprep.subr.bf16.mxu0 %v4535_v12  ;;  %v453_v25 = vld [vmem:[#allocation5 + $0xa80] sm:$0xff]  ;;  %v4489_v31 = vpack.c.bf16 %v253_v20, %v245_v19 }
  0x9b   :  { %v462_v17 = vld [vmem:[#allocation5 + $0xac8] sm:$0xff]  ;;  %4482 = vmatpush1.bf16.msra.mxu1 %v4481_v6  ;;  %v461_v26 = vld [vmem:[#allocation5 + $0xac0] sm:$0xff] }
  0x9c   :  { %4484 = vmatprep.subr.bf16.mxu1 %v4483_v10  ;;  %v262_v23 = vld [vmem:[#allocation5 + $0x488] sm:$0xff]  ;;  %v4539_v24 = vpack.c.bf16 %v462_v17, %v454_v16  ;;  %v261_v32 = vld [vmem:[#allocation5 + $0x480] sm:$0xff]  ;;  %v4541_v34 = vpack.c.bf16 %v461_v26, %v453_v25 }
  0x9d   :  { %v270_v27 = vld [vmem:[#allocation5 + $0x4c8] sm:$0xff]  ;;  %v269_v33 = vld [vmem:[#allocation5 + $0x4c0] sm:$0xff]  ;;  %4538 = vmatpush1.bf16.msra.mxu0 %v4537_v21 }
  0x9e   :  { %v470_v28 = vld [vmem:[#allocation5 + $0xb08] sm:$0xff]  ;;  %v4491_v35 = vpack.c.bf16 %v270_v27, %v262_v23  ;;  %4540 = vmatprep.subr.bf16.mxu0 %v4539_v24  ;;  %v469_v38 = vld [vmem:[#allocation5 + $0xb00] sm:$0xff]  ;;  %v4493_v43 = vpack.c.bf16 %v269_v33, %v261_v32 }
  0x9f   :  { %v478_v29 = vld [vmem:[#allocation5 + $0xb48] sm:$0xff]  ;;  %4486 = vmatpush1.bf16.msra.mxu1 %v4485_v18  ;;  %v477_v39 = vld [vmem:[#allocation5 + $0xb40] sm:$0xff] }
  0xa0   :  { %4488 = vmatprep.subr.bf16.mxu1 %v4487_v22  ;;  %v278_v36 = vld [vmem:[#allocation5 + $0x508] sm:$0xff]  ;;  %v4543_v37 = vpack.c.bf16 %v478_v29, %v470_v28  ;;  %v277_v44 = vld [vmem:[#allocation5 + $0x500] sm:$0xff]  ;;  %v4545_v45 = vpack.c.bf16 %v477_v39, %v469_v38 }
  0xa1   :  { %v286_v40 = vld [vmem:[#allocation5 + $0x548] sm:$0xff]  ;;  %4542 = vmatpush1.bf16.msra.mxu0 %v4541_v34  ;;  %v285_v47 = vld [vmem:[#allocation5 + $0x540] sm:$0xff] }
  0xa2   :  { %v486_v41 = vld [vmem:[#allocation5 + $0xb88] sm:$0xff]  ;;  %v4495_v46 = vpack.c.bf16 %v286_v40, %v278_v36  ;;  %4544 = vmatprep.subr.bf16.mxu0 %v4543_v37  ;;  %v485_v49 = vld [vmem:[#allocation5 + $0xb80] sm:$0xff]  ;;  %v4497_v53 = vpack.c.bf16 %v285_v47, %v277_v44 }
  0xa3   :  { %v494_v42 = vld [vmem:[#allocation5 + $0xbc8] sm:$0xff]  ;;  %4490 = vmatpush1.bf16.msra.mxu1 %v4489_v31  ;;  %v493_v50 = vld [vmem:[#allocation5 + $0xbc0] sm:$0xff] }
  0xa4   :  { %4492 = vmatprep.subr.bf16.mxu1 %v4491_v35  ;;  %v4547_v48 = vpack.c.bf16 %v494_v42, %v486_v41  ;;  %v294_v51 = vld [vmem:[#allocation5 + $0x588] sm:$0xff]  ;;  %v4549_v54 = vpack.c.bf16 %v493_v50, %v485_v49  ;;  %v293_v56 = vld [vmem:[#allocation5 + $0x580] sm:$0xff] }
  0xa5   :  { %v302_v52 = vld [vmem:[#allocation5 + $0x5c8] sm:$0xff]  ;;  %4546 = vmatpush1.bf16.msra.mxu0 %v4545_v45  ;;  %v301_v57 = vld [vmem:[#allocation5 + $0x5c0] sm:$0xff] }
  0xa6   :  { %v4499_v55 = vpack.c.bf16 %v302_v52, %v294_v51  ;;  %4548 = vmatprep.subr.bf16.mxu0 %v4547_v48  ;;  %v310_v58 = vld [vmem:[#allocation5 + $0x608] sm:$0xff]  ;;  %v4501_v60 = vpack.c.bf16 %v301_v57, %v293_v56  ;;  %v309_v2 = vld [vmem:[#allocation5 + $0x600] sm:$0xff]  ;;  %v128_v48 = vld [vmem:[#allocation5 + $0x58] sm:$0xff] }
  0xa7   :  { %4494 = vmatpush1.bf16.msra.mxu1 %v4493_v43  ;;  %v318_v59 = vld [vmem:[#allocation5 + $0x648] sm:$0xff]  ;;  %v317_v3 = vld [vmem:[#allocation5 + $0x640] sm:$0xff]  ;;  %v119_v56 = vld [vmem:[#allocation5 + $0x10] sm:$0xff] }
  0xa8   :  { %4496 = vmatprep.subr.bf16.mxu1 %v4495_v46  ;;  %v122_v62 = vld [vmem:[#allocation5 + $0x28] sm:$0xff]  ;;  %v4503_v1 = vpack.c.bf16 %v318_v59, %v310_v58  ;;  %v121_v5 = vld [vmem:[#allocation5 + $0x20] sm:$0xff]  ;;  %v4505_v12 = vpack.c.bf16 %v317_v3, %v309_v2  ;;  %v120_v46 = vld [vmem:[#allocation5 + $0x18] sm:$0xff] }
  0xa9   :  { %4550 = vmatpush1.bf16.msra.mxu0 %v4549_v54  ;;  %v130_v63 = vld [vmem:[#allocation5 + $0x68] sm:$0xff]  ;;  %v129_v8 = vld [vmem:[#allocation5 + $0x60] sm:$0xff]  ;;  %v127_v57 = vld [vmem:[#allocation5 + $0x50] sm:$0xff] }
  0xaa   :  { %v4647_v4 = vpack.c.bf16 %v130_v63, %v122_v62  ;;  %v326_v6 = vld [vmem:[#allocation5 + $0x688] sm:$0xff]  ;;  %v4649_v9 = vpack.c.bf16 %v129_v8, %v121_v5  ;;  %v137_v14 = vld [vmem:[#allocation5 + $0xa0] sm:$0xff]  ;;  %v136_v58 = vld [vmem:[#allocation5 + $0x98] sm:$0xff]  ;;  %v4553_v5 = vpack.c.bf16 %v127_v57, %v119_v56 }
  0xab   :  { %4498 = vmatpush1.bf16.msra.mxu1 %v4497_v53  ;;  %v334_v7 = vld [vmem:[#allocation5 + $0x6c8] sm:$0xff]  ;;  %v145_v15 = vld [vmem:[#allocation5 + $0xe0] sm:$0xff]  ;;  %v143_v8 = vld [vmem:[#allocation5 + $0xd0] sm:$0xff] }
  0xac   :  { %4500 = vmatprep.subr.bf16.mxu1 %v4499_v55  ;;  %679 = vmatmul.mubr.f32.vlgmr.msra.gmra.mrb[0].mxu0 %v6648_v61  ;;  %v138_v10 = vld [vmem:[#allocation5 + $0xa8] sm:$0xff]  ;;  %v4507_v16 = vpack.c.bf16 %v334_v7, %v326_v6  ;;  %v325_v17 = vld [vmem:[#allocation5 + $0x680] sm:$0xff]  ;;  %v4653_v19 = vpack.c.bf16 %v145_v15, %v137_v14  ;;  %v4551_v55 = vpack.c.bf16 %v128_v48, %v120_v46  ;;  %v135_v7 = vld [vmem:[#allocation5 + $0x90] sm:$0xff] }
  0xad   :  { %4648 = vmatprep.subr.bf16.mxu0 %v4647_v4  ;;  %v146_v11 = vld [vmem:[#allocation5 + $0xe8] sm:$0xff]  ;;  %891 = vmatprep.mubr.f32.mxu0 %v6645_v30  ;;  %v333_v18 = vld [vmem:[#allocation5 + $0x6c0] sm:$0xff]  ;;  %v207_v56 = vld [vmem:[#allocation5 + $0x2d0] sm:$0xff] }
  0xae   :  { %v4651_v13 = vpack.c.bf16 %v146_v11, %v138_v10  ;;  %4650 = vmatpush1.bf16.msra.mxu0 %v4649_v9  ;;  %v154_v20 = vld [vmem:[#allocation5 + $0x128] sm:$0xff]  ;;  %v153_v25 = vld [vmem:[#allocation5 + $0x120] sm:$0xff]  ;;  %v4509_v27 = vpack.c.bf16 %v333_v18, %v325_v17  ;;  %v152_v9 = vld [vmem:[#allocation5 + $0x118] sm:$0xff]  ;;  %v4557_v17 = vpack.c.bf16 %v143_v8, %v135_v7 }
  0xaf   :  { %4502 = vmatpush1.bf16.msra.mxu1 %v4501_v60  ;;  %v342_v21 = vld [vmem:[#allocation5 + $0x708] sm:$0xff]  ;;  %v161_v26 = vld [vmem:[#allocation5 + $0x160] sm:$0xff]  ;;  %v144_v60 = vld [vmem:[#allocation5 + $0xd8] sm:$0xff] }
  0xb0   :  { %4504 = vmatprep.subr.bf16.mxu1 %v4503_v1  ;;  %v350_v22 = vld [vmem:[#allocation5 + $0x748] sm:$0xff]  ;;  %4652 = vmatprep.subr.bf16.mxu0 %v4651_v13  ;;  %v341_v32 = vld [vmem:[#allocation5 + $0x700] sm:$0xff]  ;;  %v4657_v35 = vpack.c.bf16 %v161_v26, %v153_v25  ;;  %v4555_v6 = vpack.c.bf16 %v144_v60, %v136_v58  ;;  %v160_v11 = vld [vmem:[#allocation5 + $0x158] sm:$0xff] }
  0xb1   :  { %v162_v23 = vld [vmem:[#allocation5 + $0x168] sm:$0xff]  ;;  %v4511_v31 = vpack.c.bf16 %v350_v22, %v342_v21  ;;  %v349_v33 = vld [vmem:[#allocation5 + $0x740] sm:$0xff]  ;;  %v4559_v18 = vpack.c.bf16 %v160_v11, %v152_v9  ;;  %v168_v21 = vld [vmem:[#allocation5 + $0x198] sm:$0xff] }
  0xb2   :  { %v4655_v24 = vpack.c.bf16 %v162_v23, %v154_v20  ;;  %v170_v28 = vld [vmem:[#allocation5 + $0x1a8] sm:$0xff]  ;;  %4654 = vmatpush1.bf16.msra.mxu0 %v4653_v19  ;;  %v169_v38 = vld [vmem:[#allocation5 + $0x1a0] sm:$0xff]  ;;  %v4513_v42 = vpack.c.bf16 %v349_v33, %v341_v32  ;;  %v151_v19 = vld [vmem:[#allocation5 + $0x110] sm:$0xff] }
  0xb3   :  { %4506 = vmatpush1.bf16.msra.mxu1 %v4505_v12  ;;  %v178_v29 = vld [vmem:[#allocation5 + $0x1e8] sm:$0xff]  ;;  %v177_v39 = vld [vmem:[#allocation5 + $0x1e0] sm:$0xff]  ;;  %v159_v20 = vld [vmem:[#allocation5 + $0x150] sm:$0xff] }
  0xb4   :  { %4508 = vmatprep.subr.bf16.mxu1 %v4507_v16  ;;  %v358_v34 = vld [vmem:[#allocation5 + $0x788] sm:$0xff]  ;;  %4656 = vmatprep.subr.bf16.mxu0 %v4655_v24  ;;  %v4659_v37 = vpack.c.bf16 %v178_v29, %v170_v28  ;;  %v357_v44 = vld [vmem:[#allocation5 + $0x780] sm:$0xff]  ;;  %v4661_v47 = vpack.c.bf16 %v177_v39, %v169_v38  ;;  %v176_v23 = vld [vmem:[#allocation5 + $0x1d8] sm:$0xff]  ;;  %v4561_v29 = vpack.c.bf16 %v159_v20, %v151_v19 }
  0xb5   :  { %v366_v36 = vld [vmem:[#allocation5 + $0x7c8] sm:$0xff]  ;;  %v365_v45 = vld [vmem:[#allocation5 + $0x7c0] sm:$0xff]  ;;  %v167_v32 = vld [vmem:[#allocation5 + $0x190] sm:$0xff] }
  0xb6   :  { %v186_v40 = vld [vmem:[#allocation5 + $0x228] sm:$0xff]  ;;  %v4515_v43 = vpack.c.bf16 %v366_v36, %v358_v34  ;;  %4658 = vmatpush1.bf16.msra.mxu0 %v4657_v35  ;;  %v185_v50 = vld [vmem:[#allocation5 + $0x220] sm:$0xff]  ;;  %v4517_v54 = vpack.c.bf16 %v365_v45, %v357_v44  ;;  %v184_v33 = vld [vmem:[#allocation5 + $0x218] sm:$0xff] }
  0xb7   :  { %v194_v41 = vld [vmem:[#allocation5 + $0x268] sm:$0xff]  ;;  %4510 = vmatpush1.bf16.msra.mxu1 %v4509_v27  ;;  %4660 = vmatprep.subr.bf16.mxu0 %v4659_v37  ;;  %v193_v51 = vld [vmem:[#allocation5 + $0x260] sm:$0xff]  ;;  %v192_v35 = vld [vmem:[#allocation5 + $0x258] sm:$0xff] }
  0xb8   :  { %4512 = vmatprep.subr.bf16.mxu1 %v4511_v31  ;;  %v4663_v49 = vpack.c.bf16 %v194_v41, %v186_v40  ;;  %v202_v52 = vld [vmem:[#allocation5 + $0x2a8] sm:$0xff]  ;;  %v4665_v59 = vpack.c.bf16 %v193_v51, %v185_v50  ;;  %v201_v63 = vld [vmem:[#allocation5 + $0x2a0] sm:$0xff]  ;;  %v4563_v31 = vpack.c.bf16 %v176_v23, %v168_v21  ;;  %v191_v44 = vld [vmem:[#allocation5 + $0x250] sm:$0xff] }
  0xb9   :  { %v210_v53 = vld [vmem:[#allocation5 + $0x2e8] sm:$0xff]  ;;  %v209_v1 = vld [vmem:[#allocation5 + $0x2e0] sm:$0xff]  ;;  %v200_v45 = vld [vmem:[#allocation5 + $0x298] sm:$0xff] }
  0xba   :  { %4662 = vmatpush1.bf16.msra.mxu0 %v4661_v47  ;;  %v4667_v62 = vpack.c.bf16 %v210_v53, %v202_v52  ;;  %v218_v2 = vld [vmem:[#allocation5 + $0x328] sm:$0xff]  ;;  %v4669_v10 = vpack.c.bf16 %v209_v1, %v201_v63  ;;  %v217_v13 = vld [vmem:[#allocation5 + $0x320] sm:$0xff]  ;;  %v208_v47 = vld [vmem:[#allocation5 + $0x2d8] sm:$0xff] }
  0xbb   :  { %4514 = vmatpush1.bf16.msra.mxu1 %v4513_v42  ;;  %4664 = vmatprep.subr.bf16.mxu0 %v4663_v49  ;;  %v226_v3 = vld [vmem:[#allocation5 + $0x368] sm:$0xff]  ;;  %v225_v14 = vld [vmem:[#allocation5 + $0x360] sm:$0xff]  ;;  %v4567_v42 = vpack.c.bf16 %v192_v35, %v184_v33  ;;  %v216_v57 = vld [vmem:[#allocation5 + $0x318] sm:$0xff] }
  0xbc   :  { %4516 = vmatprep.subr.bf16.mxu1 %v4515_v43  ;;  %v6652_v4 = vld [vmem:[#allocation2] sm:$0xff]  ;;  %v4671_v12 = vpack.c.bf16 %v226_v3, %v218_v2  ;;  %v4673_v22 = vpack.c.bf16 %v225_v14, %v217_v13  ;;  %v233_v25 = vld [vmem:[#allocation5 + $0x3a0] sm:$0xff]  ;;  %v183_v43 = vld [vmem:[#allocation5 + $0x210] sm:$0xff] }
  0xbd   :  { %v234_v15 = vld [vmem:[#allocation5 + $0x3a8] sm:$0xff]  ;;  %v241_v26 = vld [vmem:[#allocation5 + $0x3e0] sm:$0xff]  ;;  %v4569_v53 = vpack.c.bf16 %v191_v44, %v183_v43  ;;  %v223_v7 = vld [vmem:[#allocation5 + $0x350] sm:$0xff] }
  0xbe   :  { %4666 = vmatpush1.bf16.msra.mxu0 %v4665_v59  ;;  %v242_v16 = vld [vmem:[#allocation5 + $0x3e8] sm:$0xff]  ;;  %v4677_v34 = vpack.c.bf16 %v241_v26, %v233_v25  ;;  %v249_v37 = vld [vmem:[#allocation5 + $0x420] sm:$0xff]  ;;  %v224_v59 = vld [vmem:[#allocation5 + $0x358] sm:$0xff] }
  0xbf   :  { %4518 = vmatpush1.bf16.msra.mxu1 %v4517_v54  ;;  %4668 = vmatprep.subr.bf16.mxu0 %v4667_v62  ;;  %v4675_v24 = vpack.c.bf16 %v242_v16, %v234_v15  ;;  %v250_v27 = vld [vmem:[#allocation5 + $0x428] sm:$0xff]  ;;  %v257_v38 = vld [vmem:[#allocation5 + $0x460] sm:$0xff]  ;;  %v4571_v54 = vpack.c.bf16 %v208_v47, %v200_v45  ;;  %v232_v8 = vld [vmem:[#allocation5 + $0x398] sm:$0xff] }
  0xc0   :  { %4552 = vmatprep.subr.bf16.mxu1 %v4551_v55  ;;  %v258_v28 = vld [vmem:[#allocation5 + $0x468] sm:$0xff]  ;;  %v4681_v46 = vpack.c.bf16 %v257_v38, %v249_v37  ;;  %v265_v49 = vld [vmem:[#allocation5 + $0x4a0] sm:$0xff]  ;;  %v199_v55 = vld [vmem:[#allocation5 + $0x290] sm:$0xff] }
  0xc1   :  { %v4679_v36 = vpack.c.bf16 %v258_v28, %v250_v27  ;;  %v266_v39 = vld [vmem:[#allocation5 + $0x4a8] sm:$0xff]  ;;  %v273_v50 = vld [vmem:[#allocation5 + $0x4e0] sm:$0xff]  ;;  %v4573_v3 = vpack.c.bf16 %v207_v56, %v199_v55  ;;  %v239_v19 = vld [vmem:[#allocation5 + $0x3d0] sm:$0xff] }
  0xc2   :  { %608 = vmatmul.mubr.f32.vlgmr.msra.gmra.mrb[0].mxu1 %v6652_v4  ;;  %4670 = vmatpush1.bf16.msra.mxu0 %v4669_v10  ;;  %v274_v40 = vld [vmem:[#allocation5 + $0x4e8] sm:$0xff]  ;;  %v4685_v58 = vpack.c.bf16 %v273_v50, %v265_v49  ;;  %v281_v62 = vld [vmem:[#allocation5 + $0x520] sm:$0xff]  ;;  %v240_v10 = vld [vmem:[#allocation5 + $0x3d8] sm:$0xff] }
  0xc3   :  { %4554 = vmatpush1.bf16.msra.mxu1 %v4553_v5  ;;  %749 = vmatprep.mubr.f32.mxu1 %v6645_v30  ;;  %v175_v30 = vld [vmem:[#allocation5 + $0x1d0] sm:$0xff]  ;;  %v4683_v48 = vpack.c.bf16 %v274_v40, %v266_v39  ;;  %v282_v51 = vld [vmem:[#allocation5 + $0x528] sm:$0xff]  ;;  %v289_v63 = vld [vmem:[#allocation5 + $0x560] sm:$0xff]  ;;  %v4575_v5 = vpack.c.bf16 %v224_v59, %v216_v57 }
  0xc4   :  { %4556 = vmatprep.subr.bf16.mxu1 %v4555_v6  ;;  %4672 = vmatprep.subr.bf16.mxu0 %v4671_v12  ;;  %v4565_v41 = vpack.c.bf16 %v175_v30, %v167_v32  ;;  %v290_v52 = vld [vmem:[#allocation5 + $0x568] sm:$0xff]  ;;  %v215_v6 = vld [vmem:[#allocation5 + $0x310] sm:$0xff]  ;;  %v4689_v9 = vpack.c.bf16 %v289_v63, %v281_v62  ;;  %v297_v12 = vld [vmem:[#allocation5 + $0x5a0] sm:$0xff] }
  0xc5   :  { %v4687_v60 = vpack.c.bf16 %v290_v52, %v282_v51  ;;  %v298_v1 = vld [vmem:[#allocation5 + $0x5a8] sm:$0xff]  ;;  %v305_v13 = vld [vmem:[#allocation5 + $0x5e0] sm:$0xff]  ;;  %v4577_v16 = vpack.c.bf16 %v223_v7, %v215_v6  ;;  %v248_v20 = vld [vmem:[#allocation5 + $0x418] sm:$0xff] }
  0xc6   :  { %4674 = vmatpush1.bf16.msra.mxu0 %v4673_v22  ;;  %v306_v2 = vld [vmem:[#allocation5 + $0x5e8] sm:$0xff]  ;;  %v4693_v21 = vpack.c.bf16 %v305_v13, %v297_v12  ;;  %v256_v22 = vld [vmem:[#allocation5 + $0x458] sm:$0xff]  ;;  %v321_v25 = vld [vmem:[#allocation5 + $0x660] sm:$0xff] }
  0xc7   :  { %4558 = vmatpush1.bf16.msra.mxu1 %v4557_v17  ;;  %4676 = vmatprep.subr.bf16.mxu0 %v4675_v24  ;;  %v4691_v11 = vpack.c.bf16 %v306_v2, %v298_v1  ;;  %v314_v14 = vld [vmem:[#allocation5 + $0x628] sm:$0xff]  ;;  %v4579_v17 = vpack.c.bf16 %v240_v10, %v232_v8  ;;  %v313_v24 = vld [vmem:[#allocation5 + $0x620] sm:$0xff]  ;;  %v255_v32 = vld [vmem:[#allocation5 + $0x450] sm:$0xff] }
  0xc8   :  { %4560 = vmatprep.subr.bf16.mxu1 %v4559_v18  ;;  %v322_v15 = vld [vmem:[#allocation5 + $0x668] sm:$0xff]  ;;  %v231_v18 = vld [vmem:[#allocation5 + $0x390] sm:$0xff]  ;;  %v264_v30 = vld [vmem:[#allocation5 + $0x498] sm:$0xff]  ;;  %v4697_v33 = vpack.c.bf16 %v321_v25, %v313_v24 }
  0xc9   :  { %v4695_v23 = vpack.c.bf16 %v322_v15, %v314_v14  ;;  %v330_v26 = vld [vmem:[#allocation5 + $0x6a8] sm:$0xff]  ;;  %v4581_v28 = vpack.c.bf16 %v239_v19, %v231_v18  ;;  %v337_v37 = vld [vmem:[#allocation5 + $0x6e0] sm:$0xff]  ;;  %v271_v43 = vld [vmem:[#allocation5 + $0x4d0] sm:$0xff] }
  0xca   :  { %4678 = vmatpush1.bf16.msra.mxu0 %v4677_v34  ;;  %v338_v27 = vld [vmem:[#allocation5 + $0x6e8] sm:$0xff]  ;;  %v272_v34 = vld [vmem:[#allocation5 + $0x4d8] sm:$0xff]  ;;  %v353_v49 = vld [vmem:[#allocation5 + $0x760] sm:$0xff] }
  0xcb   :  { %4562 = vmatpush1.bf16.msra.mxu1 %v4561_v29  ;;  %4680 = vmatprep.subr.bf16.mxu0 %v4679_v36  ;;  %v4583_v29 = vpack.c.bf16 %v256_v22, %v248_v20  ;;  %v4699_v35 = vpack.c.bf16 %v338_v27, %v330_v26  ;;  %v329_v36 = vld [vmem:[#allocation5 + $0x6a0] sm:$0xff]  ;;  %v346_v38 = vld [vmem:[#allocation5 + $0x728] sm:$0xff]  ;;  %v280_v44 = vld [vmem:[#allocation5 + $0x518] sm:$0xff] }
  0xcc   :  { %4564 = vmatprep.subr.bf16.mxu1 %v4563_v31  ;;  %v247_v31 = vld [vmem:[#allocation5 + $0x410] sm:$0xff]  ;;  %v354_v39 = vld [vmem:[#allocation5 + $0x768] sm:$0xff]  ;;  %v4701_v45 = vpack.c.bf16 %v337_v37, %v329_v36  ;;  %v296_v56 = vld [vmem:[#allocation5 + $0x598] sm:$0xff] }
  0xcd   :  { %v4585_v40 = vpack.c.bf16 %v255_v32, %v247_v31  ;;  %v4703_v47 = vpack.c.bf16 %v354_v39, %v346_v38  ;;  %v362_v50 = vld [vmem:[#allocation5 + $0x7a8] sm:$0xff]  ;;  %v287_v55 = vld [vmem:[#allocation5 + $0x550] sm:$0xff]  ;;  %v369_v62 = vld [vmem:[#allocation5 + $0x7e0] sm:$0xff] }
  0xce   :  { %4682 = vmatpush1.bf16.msra.mxu0 %v4681_v46  ;;  %v288_v46 = vld [vmem:[#allocation5 + $0x558] sm:$0xff]  ;;  %v370_v51 = vld [vmem:[#allocation5 + $0x7e8] sm:$0xff]  ;;  %v303_v6 = vld [vmem:[#allocation5 + $0x5d0] sm:$0xff] }
  0xcf   :  { %4566 = vmatpush1.bf16.msra.mxu1 %v4565_v41  ;;  %4684 = vmatprep.subr.bf16.mxu0 %v4683_v48  ;;  %v4587_v41 = vpack.c.bf16 %v272_v34, %v264_v30  ;;  %v345_v48 = vld [vmem:[#allocation5 + $0x720] sm:$0xff]  ;;  %v4707_v59 = vpack.c.bf16 %v370_v51, %v362_v50  ;;  %v378_v63 = vld [vmem:[#allocation5 + $0x828] sm:$0xff]  ;;  %v312_v7 = vld [vmem:[#allocation5 + $0x618] sm:$0xff] }
  0xd0   :  { %4568 = vmatprep.subr.bf16.mxu1 %v4567_v42  ;;  %v263_v42 = vld [vmem:[#allocation5 + $0x490] sm:$0xff]  ;;  %v4705_v57 = vpack.c.bf16 %v353_v49, %v345_v48  ;;  %v386_v1 = vld [vmem:[#allocation5 + $0x868] sm:$0xff]  ;;  %v385_v12 = vld [vmem:[#allocation5 + $0x860] sm:$0xff] }
  0xd1   :  { %v4589_v52 = vpack.c.bf16 %v271_v43, %v263_v42  ;;  %v4711_v10 = vpack.c.bf16 %v386_v1, %v378_v63  ;;  %v394_v13 = vld [vmem:[#allocation5 + $0x8a8] sm:$0xff]  ;;  %v319_v18 = vld [vmem:[#allocation5 + $0x650] sm:$0xff]  ;;  %v328_v19 = vld [vmem:[#allocation5 + $0x698] sm:$0xff] }
  0xd2   :  { %4686 = vmatpush1.bf16.msra.mxu0 %v4685_v58  ;;  %v304_v58 = vld [vmem:[#allocation5 + $0x5d8] sm:$0xff]  ;;  %v402_v14 = vld [vmem:[#allocation5 + $0x8e8] sm:$0xff]  ;;  %v401_v24 = vld [vmem:[#allocation5 + $0x8e0] sm:$0xff] }
  0xd3   :  { %4570 = vmatpush1.bf16.msra.mxu1 %v4569_v53  ;;  %4688 = vmatprep.subr.bf16.mxu0 %v4687_v60  ;;  %v4591_v53 = vpack.c.bf16 %v288_v46, %v280_v44  ;;  %v361_v60 = vld [vmem:[#allocation5 + $0x7a0] sm:$0xff]  ;;  %v4715_v22 = vpack.c.bf16 %v402_v14, %v394_v13  ;;  %v410_v25 = vld [vmem:[#allocation5 + $0x928] sm:$0xff]  ;;  %v335_v31 = vld [vmem:[#allocation5 + $0x6d0] sm:$0xff] }
  0xd4   :  { %4572 = vmatprep.subr.bf16.mxu1 %v4571_v54  ;;  %v279_v54 = vld [vmem:[#allocation5 + $0x510] sm:$0xff]  ;;  %v4709_v8 = vpack.c.bf16 %v369_v62, %v361_v60  ;;  %v418_v26 = vld [vmem:[#allocation5 + $0x968] sm:$0xff]  ;;  %v344_v32 = vld [vmem:[#allocation5 + $0x718] sm:$0xff] }
  0xd5   :  { %v4593_v2 = vpack.c.bf16 %v287_v55, %v279_v54  ;;  %v4719_v34 = vpack.c.bf16 %v418_v26, %v410_v25  ;;  %v417_v36 = vld [vmem:[#allocation5 + $0x960] sm:$0xff]  ;;  %v426_v37 = vld [vmem:[#allocation5 + $0x9a8] sm:$0xff]  ;;  %v351_v42 = vld [vmem:[#allocation5 + $0x750] sm:$0xff] }
  0xd6   :  { %4690 = vmatpush1.bf16.msra.mxu0 %v4689_v9  ;;  %v320_v9 = vld [vmem:[#allocation5 + $0x658] sm:$0xff]  ;;  %v434_v38 = vld [vmem:[#allocation5 + $0x9e8] sm:$0xff]  ;;  %v433_v48 = vld [vmem:[#allocation5 + $0x9e0] sm:$0xff] }
  0xd7   :  { %4574 = vmatpush1.bf16.msra.mxu1 %v4573_v3  ;;  %4692 = vmatprep.subr.bf16.mxu0 %v4691_v11  ;;  %v4595_v3 = vpack.c.bf16 %v304_v58, %v296_v56  ;;  %v377_v11 = vld [vmem:[#allocation5 + $0x820] sm:$0xff]  ;;  %v360_v43 = vld [vmem:[#allocation5 + $0x798] sm:$0xff]  ;;  %v4723_v46 = vpack.c.bf16 %v434_v38, %v426_v37  ;;  %v442_v49 = vld [vmem:[#allocation5 + $0xa28] sm:$0xff] }
  0xd8   :  { %4576 = vmatprep.subr.bf16.mxu1 %v4575_v5  ;;  %v295_v5 = vld [vmem:[#allocation5 + $0x590] sm:$0xff]  ;;  %v4713_v20 = vpack.c.bf16 %v385_v12, %v377_v11  ;;  %v450_v50 = vld [vmem:[#allocation5 + $0xa68] sm:$0xff]  ;;  %v376_v55 = vld [vmem:[#allocation5 + $0x818] sm:$0xff] }
  0xd9   :  { %v4597_v15 = vpack.c.bf16 %v303_v6, %v295_v5  ;;  %v367_v54 = vld [vmem:[#allocation5 + $0x7d0] sm:$0xff]  ;;  %v4727_v58 = vpack.c.bf16 %v450_v50, %v442_v49  ;;  %v449_v60 = vld [vmem:[#allocation5 + $0xa60] sm:$0xff]  ;;  %v458_v62 = vld [vmem:[#allocation5 + $0xaa8] sm:$0xff] }
  0xda   :  { %4694 = vmatpush1.bf16.msra.mxu0 %v4693_v21  ;;  %v336_v21 = vld [vmem:[#allocation5 + $0x6d8] sm:$0xff]  ;;  %v466_v63 = vld [vmem:[#allocation5 + $0xae8] sm:$0xff]  ;;  %v383_v5 = vld [vmem:[#allocation5 + $0x850] sm:$0xff] }
  0xdb   :  { %4578 = vmatpush1.bf16.msra.mxu1 %v4577_v16  ;;  %4696 = vmatprep.subr.bf16.mxu0 %v4695_v23  ;;  %v4599_v16 = vpack.c.bf16 %v320_v9, %v312_v7  ;;  %v393_v23 = vld [vmem:[#allocation5 + $0x8a0] sm:$0xff]  ;;  %v392_v6 = vld [vmem:[#allocation5 + $0x898] sm:$0xff]  ;;  %v4731_v9 = vpack.c.bf16 %v466_v63, %v458_v62  ;;  %v474_v12 = vld [vmem:[#allocation5 + $0xb28] sm:$0xff] }
  0xdc   :  { %4580 = vmatprep.subr.bf16.mxu1 %v4579_v17  ;;  %v311_v17 = vld [vmem:[#allocation5 + $0x610] sm:$0xff]  ;;  %v4717_v30 = vpack.c.bf16 %v401_v24, %v393_v23  ;;  %v465_v11 = vld [vmem:[#allocation5 + $0xae0] sm:$0xff]  ;;  %v482_v13 = vld [vmem:[#allocation5 + $0xb68] sm:$0xff] }
  0xdd   :  { %v4601_v27 = vpack.c.bf16 %v319_v18, %v311_v17  ;;  %v399_v17 = vld [vmem:[#allocation5 + $0x8d0] sm:$0xff]  ;;  %v408_v18 = vld [vmem:[#allocation5 + $0x918] sm:$0xff]  ;;  %v481_v23 = vld [vmem:[#allocation5 + $0xb60] sm:$0xff] }
  0xde   :  { %4698 = vmatpush1.bf16.msra.mxu0 %v4697_v33  ;;  %v352_v33 = vld [vmem:[#allocation5 + $0x758] sm:$0xff]  ;;  %v490_v24 = vld [vmem:[#allocation5 + $0xba8] sm:$0xff] }
  0xdf   :  { %4582 = vmatpush1.bf16.msra.mxu1 %v4581_v28  ;;  %4700 = vmatprep.subr.bf16.mxu0 %v4699_v35  ;;  %v4603_v28 = vpack.c.bf16 %v336_v21, %v328_v19  ;;  %v409_v35 = vld [vmem:[#allocation5 + $0x920] sm:$0xff]  ;;  %v4735_v21 = vpack.c.bf16 %v482_v13, %v474_v12  ;;  %v498_v25 = vld [vmem:[#allocation5 + $0xbe8] sm:$0xff] }
  0xe0   :  { %4584 = vmatprep.subr.bf16.mxu1 %v4583_v29  ;;  %v327_v29 = vld [vmem:[#allocation5 + $0x690] sm:$0xff]  ;;  %v4721_v44 = vpack.c.bf16 %v417_v36, %v409_v35  ;;  %v497_v35 = vld [vmem:[#allocation5 + $0xbe0] sm:$0xff] }
  0xe1   :  { %v4605_v39 = vpack.c.bf16 %v335_v31, %v327_v29  ;;  %v415_v29 = vld [vmem:[#allocation5 + $0x950] sm:$0xff]  ;;  %v424_v31 = vld [vmem:[#allocation5 + $0x998] sm:$0xff] }
  0xe2   :  { %4702 = vmatpush1.bf16.msra.mxu0 %v4701_v45  ;;  %v368_v45 = vld [vmem:[#allocation5 + $0x7d8] sm:$0xff]  ;;  %v1120_v36 = vld [vmem:[#allocation8 + $0x8] sm:$0xff] }
  0xe3   :  { %4586 = vmatpush1.bf16.msra.mxu1 %v4585_v40  ;;  %4704 = vmatprep.subr.bf16.mxu0 %v4703_v47  ;;  %v4607_v40 = vpack.c.bf16 %v352_v33, %v344_v32  ;;  %v425_v47 = vld [vmem:[#allocation5 + $0x9a0] sm:$0xff]  ;;  %v4739_v33 = vpack.c.bf16 %v498_v25, %v490_v24 }
  0xe4   :  { %4588 = vmatprep.subr.bf16.mxu1 %v4587_v41  ;;  %v343_v41 = vld [vmem:[#allocation5 + $0x710] sm:$0xff]  ;;  %v4725_v56 = vpack.c.bf16 %v433_v48, %v425_v47 }
  0xe5   :  { %v4609_v51 = vpack.c.bf16 %v351_v42, %v343_v41  ;;  %v440_v41 = vld [vmem:[#allocation5 + $0xa18] sm:$0xff]  ;;  %v1136_v47 = vld [vmem:[#allocation8 + $0x88] sm:$0xff] }
  0xe6   :  { %4706 = vmatpush1.bf16.msra.mxu0 %v4705_v57  ;;  %v384_v57 = vld [vmem:[#allocation5 + $0x858] sm:$0xff]  ;;  %v1144_v48 = vld [vmem:[#allocation8 + $0xc8] sm:$0xff] }
  0xe7   :  { %4590 = vmatpush1.bf16.msra.mxu1 %v4589_v52  ;;  %4708 = vmatprep.subr.bf16.mxu0 %v4707_v59  ;;  %v4611_v52 = vpack.c.bf16 %v368_v45, %v360_v43  ;;  %v441_v59 = vld [vmem:[#allocation5 + $0xa20] sm:$0xff]  ;;  %v448_v43 = vld [vmem:[#allocation5 + $0xa58] sm:$0xff]  ;;  %v1119_v45 = vld [vmem:[#allocation8] sm:$0xff] }
  0xe8   :  { %4592 = vmatprep.subr.bf16.mxu1 %v4591_v53  ;;  %v359_v53 = vld [vmem:[#allocation5 + $0x790] sm:$0xff]  ;;  %v4729_v7 = vpack.c.bf16 %v449_v60, %v441_v59  ;;  %v4631_v50 = vpack.c.bf16 %v448_v43, %v440_v41  ;;  %v148_v41 = vld [vmem:[#allocation5 + $0xf8] sm:$0xff]  ;;  %v1199_v43 = vld [vmem:[#allocation8 + $0x280] sm:$0xff] }
  0xe9   :  { %v4613_v1 = vpack.c.bf16 %v367_v54, %v359_v53  ;;  %v456_v53 = vld [vmem:[#allocation5 + $0xa98] sm:$0xff]  ;;  %v1152_v59 = vld [vmem:[#allocation8 + $0x108] sm:$0xff] }
  0xea   :  { %4710 = vmatpush1.bf16.msra.mxu0 %v4709_v8  ;;  %v400_v8 = vld [vmem:[#allocation5 + $0x8d8] sm:$0xff]  ;;  %v1160_v60 = vld [vmem:[#allocation8 + $0x148] sm:$0xff] }
  0xeb   :  { %4594 = vmatpush1.bf16.msra.mxu1 %v4593_v2  ;;  %4712 = vmatprep.subr.bf16.mxu0 %v4711_v10  ;;  %v4615_v2 = vpack.c.bf16 %v384_v57, %v376_v55  ;;  %v457_v10 = vld [vmem:[#allocation5 + $0xaa0] sm:$0xff]  ;;  %v464_v55 = vld [vmem:[#allocation5 + $0xad8] sm:$0xff]  ;;  %v1135_v57 = vld [vmem:[#allocation8 + $0x80] sm:$0xff] }
  0xec   :  { %4596 = vmatprep.subr.bf16.mxu1 %v4595_v3  ;;  %v375_v3 = vld [vmem:[#allocation5 + $0x810] sm:$0xff]  ;;  %v4733_v19 = vpack.c.bf16 %v465_v11, %v457_v10  ;;  %v4635_v63 = vpack.c.bf16 %v464_v55, %v456_v53  ;;  %v164_v53 = vld [vmem:[#allocation5 + $0x178] sm:$0xff]  ;;  %v1215_v55 = vld [vmem:[#allocation8 + $0x300] sm:$0xff] }
  0xed   :  { %892 = vmatmul.mubr.f32.vlgmr.msra.gmra.mrb[2].mxu0 %v6652_v4  ;;  %v4617_v14 = vpack.c.bf16 %v383_v5, %v375_v3  ;;  %v472_v3 = vld [vmem:[#allocation5 + $0xb18] sm:$0xff]  ;;  %v1168_v10 = vld [vmem:[#allocation8 + $0x188] sm:$0xff] }
  0xee   :  { %4714 = vmatpush1.bf16.msra.mxu0 %v4713_v20  ;;  %962 = vmatprep.mubr.f32.mxu0 %v6518_v0  ;;  %v416_v20 = vld [vmem:[#allocation5 + $0x958] sm:$0xff]  ;;  %v1176_v11 = vld [vmem:[#allocation8 + $0x1c8] sm:$0xff] }
  0xef   :  { %4598 = vmatpush1.bf16.msra.mxu1 %v4597_v15  ;;  %4716 = vmatprep.subr.bf16.mxu0 %v4715_v22  ;;  %v4619_v15 = vpack.c.bf16 %v400_v8, %v392_v6  ;;  %v473_v22 = vld [vmem:[#allocation5 + $0xb20] sm:$0xff]  ;;  %v480_v6 = vld [vmem:[#allocation5 + $0xb58] sm:$0xff]  ;;  %v1151_v8 = vld [vmem:[#allocation8 + $0x100] sm:$0xff] }
  0xf0   :  { %4600 = vmatprep.subr.bf16.mxu1 %v4599_v16  ;;  %v391_v16 = vld [vmem:[#allocation5 + $0x890] sm:$0xff]  ;;  %v4737_v32 = vpack.c.bf16 %v481_v23, %v473_v22  ;;  %v4639_v13 = vpack.c.bf16 %v480_v6, %v472_v3 }
  0xf1   :  { %v4621_v26 = vpack.c.bf16 %v399_v17, %v391_v16  ;;  %v488_v16 = vld [vmem:[#allocation5 + $0xb98] sm:$0xff]  ;;  %v1184_v22 = vld [vmem:[#allocation8 + $0x208] sm:$0xff] }
  0xf2   :  { %4718 = vmatpush1.bf16.msra.mxu0 %v4717_v30  ;;  %v432_v30 = vld [vmem:[#allocation5 + $0x9d8] sm:$0xff]  ;;  %v1192_v23 = vld [vmem:[#allocation8 + $0x248] sm:$0xff] }
  0xf3   :  { %4602 = vmatpush1.bf16.msra.mxu1 %v4601_v27  ;;  %4720 = vmatprep.subr.bf16.mxu0 %v4719_v34  ;;  %v4623_v27 = vpack.c.bf16 %v416_v20, %v408_v18  ;;  %v489_v34 = vld [vmem:[#allocation5 + $0xba0] sm:$0xff]  ;;  %v4627_v38 = vpack.c.bf16 %v432_v30, %v424_v31  ;;  %v496_v18 = vld [vmem:[#allocation5 + $0xbd8] sm:$0xff]  ;;  %v1167_v20 = vld [vmem:[#allocation8 + $0x180] sm:$0xff] }
  0xf4   :  { %4604 = vmatprep.subr.bf16.mxu1 %v4603_v28  ;;  %v407_v28 = vld [vmem:[#allocation5 + $0x910] sm:$0xff]  ;;  %v4741_v42 = vpack.c.bf16 %v497_v35, %v489_v34  ;;  %v4643_v25 = vpack.c.bf16 %v496_v18, %v488_v16  ;;  %v132_v31 = vld [vmem:[#allocation5 + $0x78] sm:$0xff]  ;;  %v1183_v30 = vld [vmem:[#allocation8 + $0x200] sm:$0xff] }
  0xf5   :  { %v4625_v37 = vpack.c.bf16 %v415_v29, %v407_v28  ;;  %v124_v28 = vld [vmem:[#allocation5 + $0x38] sm:$0xff]  ;;  %v1200_v34 = vld [vmem:[#allocation8 + $0x288] sm:$0xff]  ;;  %v1247_v18 = vld [vmem:[#allocation8 + $0x400] sm:$0xff] }
  0xf6   :  { %4722 = vmatpush1.bf16.msra.mxu0 %v4721_v44  ;;  %v1208_v35 = vld [vmem:[#allocation8 + $0x2c8] sm:$0xff]  ;;  %v196_v16 = vld [vmem:[#allocation5 + $0x278] sm:$0xff] }
  0xf7   :  { %4606 = vmatpush1.bf16.msra.mxu1 %v4605_v39  ;;  %4724 = vmatprep.subr.bf16.mxu0 %v4723_v46  ;;  %v423_v39 = vld [vmem:[#allocation5 + $0x990] sm:$0xff]  ;;  %v1127_v46 = vld [vmem:[#allocation8 + $0x40] sm:$0xff] }
  0xf8   :  { %4608 = vmatprep.subr.bf16.mxu1 %v4607_v40  ;;  %v431_v40 = vld [vmem:[#allocation5 + $0x9d0] sm:$0xff]  ;;  %v4841_v54 = vpack.c.bf16 %v1127_v46, %v1119_v45 }
  0xf9   :  { %v4629_v49 = vpack.c.bf16 %v431_v40, %v423_v39  ;;  %v140_v39 = vld [vmem:[#allocation5 + $0xb8] sm:$0xff]  ;;  %v1216_v45 = vld [vmem:[#allocation8 + $0x308] sm:$0xff] }
  0xfa   :  { %4726 = vmatpush1.bf16.msra.mxu0 %v4725_v56  ;;  %v4843_v56 = vpack.c.bf16 %v1144_v48, %v1136_v47  ;;  %v1224_v46 = vld [vmem:[#allocation8 + $0x348] sm:$0xff]  ;;  %v4747_v48 = vpack.c.bf16 %v148_v41, %v140_v39  ;;  %v228_v39 = vld [vmem:[#allocation5 + $0x378] sm:$0xff]  ;;  %v1279_v41 = vld [vmem:[#allocation8 + $0x500] sm:$0xff] }
  0xfb   :  { %4610 = vmatpush1.bf16.msra.mxu1 %v4609_v51  ;;  %4728 = vmatprep.subr.bf16.mxu0 %v4727_v58  ;;  %v439_v51 = vld [vmem:[#allocation5 + $0xa10] sm:$0xff]  ;;  %v1143_v58 = vld [vmem:[#allocation8 + $0xc0] sm:$0xff] }
  0xfc   :  { %4612 = vmatprep.subr.bf16.mxu1 %v4611_v52  ;;  %v447_v52 = vld [vmem:[#allocation5 + $0xa50] sm:$0xff]  ;;  %v4845_v5 = vpack.c.bf16 %v1143_v58, %v1135_v57 }
  0xfd   :  { %v4633_v62 = vpack.c.bf16 %v447_v52, %v439_v51  ;;  %v156_v51 = vld [vmem:[#allocation5 + $0x138] sm:$0xff]  ;;  %v1232_v57 = vld [vmem:[#allocation8 + $0x388] sm:$0xff] }
  0xfe   :  { %4730 = vmatpush1.bf16.msra.mxu0 %v4729_v7  ;;  %v4847_v7 = vpack.c.bf16 %v1160_v60, %v1152_v59  ;;  %v1240_v58 = vld [vmem:[#allocation8 + $0x3c8] sm:$0xff] }
  0xff   :  { %4614 = vmatpush1.bf16.msra.mxu1 %v4613_v1  ;;  %4732 = vmatprep.subr.bf16.mxu0 %v4731_v9  ;;  %v455_v1 = vld [vmem:[#allocation5 + $0xa90] sm:$0xff]  ;;  %v1159_v9 = vld [vmem:[#allocation8 + $0x140] sm:$0xff]  ;;  %v4867_v6 = vpack.c.bf16 %v1240_v58, %v1232_v57 }
 0x100   :  { %4616 = vmatprep.subr.bf16.mxu1 %v4615_v2  ;;  %v463_v2 = vld [vmem:[#allocation5 + $0xad0] sm:$0xff]  ;;  %v4849_v17 = vpack.c.bf16 %v1159_v9, %v1151_v8  ;;  %v1239_v8 = vld [vmem:[#allocation8 + $0x3c0] sm:$0xff] }
 0x101   :  { %v4637_v12 = vpack.c.bf16 %v463_v2, %v455_v1  ;;  %v6316_v60 = vld [vmem:[#allocation2 + $0x8] sm:$0xff]  ;;  %v172_v2 = vld [vmem:[#allocation5 + $0x1b8] sm:$0xff] }
 0x102   :  { %750 = vmatmul.mubr.f32.vlgmr.msra.gmra.mrb[2].mxu1 %v6652_v4  ;;  %4734 = vmatpush1.bf16.msra.mxu0 %v4733_v19  ;;  %v1128_v4 = vld [vmem:[#allocation8 + $0x48] sm:$0xff]  ;;  %v4851_v19 = vpack.c.bf16 %v1176_v11, %v1168_v10 }
 0x103   :  { %4618 = vmatpush1.bf16.msra.mxu1 %v4617_v14  ;;  %820 = vmatprep.mubr.f32.mxu1 %v6518_v0  ;;  %v4839_v44 = vpack.c.bf16 %v1128_v4, %v1120_v36  ;;  %v471_v14 = vld [vmem:[#allocation5 + $0xb10] sm:$0xff]  ;;  %v4743_v4 = vpack.c.bf16 %v132_v31, %v124_v28  ;;  %v212_v28 = vld [vmem:[#allocation5 + $0x2f8] sm:$0xff]  ;;  %v1263_v31 = vld [vmem:[#allocation8 + $0x480] sm:$0xff] }
 0x104   :  { %4620 = vmatprep.subr.bf16.mxu1 %v4619_v15  ;;  %4736 = vmatprep.subr.bf16.mxu0 %v4735_v21  ;;  %v479_v15 = vld [vmem:[#allocation5 + $0xb50] sm:$0xff]  ;;  %v1175_v21 = vld [vmem:[#allocation8 + $0x1c0] sm:$0xff] }
 0x105   :  { %v4641_v24 = vpack.c.bf16 %v479_v15, %v471_v14  ;;  %v4853_v29 = vpack.c.bf16 %v1175_v21, %v1167_v20  ;;  %v163_v1 = vld [vmem:[#allocation5 + $0x170] sm:$0xff]  ;;  %v188_v14 = vld [vmem:[#allocation5 + $0x238] sm:$0xff] }
 0x106   :  { %4738 = vmatpush1.bf16.msra.mxu0 %v4737_v32  ;;  %v4855_v32 = vpack.c.bf16 %v1192_v23, %v1184_v22  ;;  %v1248_v9 = vld [vmem:[#allocation8 + $0x408] sm:$0xff]  ;;  %v4759_v23 = vpack.c.bf16 %v196_v16, %v188_v14  ;;  %v1335_v16 = vld [vmem:[#allocation8 + $0x6c0] sm:$0xff] }
 0x107   :  { %4622 = vmatpush1.bf16.msra.mxu1 %v4621_v26  ;;  %4740 = vmatprep.subr.bf16.mxu0 %v4739_v33  ;;  %v487_v26 = vld [vmem:[#allocation5 + $0xb90] sm:$0xff]  ;;  %v1191_v33 = vld [vmem:[#allocation8 + $0x240] sm:$0xff] }
 0x108   :  { %4624 = vmatprep.subr.bf16.mxu1 %v4623_v27  ;;  %v495_v27 = vld [vmem:[#allocation5 + $0xbd0] sm:$0xff]  ;;  %v4857_v40 = vpack.c.bf16 %v1191_v33, %v1183_v30 }
 0x109   :  { %v4645_v36 = vpack.c.bf16 %v495_v27, %v487_v26  ;;  %v1264_v20 = vld [vmem:[#allocation8 + $0x488] sm:$0xff]  ;;  %v204_v26 = vld [vmem:[#allocation5 + $0x2b8] sm:$0xff] }
 0x10a   :  { %4742 = vmatpush1.bf16.msra.mxu0 %v4741_v42  ;;  %v4859_v42 = vpack.c.bf16 %v1208_v35, %v1200_v34  ;;  %v1272_v21 = vld [vmem:[#allocation8 + $0x4c8] sm:$0xff]  ;;  %v4763_v35 = vpack.c.bf16 %v212_v28, %v204_v26  ;;  %v1351_v28 = vld [vmem:[#allocation8 + $0x740] sm:$0xff] }
 0x10b   :  { %4626 = vmatpush1.bf16.msra.mxu1 %v4625_v37  ;;  %4840 = vmatprep.subr.bf16.mxu0 %v4839_v44  ;;  %v123_v37 = vld [vmem:[#allocation5 + $0x30] sm:$0xff]  ;;  %v1207_v44 = vld [vmem:[#allocation8 + $0x2c0] sm:$0xff] }
 0x10c   :  { %4628 = vmatprep.subr.bf16.mxu1 %v4627_v38  ;;  %v131_v38 = vld [vmem:[#allocation5 + $0x70] sm:$0xff]  ;;  %v4861_v52 = vpack.c.bf16 %v1207_v44, %v1199_v43 }
 0x10d   :  { %963 = vmatmul.mubr.f32.vlgmr.msra.gmra.mrb[2].mxu0 %v6648_v61  ;;  %v4745_v47 = vpack.c.bf16 %v131_v38, %v123_v37  ;;  %v1280_v30 = vld [vmem:[#allocation8 + $0x508] sm:$0xff]  ;;  %v220_v37 = vld [vmem:[#allocation5 + $0x338] sm:$0xff] }
 0x10e   :  { %4842 = vmatpush1.bf16.msra.mxu0 %v4841_v54  ;;  %v4863_v54 = vpack.c.bf16 %v1224_v46, %v1216_v45  ;;  %v1288_v33 = vld [vmem:[#allocation8 + $0x548] sm:$0xff]  ;;  %v4767_v46 = vpack.c.bf16 %v228_v39, %v220_v37  ;;  %v1367_v39 = vld [vmem:[#allocation8 + $0x7c0] sm:$0xff] }
 0x10f   :  { %4630 = vmatpush1.bf16.msra.mxu1 %v4629_v49  ;;  %4844 = vmatprep.subr.bf16.mxu0 %v4843_v56  ;;  %v139_v49 = vld [vmem:[#allocation5 + $0xb0] sm:$0xff]  ;;  %v1223_v56 = vld [vmem:[#allocation8 + $0x340] sm:$0xff] }
 0x110   :  { %4632 = vmatprep.subr.bf16.mxu1 %v4631_v50  ;;  %v147_v50 = vld [vmem:[#allocation5 + $0xf0] sm:$0xff]  ;;  %v4865_v3 = vpack.c.bf16 %v1223_v56, %v1215_v55 }
 0x111   :  { %v4749_v59 = vpack.c.bf16 %v147_v50, %v139_v49  ;;  %v1296_v43 = vld [vmem:[#allocation8 + $0x588] sm:$0xff]  ;;  %v236_v49 = vld [vmem:[#allocation5 + $0x3b8] sm:$0xff] }
 0x112   :  { %4846 = vmatpush1.bf16.msra.mxu0 %v4845_v5  ;;  %v180_v5 = vld [vmem:[#allocation5 + $0x1f8] sm:$0xff]  ;;  %v1304_v44 = vld [vmem:[#allocation8 + $0x5c8] sm:$0xff] }
 0x113   :  { %4634 = vmatpush1.bf16.msra.mxu1 %v4633_v62  ;;  %4848 = vmatprep.subr.bf16.mxu0 %v4847_v7  ;;  %v4751_v62 = vpack.c.bf16 %v164_v53, %v156_v51  ;;  %v1231_v7 = vld [vmem:[#allocation8 + $0x380] sm:$0xff]  ;;  %v4755_v11 = vpack.c.bf16 %v180_v5, %v172_v2  ;;  %v244_v51 = vld [vmem:[#allocation5 + $0x3f8] sm:$0xff]  ;;  %v1312_v55 = vld [vmem:[#allocation8 + $0x608] sm:$0xff] }
 0x114   :  { %4636 = vmatprep.subr.bf16.mxu1 %v4635_v63  ;;  %v155_v63 = vld [vmem:[#allocation5 + $0x130] sm:$0xff]  ;;  %v4869_v15 = vpack.c.bf16 %v1239_v8, %v1231_v7  ;;  %v1295_v53 = vld [vmem:[#allocation8 + $0x580] sm:$0xff]  ;;  %v4771_v58 = vpack.c.bf16 %v244_v51, %v236_v49 }
 0x115   :  { %v4753_v10 = vpack.c.bf16 %v163_v1, %v155_v63  ;;  %v1320_v56 = vld [vmem:[#allocation8 + $0x648] sm:$0xff]  ;;  %v260_v1 = vld [vmem:[#allocation5 + $0x478] sm:$0xff]  ;;  %v1319_v5 = vld [vmem:[#allocation8 + $0x640] sm:$0xff] }
 0x116   :  { %4850 = vmatpush1.bf16.msra.mxu0 %v4849_v17  ;;  %v4887_v2 = vpack.c.bf16 %v1320_v56, %v1312_v55  ;;  %v1336_v7 = vld [vmem:[#allocation8 + $0x6c8] sm:$0xff]  ;;  %v340_v55 = vld [vmem:[#allocation5 + $0x6f8] sm:$0xff] }
 0x117   :  { %4638 = vmatpush1.bf16.msra.mxu1 %v4637_v12  ;;  %4852 = vmatprep.subr.bf16.mxu0 %v4851_v19  ;;  %v171_v12 = vld [vmem:[#allocation5 + $0x1b0] sm:$0xff]  ;;  %v1255_v19 = vld [vmem:[#allocation8 + $0x440] sm:$0xff] }
 0x118   :  { %4640 = vmatprep.subr.bf16.mxu1 %v4639_v13  ;;  %v179_v13 = vld [vmem:[#allocation5 + $0x1f0] sm:$0xff]  ;;  %v4873_v27 = vpack.c.bf16 %v1255_v19, %v1247_v18 }
 0x119   :  { %v4757_v22 = vpack.c.bf16 %v179_v13, %v171_v12  ;;  %v276_v13 = vld [vmem:[#allocation5 + $0x4f8] sm:$0xff]  ;;  %v1352_v18 = vld [vmem:[#allocation8 + $0x748] sm:$0xff] }
 0x11a   :  { %4854 = vmatpush1.bf16.msra.mxu0 %v4853_v29  ;;  %v4875_v29 = vpack.c.bf16 %v1272_v21, %v1264_v20  ;;  %v267_v21 = vld [vmem:[#allocation5 + $0x4b0] sm:$0xff] }
 0x11b   :  { %4642 = vmatpush1.bf16.msra.mxu1 %v4641_v24  ;;  %4856 = vmatprep.subr.bf16.mxu0 %v4855_v32  ;;  %v187_v24 = vld [vmem:[#allocation5 + $0x230] sm:$0xff]  ;;  %v1271_v32 = vld [vmem:[#allocation8 + $0x4c0] sm:$0xff] }
 0x11c   :  { %4644 = vmatprep.subr.bf16.mxu1 %v4643_v25  ;;  %v195_v25 = vld [vmem:[#allocation5 + $0x270] sm:$0xff]  ;;  %v4877_v38 = vpack.c.bf16 %v1271_v32, %v1263_v31 }
 0x11d   :  { %v4761_v34 = vpack.c.bf16 %v195_v25, %v187_v24  ;;  %v292_v25 = vld [vmem:[#allocation5 + $0x578] sm:$0xff]  ;;  %v1368_v31 = vld [vmem:[#allocation8 + $0x7c8] sm:$0xff] }
 0x11e   :  { %4858 = vmatpush1.bf16.msra.mxu0 %v4857_v40  ;;  %v4879_v40 = vpack.c.bf16 %v1288_v33, %v1280_v30  ;;  %v283_v33 = vld [vmem:[#allocation5 + $0x530] sm:$0xff] }
 0x11f   :  { %4646 = vmatpush1.bf16.msra.mxu1 %v4645_v36  ;;  %4860 = vmatprep.subr.bf16.mxu0 %v4859_v42  ;;  %v203_v36 = vld [vmem:[#allocation5 + $0x2b0] sm:$0xff]  ;;  %v1287_v42 = vld [vmem:[#allocation8 + $0x540] sm:$0xff] }
 0x120   :  { %4744 = vmatprep.subr.bf16.mxu1 %v4743_v4  ;;  %v211_v4 = vld [vmem:[#allocation5 + $0x2f0] sm:$0xff]  ;;  %v4881_v50 = vpack.c.bf16 %v1287_v42, %v1279_v41 }
 0x121   :  { %v4765_v45 = vpack.c.bf16 %v211_v4, %v203_v36  ;;  %v308_v4 = vld [vmem:[#allocation5 + $0x5f8] sm:$0xff]  ;;  %v1384_v41 = vld [vmem:[#allocation8 + $0x848] sm:$0xff] }
 0x122   :  { %821 = vmatmul.mubr.f32.vlgmr.msra.gmra.mrb[2].mxu1 %v6648_v61  ;;  %4862 = vmatpush1.bf16.msra.mxu0 %v4861_v52  ;;  %v1256_v61 = vld [vmem:[#allocation8 + $0x448] sm:$0xff]  ;;  %v4883_v52 = vpack.c.bf16 %v1304_v44, %v1296_v43 }
 0x123   :  { %4746 = vmatpush1.bf16.msra.mxu1 %v4745_v47  ;;  %1033 = vmatprep.mubr.f32.mxu1 %v6316_v60  ;;  %v4871_v17 = vpack.c.bf16 %v1256_v61, %v1248_v9  ;;  %v219_v47 = vld [vmem:[#allocation5 + $0x330] sm:$0xff] }
 0x124   :  { %4748 = vmatprep.subr.bf16.mxu1 %v4747_v48  ;;  %4864 = vmatprep.subr.bf16.mxu0 %v4863_v54  ;;  %v227_v48 = vld [vmem:[#allocation5 + $0x370] sm:$0xff]  ;;  %v1303_v54 = vld [vmem:[#allocation8 + $0x5c0] sm:$0xff] }
 0x125   :  { %v4769_v57 = vpack.c.bf16 %v227_v48, %v219_v47  ;;  %v243_v60 = vld [vmem:[#allocation5 + $0x3f0] sm:$0xff]  ;;  %v4885_v63 = vpack.c.bf16 %v1303_v54, %v1295_v53  ;;  %v316_v47 = vld [vmem:[#allocation5 + $0x638] sm:$0xff] }
 0x126   :  { %4866 = vmatpush1.bf16.msra.mxu0 %v4865_v3  ;;  %v1311_v3 = vld [vmem:[#allocation8 + $0x600] sm:$0xff]  ;;  %v251_v61 = vld [vmem:[#allocation5 + $0x430] sm:$0xff]  ;;  %v324_v48 = vld [vmem:[#allocation5 + $0x678] sm:$0xff] }
 0x127   :  { %4750 = vmatpush1.bf16.msra.mxu1 %v4749_v59  ;;  %4868 = vmatprep.subr.bf16.mxu0 %v4867_v6  ;;  %v235_v59 = vld [vmem:[#allocation5 + $0x3b0] sm:$0xff]  ;;  %v4889_v12 = vpack.c.bf16 %v1319_v5, %v1311_v3  ;;  %v4791_v51 = vpack.c.bf16 %v324_v48, %v316_v47  ;;  %v332_v54 = vld [vmem:[#allocation5 + $0x6b8] sm:$0xff] }
 0x128   :  { %4752 = vmatprep.subr.bf16.mxu1 %v4751_v62  ;;  %v252_v62 = vld [vmem:[#allocation5 + $0x438] sm:$0xff]  ;;  %v1328_v6 = vld [vmem:[#allocation8 + $0x688] sm:$0xff]  ;;  %v4773_v8 = vpack.c.bf16 %v243_v60, %v235_v59 }
 0x129   :  { %v4775_v9 = vpack.c.bf16 %v260_v1, %v252_v62  ;;  %v4891_v14 = vpack.c.bf16 %v1336_v7, %v1328_v6  ;;  %v299_v44 = vld [vmem:[#allocation5 + $0x5b0] sm:$0xff]  ;;  %v348_v60 = vld [vmem:[#allocation5 + $0x738] sm:$0xff] }
 0x12a   :  { %4870 = vmatpush1.bf16.msra.mxu0 %v4869_v15  ;;  %v1327_v15 = vld [vmem:[#allocation8 + $0x680] sm:$0xff]  ;;  %v323_v53 = vld [vmem:[#allocation5 + $0x670] sm:$0xff]  ;;  %v356_v62 = vld [vmem:[#allocation5 + $0x778] sm:$0xff] }
 0x12b   :  { %4754 = vmatpush1.bf16.msra.mxu1 %v4753_v10  ;;  %4872 = vmatprep.subr.bf16.mxu0 %v4871_v17  ;;  %v259_v10 = vld [vmem:[#allocation5 + $0x470] sm:$0xff]  ;;  %v4893_v24 = vpack.c.bf16 %v1335_v16, %v1327_v15  ;;  %v4799_v1 = vpack.c.bf16 %v356_v62, %v348_v60  ;;  %v364_v5 = vld [vmem:[#allocation5 + $0x7b8] sm:$0xff] }
 0x12c   :  { %4756 = vmatprep.subr.bf16.mxu1 %v4755_v11  ;;  %v268_v11 = vld [vmem:[#allocation5 + $0x4b8] sm:$0xff]  ;;  %v1344_v17 = vld [vmem:[#allocation8 + $0x708] sm:$0xff]  ;;  %v4777_v19 = vpack.c.bf16 %v259_v10, %v251_v61 }
 0x12d   :  { %v4779_v20 = vpack.c.bf16 %v276_v13, %v268_v11  ;;  %v4895_v26 = vpack.c.bf16 %v1352_v18, %v1344_v17  ;;  %v339_v59 = vld [vmem:[#allocation5 + $0x6f0] sm:$0xff]  ;;  %v372_v6 = vld [vmem:[#allocation5 + $0x7f8] sm:$0xff] }
 0x12e   :  { %4874 = vmatpush1.bf16.msra.mxu0 %v4873_v27  ;;  %v1343_v27 = vld [vmem:[#allocation8 + $0x700] sm:$0xff]  ;;  %v355_v3 = vld [vmem:[#allocation5 + $0x770] sm:$0xff]  ;;  %v380_v10 = vld [vmem:[#allocation5 + $0x838] sm:$0xff] }
 0x12f   :  { %4758 = vmatpush1.bf16.msra.mxu1 %v4757_v22  ;;  %4876 = vmatprep.subr.bf16.mxu0 %v4875_v29  ;;  %v275_v22 = vld [vmem:[#allocation5 + $0x4f0] sm:$0xff]  ;;  %v4897_v36 = vpack.c.bf16 %v1351_v28, %v1343_v27  ;;  %v388_v11 = vld [vmem:[#allocation5 + $0x878] sm:$0xff] }
 0x130   :  { %4760 = vmatprep.subr.bf16.mxu1 %v4759_v23  ;;  %v284_v23 = vld [vmem:[#allocation5 + $0x538] sm:$0xff]  ;;  %v1360_v29 = vld [vmem:[#allocation8 + $0x788] sm:$0xff]  ;;  %v4781_v32 = vpack.c.bf16 %v275_v22, %v267_v21  ;;  %v4807_v13 = vpack.c.bf16 %v388_v11, %v380_v10 }
 0x131   :  { %v4783_v30 = vpack.c.bf16 %v292_v25, %v284_v23  ;;  %v4899_v37 = vpack.c.bf16 %v1368_v31, %v1360_v29  ;;  %v371_v61 = vld [vmem:[#allocation5 + $0x7f0] sm:$0xff]  ;;  %v396_v16 = vld [vmem:[#allocation5 + $0x8b8] sm:$0xff] }
 0x132   :  { %4878 = vmatpush1.bf16.msra.mxu0 %v4877_v38  ;;  %v1359_v38 = vld [vmem:[#allocation8 + $0x780] sm:$0xff]  ;;  %v387_v15 = vld [vmem:[#allocation5 + $0x870] sm:$0xff]  ;;  %v404_v17 = vld [vmem:[#allocation5 + $0x8f8] sm:$0xff] }
 0x133   :  { %4762 = vmatpush1.bf16.msra.mxu1 %v4761_v34  ;;  %4880 = vmatprep.subr.bf16.mxu0 %v4879_v40  ;;  %v291_v34 = vld [vmem:[#allocation5 + $0x570] sm:$0xff]  ;;  %v412_v22 = vld [vmem:[#allocation5 + $0x938] sm:$0xff] }
 0x134   :  { %4764 = vmatprep.subr.bf16.mxu1 %v4763_v35  ;;  %v300_v35 = vld [vmem:[#allocation5 + $0x5b8] sm:$0xff]  ;;  %v1376_v40 = vld [vmem:[#allocation8 + $0x808] sm:$0xff]  ;;  %v4785_v42 = vpack.c.bf16 %v291_v34, %v283_v33 }
 0x135   :  { %v4787_v43 = vpack.c.bf16 %v308_v4, %v300_v35  ;;  %v4903_v49 = vpack.c.bf16 %v1384_v41, %v1376_v40  ;;  %v403_v21 = vld [vmem:[#allocation5 + $0x8f0] sm:$0xff]  ;;  %v420_v23 = vld [vmem:[#allocation5 + $0x978] sm:$0xff] }
 0x136   :  { %4882 = vmatpush1.bf16.msra.mxu0 %v4881_v50  ;;  %v411_v27 = vld [vmem:[#allocation5 + $0x930] sm:$0xff]  ;;  %v428_v29 = vld [vmem:[#allocation5 + $0x9b8] sm:$0xff] }
 0x137   :  { %4766 = vmatpush1.bf16.msra.mxu1 %v4765_v45  ;;  %4884 = vmatprep.subr.bf16.mxu0 %v4883_v52  ;;  %v307_v45 = vld [vmem:[#allocation5 + $0x5f0] sm:$0xff]  ;;  %v436_v31 = vld [vmem:[#allocation5 + $0x9f8] sm:$0xff] }
 0x138   :  { %4768 = vmatprep.subr.bf16.mxu1 %v4767_v46  ;;  %v4901_v46 = vpack.c.bf16 %v1367_v39, %v1359_v38  ;;  %v4789_v50 = vpack.c.bf16 %v307_v45, %v299_v44  ;;  %v315_v52 = vld [vmem:[#allocation5 + $0x630] sm:$0xff]  ;;  %v444_v35 = vld [vmem:[#allocation5 + $0xa38] sm:$0xff] }
 0x139   :  { %v4793_v56 = vpack.c.bf16 %v323_v53, %v315_v52  ;;  %v419_v28 = vld [vmem:[#allocation5 + $0x970] sm:$0xff]  ;;  %v460_v39 = vld [vmem:[#allocation5 + $0xab8] sm:$0xff] }
 0x13a   :  { %4886 = vmatpush1.bf16.msra.mxu0 %v4885_v63  ;;  %v427_v33 = vld [vmem:[#allocation5 + $0x9b0] sm:$0xff]  ;;  %v468_v40 = vld [vmem:[#allocation5 + $0xaf8] sm:$0xff] }
 0x13b   :  { %4770 = vmatpush1.bf16.msra.mxu1 %v4769_v57  ;;  %4888 = vmatprep.subr.bf16.mxu0 %v4887_v2  ;;  %v4795_v57 = vpack.c.bf16 %v340_v55, %v332_v54  ;;  %v347_v2 = vld [vmem:[#allocation5 + $0x730] sm:$0xff]  ;;  %v476_v45 = vld [vmem:[#allocation5 + $0xb38] sm:$0xff] }
 0x13c   :  { %4772 = vmatprep.subr.bf16.mxu1 %v4771_v58  ;;  %v331_v58 = vld [vmem:[#allocation5 + $0x6b0] sm:$0xff]  ;;  %v4801_v7 = vpack.c.bf16 %v355_v3, %v347_v2  ;;  %v500_v52 = vld [vmem:[#allocation5 + $0xbf8] sm:$0xff]  ;;  %v1146_v2 = vld [vmem:[#allocation8 + $0xd8] sm:$0xff] }
 0x13d   :  { %v4797_v63 = vpack.c.bf16 %v339_v59, %v331_v58  ;;  %v435_v34 = vld [vmem:[#allocation5 + $0x9f0] sm:$0xff]  ;;  %v1130_v58 = vld [vmem:[#allocation8 + $0x58] sm:$0xff]  ;;  %v1121_v62 = vld [vmem:[#allocation8 + $0x10] sm:$0xff] }
 0x13e   :  { %4890 = vmatpush1.bf16.msra.mxu0 %v4889_v12  ;;  %v4821_v4 = vpack.c.bf16 %v435_v34, %v427_v33  ;;  %v443_v38 = vld [vmem:[#allocation5 + $0xa30] sm:$0xff]  ;;  %v6318_v10 = vld [vmem:[#allocation2 + $0x10] sm:$0xff]  ;;  %v6668_v34 = vld [vmem:[#allocation7] sm:$0xff] }
 0x13f   :  { %4774 = vmatpush1.bf16.msra.mxu1 %v4773_v8  ;;  %4892 = vmatprep.subr.bf16.mxu0 %v4891_v14  ;;  %v4803_v8 = vpack.c.bf16 %v372_v6, %v364_v5  ;;  %v379_v14 = vld [vmem:[#allocation5 + $0x830] sm:$0xff]  ;;  %v1137_v6 = vld [vmem:[#allocation8 + $0x90] sm:$0xff] }
 0x140   :  { %4776 = vmatprep.subr.bf16.mxu1 %v4775_v9  ;;  %v363_v9 = vld [vmem:[#allocation5 + $0x7b0] sm:$0xff]  ;;  %v4809_v18 = vpack.c.bf16 %v387_v15, %v379_v14  ;;  %v1153_v14 = vld [vmem:[#allocation8 + $0x110] sm:$0xff] }
 0x141   :  { %v4805_v12 = vpack.c.bf16 %v371_v61, %v363_v9  ;;  %v467_v44 = vld [vmem:[#allocation5 + $0xaf0] sm:$0xff]  ;;  %v1162_v9 = vld [vmem:[#allocation8 + $0x158] sm:$0xff]  ;;  %v1161_v15 = vld [vmem:[#allocation8 + $0x150] sm:$0xff] }
 0x142   :  { %4894 = vmatpush1.bf16.msra.mxu0 %v4893_v24  ;;  %v6317_v24 = vld [vmem:[#allocation2] sm:$0xff]  ;;  %v491_v55 = vld [vmem:[#allocation5 + $0xbb0] sm:$0xff] }
 0x143   :  { %4778 = vmatpush1.bf16.msra.mxu1 %v4777_v19  ;;  %4896 = vmatprep.subr.bf16.mxu0 %v4895_v26  ;;  %v4811_v19 = vpack.c.bf16 %v404_v17, %v396_v16  ;;  %v4815_v26 = vpack.c.bf16 %v420_v23, %v412_v22  ;;  %v1170_v16 = vld [vmem:[#allocation8 + $0x198] sm:$0xff]  ;;  %v1177_v22 = vld [vmem:[#allocation8 + $0x1d0] sm:$0xff] }
 0x144   :  { %4780 = vmatprep.subr.bf16.mxu1 %v4779_v20  ;;  %v395_v20 = vld [vmem:[#allocation5 + $0x8b0] sm:$0xff]  ;;  %v1178_v17 = vld [vmem:[#allocation8 + $0x1d8] sm:$0xff] }
 0x145   :  { %v4813_v25 = vpack.c.bf16 %v403_v21, %v395_v20  ;;  %v5107_v20 = vpack.c.bf16 %v1178_v17, %v1170_v16  ;;  %v1169_v21 = vld [vmem:[#allocation8 + $0x190] sm:$0xff]  ;;  %v1186_v23 = vld [vmem:[#allocation8 + $0x218] sm:$0xff] }
 0x146   :  { %4898 = vmatpush1.bf16.msra.mxu0 %v4897_v36  ;;  %v452_v36 = vld [vmem:[#allocation5 + $0xa78] sm:$0xff] }
 0x147   :  { %4782 = vmatpush1.bf16.msra.mxu1 %v4781_v32  ;;  %4900 = vmatprep.subr.bf16.mxu0 %v4899_v37  ;;  %v4817_v32 = vpack.c.bf16 %v419_v28, %v411_v27  ;;  %v4823_v37 = vpack.c.bf16 %v452_v36, %v444_v35  ;;  %v1185_v28 = vld [vmem:[#allocation8 + $0x210] sm:$0xff] }
 0x148   :  { %4784 = vmatprep.subr.bf16.mxu1 %v4783_v30  ;;  %v4819_v30 = vpack.c.bf16 %v436_v31, %v428_v29  ;;  %v1193_v29 = vld [vmem:[#allocation8 + $0x250] sm:$0xff]  ;;  %v1202_v31 = vld [vmem:[#allocation8 + $0x298] sm:$0xff] }
 0x149   :  { %v5113_v33 = vpack.c.bf16 %v1193_v29, %v1185_v28  ;;  %v1265_v16 = vld [vmem:[#allocation8 + $0x490] sm:$0xff] }
 0x14a   :  { %4902 = vmatpush1.bf16.msra.mxu0 %v4901_v46  ;;  %v484_v46 = vld [vmem:[#allocation5 + $0xb78] sm:$0xff] }
 0x14b   :  { %4786 = vmatpush1.bf16.msra.mxu1 %v4785_v42  ;;  %4904 = vmatprep.subr.bf16.mxu0 %v4903_v49  ;;  %v4827_v42 = vpack.c.bf16 %v468_v40, %v460_v39  ;;  %v4831_v48 = vpack.c.bf16 %v484_v46, %v476_v45  ;;  %v475_v49 = vld [vmem:[#allocation5 + $0xb30] sm:$0xff]  ;;  %v1234_v46 = vld [vmem:[#allocation8 + $0x398] sm:$0xff]  ;;  %v1273_v17 = vld [vmem:[#allocation8 + $0x4d0] sm:$0xff] }
 0x14c   :  { %4788 = vmatprep.subr.bf16.mxu1 %v4787_v43  ;;  %v459_v43 = vld [vmem:[#allocation5 + $0xab0] sm:$0xff]  ;;  %v5133_v28 = vpack.c.bf16 %v1273_v17, %v1265_v16  ;;  %v1281_v29 = vld [vmem:[#allocation8 + $0x510] sm:$0xff] }
 0x14d   :  { %v4829_v47 = vpack.c.bf16 %v467_v44, %v459_v43  ;;  %v1217_v43 = vld [vmem:[#allocation8 + $0x310] sm:$0xff]  ;;  %v1496_v16 = vld [vmem:[#allocation8 + $0xbc8] sm:$0xff] }
 0x14e   :  { %v1225_v44 = vld [vmem:[#allocation8 + $0x350] sm:$0xff] }
 0x14f   :  { %4790 = vmatpush1.bf16.msra.mxu1 %v4789_v50  ;;  %v483_v50 = vld [vmem:[#allocation5 + $0xb70] sm:$0xff] }
 0x150   :  { %4792 = vmatprep.subr.bf16.mxu1 %v4791_v51  ;;  %v492_v51 = vld [vmem:[#allocation5 + $0xbb8] sm:$0xff]  ;;  %v4833_v53 = vpack.c.bf16 %v483_v50, %v475_v49 }
 0x151   :  { %v4835_v54 = vpack.c.bf16 %v500_v52, %v492_v51  ;;  %v5121_v51 = vpack.c.bf16 %v1225_v44, %v1217_v43  ;;  %v1233_v52 = vld [vmem:[#allocation8 + $0x390] sm:$0xff] }
 0x152   :  { %v1305_v43 = vld [vmem:[#allocation8 + $0x5d0] sm:$0xff] }
 0x153   :  { %4794 = vmatpush1.bf16.msra.mxu1 %v4793_v56  ;;  %v499_v56 = vld [vmem:[#allocation5 + $0xbf0] sm:$0xff] }
 0x154   :  { %4796 = vmatprep.subr.bf16.mxu1 %v4795_v57  ;;  %v1122_v57 = vld [vmem:[#allocation8 + $0x18] sm:$0xff]  ;;  %v4837_v59 = vpack.c.bf16 %v499_v56, %v491_v55 }
 0x155   :  { %v5095_v60 = vpack.c.bf16 %v1130_v58, %v1122_v57  ;;  %v1250_v56 = vld [vmem:[#allocation8 + $0x418] sm:$0xff]  ;;  %v1375_v57 = vld [vmem:[#allocation8 + $0x800] sm:$0xff] }
 0x156   :  { %v1383_v58 = vld [vmem:[#allocation8 + $0x840] sm:$0xff] }
 0x157   :  { %4798 = vmatpush1.bf16.msra.mxu1 %v4797_v63  ;;  %v1129_v63 = vld [vmem:[#allocation8 + $0x50] sm:$0xff] }
 0x158   :  { %4800 = vmatprep.subr.bf16.mxu1 %v4799_v1  ;;  %v1138_v1 = vld [vmem:[#allocation8 + $0x98] sm:$0xff]  ;;  %v5097_v3 = vpack.c.bf16 %v1129_v63, %v1121_v62  ;;  %v1392_v62 = vld [vmem:[#allocation8 + $0x888] sm:$0xff] }
 0x159   :  { %v5099_v5 = vpack.c.bf16 %v1146_v2, %v1138_v1  ;;  %v1400_v63 = vld [vmem:[#allocation8 + $0x8c8] sm:$0xff] }
 0x15b   :  { %4802 = vmatpush1.bf16.msra.mxu1 %v4801_v7  ;;  %v1145_v7 = vld [vmem:[#allocation8 + $0xd0] sm:$0xff] }
 0x15c   :  { %4804 = vmatprep.subr.bf16.mxu1 %v4803_v8  ;;  %v1154_v8 = vld [vmem:[#allocation8 + $0x118] sm:$0xff] }
 0x15f   :  { %4806 = vmatpush1.bf16.msra.mxu1 %v4805_v12  ;;  %v5101_v12 = vpack.c.bf16 %v1145_v7, %v1137_v6  ;;  %v1257_v6 = vld [vmem:[#allocation8 + $0x450] sm:$0xff]  ;;  %v4905_v7 = vpack.c.bf16 %v1383_v58, %v1375_v57  ;;  %v1330_v58 = vld [vmem:[#allocation8 + $0x698] sm:$0xff] }
 0x160   :  { %4808 = vmatprep.subr.bf16.mxu1 %v4807_v13  ;;  %v5103_v13 = vpack.c.bf16 %v1162_v9, %v1154_v8  ;;  %v1266_v9 = vld [vmem:[#allocation8 + $0x498] sm:$0xff] }
 0x162   :  { %1034 = vmatmul.mubr.f32.vlgmr.msra.gmra.mrb[4].mxu1 %v6317_v24  ;;  %v1194_v24 = vld [vmem:[#allocation8 + $0x258] sm:$0xff] }
 0x163   :  { %4810 = vmatpush1.bf16.msra.mxu1 %v4809_v18  ;;  %1104 = vmatprep.mubr.f32.mxu1 %v6518_v0  ;;  %v451_v0 = vld [vmem:[#allocation5 + $0xa70] sm:$0xff]  ;;  %v503_v18 = vlaneseq  ;;  %v5111_v27 = vpack.c.bf16 %v1194_v24, %v1186_v23  ;;  %v1415_v23 = vld [vmem:[#allocation8 + $0x940] sm:$0xff]  ;;  %v1290_v24 = vld [vmem:[#allocation8 + $0x558] sm:$0xff] }
 0x164   :  { %4812 = vmatprep.subr.bf16.mxu1 %v4811_v19  ;;  %v4825_v41 = vpack.c.bf16 %v451_v0, %v443_v38  ;;  %v5105_v19 = vpack.c.bf16 %v1161_v15, %v1153_v14  ;;  %v1218_v38 = vld [vmem:[#allocation8 + $0x318] sm:$0xff]  ;;  %v1416_v14 = vld [vmem:[#allocation8 + $0x948] sm:$0xff] }
 0x165   :  { %v1226_v0 = vld [vmem:[#allocation8 + $0x358] sm:$0xff] }
 0x167   :  { %4814 = vmatpush1.bf16.msra.mxu1 %v4813_v25  ;;  %v6663_v25 = vshrl.u32 %v503_v18, 7 }
 0x168   :  { %4816 = vmatprep.subr.bf16.mxu1 %v4815_v26  ;;  %v5109_v26 = vpack.c.bf16 %v1177_v22, %v1169_v21  ;;  %v1407_v22 = vld [vmem:[#allocation8 + $0x900] sm:$0xff] }
 0x169   :  { %v6671_v35 = vsub.s32 1, %v6663_v25 }
 0x16b   :  { %4818 = vmatpush1.bf16.msra.mxu1 %v4817_v32  ;;  %v1210_v32 = vld [vmem:[#allocation8 + $0x2d8] sm:$0xff]  ;;  %v510_v40 = vrot.slane %v6668_v34, %v6671_v35 }
 0x16c   :  { %4820 = vmatprep.subr.bf16.mxu1 %v4819_v30  ;;  %v6666_v30 = vsub.s32 0, %v6663_v25  ;;  %v5115_v36 = vpack.c.bf16 %v1210_v32, %v1202_v31  ;;  %v1289_v31 = vld [vmem:[#allocation8 + $0x550] sm:$0xff]  ;;  %v4913_v32 = vpack.c.bf16 %v1415_v23, %v1407_v22  ;;  %v1362_v22 = vld [vmem:[#allocation8 + $0x798] sm:$0xff] }
 0x16e   :  { %v506_v39 = vrot.slane %v6668_v34, %v6666_v30 }
 0x16f   :  { %4822 = vmatpush1.bf16.msra.mxu1 %v4821_v4  ;;  %v1201_v4 = vld [vmem:[#allocation8 + $0x290] sm:$0xff] }
 0x170   :  { %4824 = vmatprep.subr.bf16.mxu1 %v4823_v37  ;;  %v1209_v37 = vld [vmem:[#allocation8 + $0x2d0] sm:$0xff] }
 0x173   :  { %4826 = vmatpush1.bf16.msra.mxu1 %v4825_v41  ;;  %v5117_v41 = vpack.c.bf16 %v1209_v37, %v1201_v4  ;;  %v1423_v37 = vld [vmem:[#allocation8 + $0x980] sm:$0xff] }
 0x174   :  { %4828 = vmatprep.subr.bf16.mxu1 %v4827_v42  ;;  %v5119_v42 = vpack.c.bf16 %v1226_v0, %v1218_v38  ;;  %v1431_v38 = vld [vmem:[#allocation8 + $0x9c0] sm:$0xff]  ;;  %v1306_v0 = vld [vmem:[#allocation8 + $0x5d8] sm:$0xff] }
 0x175   :  { %v4917_v44 = vpack.c.bf16 %v1431_v38, %v1423_v37  ;;  %v1378_v37 = vld [vmem:[#allocation8 + $0x818] sm:$0xff] }
 0x177   :  { %4830 = vmatpush1.bf16.msra.mxu1 %v4829_v47  ;;  %v1242_v47 = vld [vmem:[#allocation8 + $0x3d8] sm:$0xff] }
 0x178   :  { %4832 = vmatprep.subr.bf16.mxu1 %v4831_v48  ;;  %v5123_v55 = vpack.c.bf16 %v1242_v47, %v1234_v46  ;;  %v1314_v46 = vld [vmem:[#allocation8 + $0x618] sm:$0xff] }
 0x17b   :  { %4834 = vmatpush1.bf16.msra.mxu1 %v4833_v53  ;;  %v1241_v53 = vld [vmem:[#allocation8 + $0x3d0] sm:$0xff] }
 0x17c   :  { %4836 = vmatprep.subr.bf16.mxu1 %v4835_v54 }
 0x17f   :  { %4838 = vmatpush1.bf16.msra.mxu1 %v4837_v59  ;;  %v680_v61 = vpop.f32.mrb[0].mxu0 }
 0x180   :  { %5096 = vmatprep.subr.bf16.mxu1 %v5095_v60  ;;  %v682_v11 = vpop.f32.mrb[1].mxu0  ;;  %v1258_v60 = vld [vmem:[#allocation8 + $0x458] sm:$0xff] }
 0x181   :  { %v5127_v8 = vpack.c.bf16 %v1258_v60, %v1250_v56  ;;  %v1455_v60 = vld [vmem:[#allocation8 + $0xa80] sm:$0xff] }
 0x182   :  { %1105 = vmatmul.mubr.f32.vlgmr.msra.gmra.mrb[4].mxu1 %v6318_v10  ;;  %v1391_v10 = vld [vmem:[#allocation8 + $0x880] sm:$0xff] }
 0x183   :  { %5098 = vmatpush1.bf16.msra.mxu1 %v5097_v3  ;;  %v5125_v3 = vpack.c.bf16 %v1241_v53, %v1233_v52  ;;  %v1464_v52 = vld [vmem:[#allocation8 + $0xac8] sm:$0xff] }
 0x184   :  { %5100 = vmatprep.subr.bf16.mxu1 %v5099_v5  ;;  %v1249_v5 = vld [vmem:[#allocation8 + $0x410] sm:$0xff] }
 0x185   :  { %v5129_v15 = vpack.c.bf16 %v1257_v6, %v1249_v5  ;;  %v1480_v5 = vld [vmem:[#allocation8 + $0xb48] sm:$0xff] }
 0x187   :  { %5102 = vmatpush1.bf16.msra.mxu1 %v5101_v12  ;;  %v1399_v12 = vld [vmem:[#allocation8 + $0x8c0] sm:$0xff] }
 0x188   :  { %5104 = vmatprep.subr.bf16.mxu1 %v5103_v13  ;;  %v1408_v13 = vld [vmem:[#allocation8 + $0x908] sm:$0xff]  ;;  %v4909_v18 = vpack.c.bf16 %v1399_v12, %v1391_v10  ;;  %v1346_v10 = vld [vmem:[#allocation8 + $0x718] sm:$0xff] }
 0x189   :  { %v4911_v21 = vpack.c.bf16 %v1416_v14, %v1408_v13  ;;  %v1479_v13 = vld [vmem:[#allocation8 + $0xb40] sm:$0xff]  ;;  %v1354_v14 = vld [vmem:[#allocation8 + $0x758] sm:$0xff] }
 0x18b   :  { %5106 = vmatpush1.bf16.msra.mxu1 %v5105_v19 }
 0x18c   :  { %5108 = vmatprep.subr.bf16.mxu1 %v5107_v20  ;;  %v1282_v20 = vld [vmem:[#allocation8 + $0x518] sm:$0xff] }
 0x18f   :  { %5110 = vmatpush1.bf16.msra.mxu1 %v5109_v26  ;;  %v1424_v26 = vld [vmem:[#allocation8 + $0x988] sm:$0xff] }
 0x190   :  { %5112 = vmatprep.subr.bf16.mxu1 %v5111_v27  ;;  %v1432_v27 = vld [vmem:[#allocation8 + $0x9c8] sm:$0xff] }
 0x191   :  { %v4915_v4 = vpack.c.bf16 %v1432_v27, %v1424_v26  ;;  %v1495_v26 = vld [vmem:[#allocation8 + $0xbc0] sm:$0xff]  ;;  %v1370_v27 = vld [vmem:[#allocation8 + $0x7d8] sm:$0xff] }
 0x193   :  { %5114 = vmatpush1.bf16.msra.mxu1 %v5113_v33  ;;  %v5135_v33 = vpack.c.bf16 %v1290_v24, %v1282_v20  ;;  %v1487_v24 = vld [vmem:[#allocation8 + $0xb80] sm:$0xff] }
 0x194   :  { %5116 = vmatprep.subr.bf16.mxu1 %v5115_v36  ;;  %v1298_v36 = vld [vmem:[#allocation8 + $0x598] sm:$0xff] }
 0x195   :  { %v609_v45 = vpop.f32.mrb[0].mxu1 }
 0x196   :  { %v610_v48 = vadd.f32 %v609_v45, %v506_v39  ;;  %v611_v49 = vpop.f32.mrb[1].mxu1  ;;  %v1440_v39 = vld [vmem:[#allocation8 + $0xa08] sm:$0xff]  ;;  %v5139_v45 = vpack.c.bf16 %v1306_v0, %v1298_v36  ;;  %v4933_v36 = vpack.c.bf16 %v1495_v26, %v1487_v24  ;;  %v1503_v0 = vld [vmem:[#allocation8 + $0xc00] sm:$0xff]  ;;  %v1442_v24 = vld [vmem:[#allocation8 + $0xa18] sm:$0xff] }
 0x197   :  { %v612_v50 = vadd.f32 %v611_v49, %v510_v40  ;;  %5118 = vmatpush1.bf16.msra.mxu1 %v5117_v41  ;;  %v1448_v40 = vld [vmem:[#allocation8 + $0xa48] sm:$0xff]  ;;  %v5137_v41 = vpack.c.bf16 %v1289_v31, %v1281_v29  ;;  %v1447_v49 = vld [vmem:[#allocation8 + $0xa40] sm:$0xff] }
 0x198   :  { %v681_v54 = vadd.f32 %v680_v61, %v610_v48  ;;  %5120 = vmatprep.subr.bf16.mxu1 %v5119_v42  ;;  %v4907_v61 = vpack.c.bf16 %v1400_v63, %v1392_v62  ;;  %v1297_v42 = vld [vmem:[#allocation8 + $0x590] sm:$0xff]  ;;  %v4919_v47 = vpack.c.bf16 %v1448_v40, %v1440_v39  ;;  %v1439_v48 = vld [vmem:[#allocation8 + $0xa00] sm:$0xff]  ;;  %v1338_v63 = vld [vmem:[#allocation8 + $0x6d8] sm:$0xff] }
 0x199   :  { %v683_v59 = vadd.f32 %v682_v11, %v612_v50  ;;  %v1274_v11 = vld [vmem:[#allocation8 + $0x4d8] sm:$0xff]  ;;  %v5141_v53 = vpack.c.bf16 %v1305_v43, %v1297_v42  ;;  %v4921_v56 = vpack.c.bf16 %v1447_v49, %v1439_v48  ;;  %v1463_v62 = vld [vmem:[#allocation8 + $0xac0] sm:$0xff]  ;;  %v1512_v29 = vld [vmem:[#allocation8 + $0xc48] sm:$0xff] }
 0x19a   :  { %v6677_v1 = vmax.f32 %v681_v54, 0.0  ;;  %v5131_v19 = vpack.c.bf16 %v1274_v11, %v1266_v9  ;;  %v1322_v50 = vld [vmem:[#allocation8 + $0x658] sm:$0xff]  ;;  %v1313_v54 = vld [vmem:[#allocation8 + $0x610] sm:$0xff]  ;;  %v4925_v9 = vpack.c.bf16 %v1463_v62, %v1455_v60  ;;  %v1471_v11 = vld [vmem:[#allocation8 + $0xb00] sm:$0xff] }
 0x19b   :  { %v6679_v2 = vmax.f32 %v683_v59, 0.0  ;;  %5122 = vmatpush1.bf16.msra.mxu1 %v5121_v51  ;;  %v1456_v51 = vld [vmem:[#allocation8 + $0xa88] sm:$0xff]  ;;  %v5143_v57 = vpack.c.bf16 %v1322_v50, %v1314_v46  ;;  %v4929_v20 = vpack.c.bf16 %v1479_v13, %v1471_v11  ;;  %v1511_v39 = vld [vmem:[#allocation8 + $0xc40] sm:$0xff]  ;;  %v1386_v40 = vld [vmem:[#allocation8 + $0x858] sm:$0xff] }
 0x19c   :  { %5124 = vmatprep.subr.bf16.mxu1 %v5123_v55  ;;  %v1321_v55 = vld [vmem:[#allocation8 + $0x650] sm:$0xff]  ;;  %v4923_v59 = vpack.c.bf16 %v1464_v52, %v1456_v51  ;;  %v1528_v42 = vld [vmem:[#allocation8 + $0xcc8] sm:$0xff]  ;;  %v4937_v46 = vpack.c.bf16 %v1511_v39, %v1503_v0  ;;  %v1394_v48 = vld [vmem:[#allocation8 + $0x898] sm:$0xff] }
 0x19d   :  { %2249 = vmatprep.mubr.f32.mxu0 %v6679_v2  ;;  %2533 = vmatprep.mubr.f32.mxu1 %v6679_v2  ;;  %v5145_v6 = vpack.c.bf16 %v1321_v55, %v1313_v54  ;;  %v1519_v50 = vld [vmem:[#allocation8 + $0xc80] sm:$0xff]  ;;  %v1402_v52 = vld [vmem:[#allocation8 + $0x8d8] sm:$0xff]  ;;  %v1544_v54 = vld [vmem:[#allocation8 + $0xd48] sm:$0xff] }
 0x19e   :  { %2250 = vmatmul.mubr.f32.vlgmr.msra.gmra.mrb[4].mxu0 %v6677_v1  ;;  %v1527_v51 = vld [vmem:[#allocation8 + $0xcc0] sm:$0xff]  ;;  %v1410_v60 = vld [vmem:[#allocation8 + $0x918] sm:$0xff] }
 0x19f   :  { %5126 = vmatpush1.bf16.msra.mxu1 %v5125_v3  ;;  %4906 = vmatpush1.bf16.msra.mxu0 %v4905_v7  ;;  %v1472_v3 = vld [vmem:[#allocation8 + $0xb08] sm:$0xff]  ;;  %v1329_v7 = vld [vmem:[#allocation8 + $0x690] sm:$0xff]  ;;  %v1426_v11 = vld [vmem:[#allocation8 + $0x998] sm:$0xff] }
 0x1a0   :  { %5128 = vmatprep.subr.bf16.mxu1 %v5127_v8  ;;  %4908 = vmatprep.subr.bf16.mxu0 %v4907_v61  ;;  %v1337_v8 = vld [vmem:[#allocation8 + $0x6d0] sm:$0xff]  ;;  %v5147_v61 = vpack.c.bf16 %v1338_v63, %v1330_v58  ;;  %v4927_v12 = vpack.c.bf16 %v1480_v5, %v1472_v3  ;;  %v4941_v58 = vpack.c.bf16 %v1527_v51, %v1519_v50  ;;  %v1535_v63 = vld [vmem:[#allocation8 + $0xd00] sm:$0xff]  ;;  %v1418_v5 = vld [vmem:[#allocation8 + $0x958] sm:$0xff] }
 0x1a1   :  { %v5149_v17 = vpack.c.bf16 %v1337_v8, %v1329_v7  ;;  %v1543_v3 = vld [vmem:[#allocation8 + $0xd40] sm:$0xff]  ;;  %v1560_v7 = vld [vmem:[#allocation8 + $0xdc8] sm:$0xff]  ;;  %v1458_v0 = vld [vmem:[#allocation8 + $0xa98] sm:$0xff] }
 0x1a2   :  { %v1474_v50 = vld [vmem:[#allocation8 + $0xb18] sm:$0xff] }
 0x1a3   :  { %5130 = vmatpush1.bf16.msra.mxu1 %v5129_v15  ;;  %4910 = vmatpush1.bf16.msra.mxu0 %v4909_v18  ;;  %v1488_v15 = vld [vmem:[#allocation8 + $0xb88] sm:$0xff]  ;;  %v1345_v18 = vld [vmem:[#allocation8 + $0x710] sm:$0xff] }
 0x1a4   :  { %5132 = vmatprep.subr.bf16.mxu1 %v5131_v19  ;;  %4912 = vmatprep.subr.bf16.mxu0 %v4911_v21  ;;  %v1353_v19 = vld [vmem:[#allocation8 + $0x750] sm:$0xff]  ;;  %v5151_v21 = vpack.c.bf16 %v1354_v14, %v1346_v10  ;;  %v4931_v23 = vpack.c.bf16 %v1496_v16, %v1488_v15  ;;  %v4945_v10 = vpack.c.bf16 %v1543_v3, %v1535_v63  ;;  %v1551_v14 = vld [vmem:[#allocation8 + $0xd80] sm:$0xff]  ;;  %v1434_v16 = vld [vmem:[#allocation8 + $0x9d8] sm:$0xff] }
 0x1a5   :  { %v5153_v31 = vpack.c.bf16 %v1353_v19, %v1345_v18  ;;  %v1559_v15 = vld [vmem:[#allocation8 + $0xdc0] sm:$0xff]  ;;  %v1576_v18 = vld [vmem:[#allocation8 + $0xe48] sm:$0xff]  ;;  %v1490_v63 = vld [vmem:[#allocation8 + $0xb98] sm:$0xff] }
 0x1a7   :  { %5134 = vmatpush1.bf16.msra.mxu1 %v5133_v28  ;;  %4914 = vmatpush1.bf16.msra.mxu0 %v4913_v32  ;;  %v1504_v28 = vld [vmem:[#allocation8 + $0xc08] sm:$0xff]  ;;  %v1361_v32 = vld [vmem:[#allocation8 + $0x790] sm:$0xff] }
 0x1a8   :  { %5136 = vmatprep.subr.bf16.mxu1 %v5135_v33  ;;  %4916 = vmatprep.subr.bf16.mxu0 %v4915_v4  ;;  %v1369_v33 = vld [vmem:[#allocation8 + $0x7d0] sm:$0xff]  ;;  %v5155_v4 = vpack.c.bf16 %v1370_v27, %v1362_v22  ;;  %v4935_v38 = vpack.c.bf16 %v1512_v29, %v1504_v28  ;;  %v4949_v22 = vpack.c.bf16 %v1559_v15, %v1551_v14  ;;  %v1567_v27 = vld [vmem:[#allocation8 + $0xe00] sm:$0xff]  ;;  %v1450_v29 = vld [vmem:[#allocation8 + $0xa58] sm:$0xff] }
 0x1a9   :  { %v5157_v43 = vpack.c.bf16 %v1369_v33, %v1361_v32  ;;  %v1575_v28 = vld [vmem:[#allocation8 + $0xe40] sm:$0xff]  ;;  %v1592_v32 = vld [vmem:[#allocation8 + $0xec8] sm:$0xff]  ;;  %v1506_v15 = vld [vmem:[#allocation8 + $0xc18] sm:$0xff] }
 0x1ab   :  { %5138 = vmatpush1.bf16.msra.mxu1 %v5137_v41  ;;  %4918 = vmatpush1.bf16.msra.mxu0 %v4917_v44  ;;  %v1520_v41 = vld [vmem:[#allocation8 + $0xc88] sm:$0xff]  ;;  %v1377_v44 = vld [vmem:[#allocation8 + $0x810] sm:$0xff] }
 0x1ac   :  { %5140 = vmatprep.subr.bf16.mxu1 %v5139_v45  ;;  %4920 = vmatprep.subr.bf16.mxu0 %v4919_v47  ;;  %v1385_v45 = vld [vmem:[#allocation8 + $0x850] sm:$0xff]  ;;  %v5159_v47 = vpack.c.bf16 %v1386_v40, %v1378_v37  ;;  %v4939_v49 = vpack.c.bf16 %v1528_v42, %v1520_v41  ;;  %v4953_v37 = vpack.c.bf16 %v1575_v28, %v1567_v27  ;;  %v1583_v40 = vld [vmem:[#allocation8 + $0xe80] sm:$0xff]  ;;  %v1466_v42 = vld [vmem:[#allocation8 + $0xad8] sm:$0xff] }
 0x1ad   :  { %v5161_v55 = vpack.c.bf16 %v1385_v45, %v1377_v44  ;;  %v1591_v41 = vld [vmem:[#allocation8 + $0xec0] sm:$0xff]  ;;  %v1608_v44 = vld [vmem:[#allocation8 + $0xf48] sm:$0xff]  ;;  %v1529_v27 = vld [vmem:[#allocation8 + $0xcd0] sm:$0xff] }
 0x1ae   :  { %v1538_v28 = vld [vmem:[#allocation8 + $0xd18] sm:$0xff] }
 0x1af   :  { %5142 = vmatpush1.bf16.msra.mxu1 %v5141_v53  ;;  %4922 = vmatpush1.bf16.msra.mxu0 %v4921_v56  ;;  %v1536_v53 = vld [vmem:[#allocation8 + $0xd08] sm:$0xff]  ;;  %v1393_v56 = vld [vmem:[#allocation8 + $0x890] sm:$0xff] }
 0x1b0   :  { %5144 = vmatprep.subr.bf16.mxu1 %v5143_v57  ;;  %4924 = vmatprep.subr.bf16.mxu0 %v4923_v59  ;;  %v1401_v57 = vld [vmem:[#allocation8 + $0x8d0] sm:$0xff]  ;;  %v5163_v59 = vpack.c.bf16 %v1402_v52, %v1394_v48  ;;  %v4943_v62 = vpack.c.bf16 %v1544_v54, %v1536_v53  ;;  %v4957_v48 = vpack.c.bf16 %v1591_v41, %v1583_v40  ;;  %v1599_v52 = vld [vmem:[#allocation8 + $0xf00] sm:$0xff]  ;;  %v1482_v54 = vld [vmem:[#allocation8 + $0xb58] sm:$0xff] }
 0x1b1   :  { %v5165_v8 = vpack.c.bf16 %v1401_v57, %v1393_v56  ;;  %v1607_v53 = vld [vmem:[#allocation8 + $0xf40] sm:$0xff]  ;;  %v1624_v56 = vld [vmem:[#allocation8 + $0xfc8] sm:$0xff]  ;;  %v1553_v41 = vld [vmem:[#allocation8 + $0xd90] sm:$0xff] }
 0x1b3   :  { %5146 = vmatpush1.bf16.msra.mxu1 %v5145_v6  ;;  %4926 = vmatpush1.bf16.msra.mxu0 %v4925_v9  ;;  %v1552_v6 = vld [vmem:[#allocation8 + $0xd88] sm:$0xff]  ;;  %v1409_v9 = vld [vmem:[#allocation8 + $0x910] sm:$0xff] }
 0x1b4   :  { %5148 = vmatprep.subr.bf16.mxu1 %v5147_v61  ;;  %4928 = vmatprep.subr.bf16.mxu0 %v4927_v12  ;;  %v1417_v61 = vld [vmem:[#allocation8 + $0x950] sm:$0xff]  ;;  %v5167_v12 = vpack.c.bf16 %v1418_v5, %v1410_v60  ;;  %v4947_v13 = vpack.c.bf16 %v1560_v7, %v1552_v6  ;;  %v4961_v60 = vpack.c.bf16 %v1607_v53, %v1599_v52  ;;  %v1615_v5 = vld [vmem:[#allocation8 + $0xf80] sm:$0xff]  ;;  %v1498_v7 = vld [vmem:[#allocation8 + $0xbd8] sm:$0xff]  ;;  %v525_v52 = vsub.s32 5, %v6663_v25 }
 0x1b5   :  { %v5169_v19 = vpack.c.bf16 %v1417_v61, %v1409_v9  ;;  %v1623_v6 = vld [vmem:[#allocation8 + $0xfc0] sm:$0xff]  ;;  %v1640_v9 = vld [vmem:[#allocation8 + $0x1048] sm:$0xff] }
 0x1b7   :  { %5150 = vmatpush1.bf16.msra.mxu1 %v5149_v17  ;;  %4930 = vmatpush1.bf16.msra.mxu0 %v4929_v20  ;;  %v1568_v17 = vld [vmem:[#allocation8 + $0xe08] sm:$0xff]  ;;  %v1425_v20 = vld [vmem:[#allocation8 + $0x990] sm:$0xff] }
 0x1b8   :  { %5152 = vmatprep.subr.bf16.mxu1 %v5151_v21  ;;  %4932 = vmatprep.subr.bf16.mxu0 %v4931_v23  ;;  %v1433_v21 = vld [vmem:[#allocation8 + $0x9d0] sm:$0xff]  ;;  %v5171_v23 = vpack.c.bf16 %v1434_v16, %v1426_v11  ;;  %v4951_v26 = vpack.c.bf16 %v1576_v18, %v1568_v17  ;;  %v1514_v16 = vld [vmem:[#allocation8 + $0xc58] sm:$0xff] }
 0x1b9   :  { %v5173_v33 = vpack.c.bf16 %v1433_v21, %v1425_v20  ;;  %v1489_v11 = vld [vmem:[#allocation8 + $0xb90] sm:$0xff]  ;;  %v5191_v18 = vpack.c.bf16 %v1514_v16, %v1506_v15  ;;  %v1522_v21 = vld [vmem:[#allocation8 + $0xc98] sm:$0xff] }
 0x1ba   :  { %v1513_v20 = vld [vmem:[#allocation8 + $0xc50] sm:$0xff] }
 0x1bb   :  { %5154 = vmatpush1.bf16.msra.mxu1 %v5153_v31  ;;  %4934 = vmatpush1.bf16.msra.mxu0 %v4933_v36  ;;  %v1584_v31 = vld [vmem:[#allocation8 + $0xe88] sm:$0xff]  ;;  %v1441_v36 = vld [vmem:[#allocation8 + $0xa10] sm:$0xff] }
 0x1bc   :  { %5156 = vmatprep.subr.bf16.mxu1 %v5155_v4  ;;  %4936 = vmatprep.subr.bf16.mxu0 %v4935_v38  ;;  %v1449_v4 = vld [vmem:[#allocation8 + $0xa50] sm:$0xff]  ;;  %v5175_v38 = vpack.c.bf16 %v1450_v29, %v1442_v24  ;;  %v4955_v39 = vpack.c.bf16 %v1592_v32, %v1584_v31  ;;  %v1546_v29 = vld [vmem:[#allocation8 + $0xd58] sm:$0xff] }
 0x1bd   :  { %v5177_v45 = vpack.c.bf16 %v1449_v4, %v1441_v36  ;;  %v5199_v36 = vpack.c.bf16 %v1546_v29, %v1538_v28  ;;  %v1537_v4 = vld [vmem:[#allocation8 + $0xd10] sm:$0xff]  ;;  %v1647_v28 = vld [vmem:[#allocation8 + $0x1080] sm:$0xff] }
 0x1be   :  { %v1655_v29 = vld [vmem:[#allocation8 + $0x10c0] sm:$0xff] }
 0x1bf   :  { %5158 = vmatpush1.bf16.msra.mxu1 %v5157_v43  ;;  %4938 = vmatpush1.bf16.msra.mxu0 %v4937_v46  ;;  %v1600_v43 = vld [vmem:[#allocation8 + $0xf08] sm:$0xff]  ;;  %v1457_v46 = vld [vmem:[#allocation8 + $0xa90] sm:$0xff] }
 0x1c0   :  { %5160 = vmatprep.subr.bf16.mxu1 %v5159_v47  ;;  %4940 = vmatprep.subr.bf16.mxu0 %v4939_v49  ;;  %v1465_v47 = vld [vmem:[#allocation8 + $0xad0] sm:$0xff]  ;;  %v5179_v49 = vpack.c.bf16 %v1466_v42, %v1458_v0  ;;  %v4959_v51 = vpack.c.bf16 %v1608_v44, %v1600_v43  ;;  %v1562_v0 = vld [vmem:[#allocation8 + $0xdd8] sm:$0xff] }
 0x1c1   :  { %v5181_v57 = vpack.c.bf16 %v1465_v47, %v1457_v46  ;;  %v1561_v42 = vld [vmem:[#allocation8 + $0xdd0] sm:$0xff]  ;;  %v1570_v43 = vld [vmem:[#allocation8 + $0xe18] sm:$0xff] }
 0x1c2   :  { %2534 = vmatmul.mubr.f32.vlgmr.msra.gmra.mrb[6].mxu1 %v6677_v1  ;;  %v1578_v44 = vld [vmem:[#allocation8 + $0xe58] sm:$0xff]  ;;  %v1569_v47 = vld [vmem:[#allocation8 + $0xe10] sm:$0xff] }
 0x1c3   :  { %5162 = vmatpush1.bf16.msra.mxu1 %v5161_v55  ;;  %4942 = vmatpush1.bf16.msra.mxu0 %v4941_v58  ;;  %v1616_v55 = vld [vmem:[#allocation8 + $0xf88] sm:$0xff]  ;;  %v1473_v58 = vld [vmem:[#allocation8 + $0xb10] sm:$0xff]  ;;  %v5207_v46 = vpack.c.bf16 %v1578_v44, %v1570_v43  ;;  %v1663_v43 = vld [vmem:[#allocation8 + $0x1100] sm:$0xff] }
 0x1c4   :  { %5164 = vmatprep.subr.bf16.mxu1 %v5163_v59  ;;  %4944 = vmatprep.subr.bf16.mxu0 %v4943_v62  ;;  %v1481_v59 = vld [vmem:[#allocation8 + $0xb50] sm:$0xff]  ;;  %v5183_v62 = vpack.c.bf16 %v1482_v54, %v1474_v50  ;;  %v4963_v3 = vpack.c.bf16 %v1624_v56, %v1616_v55  ;;  %v1594_v50 = vld [vmem:[#allocation8 + $0xed8] sm:$0xff]  ;;  %v517_v54 = vsub.s32 3, %v6663_v25  ;;  %v1671_v44 = vld [vmem:[#allocation8 + $0x1140] sm:$0xff] }
 0x1c5   :  { %v5185_v61 = vpack.c.bf16 %v1481_v59, %v1473_v58  ;;  %v1585_v56 = vld [vmem:[#allocation8 + $0xe90] sm:$0xff]  ;;  %v1602_v58 = vld [vmem:[#allocation8 + $0xf18] sm:$0xff] }
 0x1c6   :  { %v1610_v59 = vld [vmem:[#allocation8 + $0xf58] sm:$0xff] }
 0x1c7   :  { %5166 = vmatpush1.bf16.msra.mxu1 %v5165_v8  ;;  %4946 = vmatpush1.bf16.msra.mxu0 %v4945_v10  ;;  %v1632_v8 = vld [vmem:[#allocation8 + $0x1008] sm:$0xff]  ;;  %v4965_v10 = vpack.c.bf16 %v1623_v6, %v1615_v5  ;;  %v5215_v5 = vpack.c.bf16 %v1610_v59, %v1602_v58  ;;  %v1601_v6 = vld [vmem:[#allocation8 + $0xf10] sm:$0xff]  ;;  %v1679_v58 = vld [vmem:[#allocation8 + $0x1180] sm:$0xff] }
 0x1c8   :  { %5168 = vmatprep.subr.bf16.mxu1 %v5167_v12  ;;  %4948 = vmatprep.subr.bf16.mxu0 %v4947_v13  ;;  %v5187_v12 = vpack.c.bf16 %v1498_v7, %v1490_v63  ;;  %v1497_v13 = vld [vmem:[#allocation8 + $0xbd0] sm:$0xff]  ;;  %v4967_v14 = vpack.c.bf16 %v1640_v9, %v1632_v8  ;;  %v518_v63 = vrot.slane %v6668_v34, %v517_v54  ;;  %v1631_v9 = vld [vmem:[#allocation8 + $0x1000] sm:$0xff] }
 0x1c9   :  { %v5189_v17 = vpack.c.bf16 %v1497_v13, %v1489_v11  ;;  %v1609_v7 = vld [vmem:[#allocation8 + $0xf50] sm:$0xff]  ;;  %v1618_v11 = vld [vmem:[#allocation8 + $0xf98] sm:$0xff]  ;;  %v1687_v59 = vld [vmem:[#allocation8 + $0x11c0] sm:$0xff] }
 0x1ca   :  { %v1626_v13 = vld [vmem:[#allocation8 + $0xfd8] sm:$0xff]  ;;  %v5217_v16 = vpack.c.bf16 %v1609_v7, %v1601_v6  ;;  %v1673_v6 = vld [vmem:[#allocation8 + $0x1150] sm:$0xff]  ;;  %v4981_v7 = vpack.c.bf16 %v1687_v59, %v1679_v58  ;;  %v1768_v58 = vld [vmem:[#allocation8 + $0x1448] sm:$0xff] }
 0x1cb   :  { %5170 = vmatpush1.bf16.msra.mxu1 %v5169_v19  ;;  %4950 = vmatpush1.bf16.msra.mxu0 %v4949_v22  ;;  %v1505_v19 = vld [vmem:[#allocation8 + $0xc10] sm:$0xff]  ;;  %v1530_v22 = vld [vmem:[#allocation8 + $0xcd8] sm:$0xff] }
 0x1cc   :  { %5172 = vmatprep.subr.bf16.mxu1 %v5171_v23  ;;  %4952 = vmatprep.subr.bf16.mxu0 %v4951_v26  ;;  %v5193_v23 = vpack.c.bf16 %v1513_v20, %v1505_v19  ;;  %v5195_v24 = vpack.c.bf16 %v1530_v22, %v1522_v21  ;;  %v1521_v26 = vld [vmem:[#allocation8 + $0xc90] sm:$0xff]  ;;  %v5219_v22 = vpack.c.bf16 %v1626_v13, %v1618_v11  ;;  %v1712_v13 = vld [vmem:[#allocation8 + $0x1288] sm:$0xff] }
 0x1cd   :  { %v5197_v32 = vpack.c.bf16 %v1529_v27, %v1521_v26  ;;  %v1625_v19 = vld [vmem:[#allocation8 + $0xfd0] sm:$0xff] }
 0x1cf   :  { %5174 = vmatpush1.bf16.msra.mxu1 %v5173_v33  ;;  %4954 = vmatpush1.bf16.msra.mxu0 %v4953_v37  ;;  %v1545_v37 = vld [vmem:[#allocation8 + $0xd50] sm:$0xff] }
 0x1d0   :  { %5176 = vmatprep.subr.bf16.mxu1 %v5175_v38  ;;  %4956 = vmatprep.subr.bf16.mxu0 %v4955_v39  ;;  %v1554_v38 = vld [vmem:[#allocation8 + $0xd98] sm:$0xff]  ;;  %v5201_v39 = vpack.c.bf16 %v1545_v37, %v1537_v4  ;;  %v1672_v4 = vld [vmem:[#allocation8 + $0x1148] sm:$0xff] }
 0x1d1   :  { %v5203_v40 = vpack.c.bf16 %v1562_v0, %v1554_v38  ;;  %v1633_v38 = vld [vmem:[#allocation8 + $0x1010] sm:$0xff] }
 0x1d2   :  { %v1641_v0 = vld [vmem:[#allocation8 + $0x1050] sm:$0xff] }
 0x1d3   :  { %5178 = vmatpush1.bf16.msra.mxu1 %v5177_v45  ;;  %4958 = vmatpush1.bf16.msra.mxu0 %v4957_v48  ;;  %v5205_v45 = vpack.c.bf16 %v1561_v42, %v1553_v41  ;;  %v1577_v48 = vld [vmem:[#allocation8 + $0xe50] sm:$0xff]  ;;  %v1658_v41 = vld [vmem:[#allocation8 + $0x10d8] sm:$0xff] }
 0x1d4   :  { %5180 = vmatprep.subr.bf16.mxu1 %v5179_v49  ;;  %4960 = vmatprep.subr.bf16.mxu0 %v4959_v51  ;;  %v1586_v49 = vld [vmem:[#allocation8 + $0xe98] sm:$0xff]  ;;  %v6688_v51 = vsub.s32 2, %v6663_v25  ;;  %v5209_v53 = vpack.c.bf16 %v1577_v48, %v1569_v47  ;;  %v1688_v47 = vld [vmem:[#allocation8 + $0x11c8] sm:$0xff] }
 0x1d5   :  { %v5211_v55 = vpack.c.bf16 %v1594_v50, %v1586_v49  ;;  %v1649_v49 = vld [vmem:[#allocation8 + $0x1090] sm:$0xff] }
 0x1d6   :  { %v1657_v50 = vld [vmem:[#allocation8 + $0x10d0] sm:$0xff] }
 0x1d7   :  { %5182 = vmatpush1.bf16.msra.mxu1 %v5181_v57  ;;  %4962 = vmatpush1.bf16.msra.mxu0 %v4961_v60  ;;  %v1593_v57 = vld [vmem:[#allocation8 + $0xed0] sm:$0xff]  ;;  %v514_v60 = vrot.slane %v6668_v34, %v6688_v51 }
 0x1d8   :  { %5184 = vmatprep.subr.bf16.mxu1 %v5183_v62  ;;  %4964 = vmatprep.subr.bf16.mxu0 %v4963_v3  ;;  %v526_v62 = vrot.slane %v6668_v34, %v525_v52  ;;  %v5213_v3 = vpack.c.bf16 %v1593_v57, %v1585_v56  ;;  %v1617_v34 = vld [vmem:[#allocation8 + $0xf90] sm:$0xff]  ;;  %v1674_v56 = vld [vmem:[#allocation8 + $0x1158] sm:$0xff] }
 0x1db   :  { %5186 = vmatpush1.bf16.msra.mxu1 %v5185_v61  ;;  %4966 = vmatpush1.bf16.msra.mxu0 %v4965_v10 }
 0x1dc   :  { %5188 = vmatprep.subr.bf16.mxu1 %v5187_v12  ;;  %4968 = vmatprep.subr.bf16.mxu0 %v4967_v14  ;;  %v1639_v12 = vld [vmem:[#allocation8 + $0x1040] sm:$0xff] }
 0x1dd   :  { %v4969_v21 = vpack.c.bf16 %v1639_v12, %v1631_v9  ;;  %v1690_v9 = vld [vmem:[#allocation8 + $0x11d8] sm:$0xff]  ;;  %v1703_v12 = vld [vmem:[#allocation8 + $0x1240] sm:$0xff] }
 0x1df   :  { %5190 = vmatpush1.bf16.msra.mxu1 %v5189_v17  ;;  %v1648_v17 = vld [vmem:[#allocation8 + $0x1088] sm:$0xff] }
 0x1e0   :  { %5192 = vmatprep.subr.bf16.mxu1 %v5191_v18  ;;  %v6685_v31 = vpop.f32.mrb[2].mxu0  ;;  %v1656_v18 = vld [vmem:[#allocation8 + $0x10c8] sm:$0xff] }
 0x1e1   :  { %v966_v33 = vpop.f32.mrb[3].mxu0  ;;  %v4971_v27 = vpack.c.bf16 %v1656_v18, %v1648_v17  ;;  %v1689_v17 = vld [vmem:[#allocation8 + $0x11d0] sm:$0xff] }
 0x1e2   :  { %v6254_v14 = vadd.f32 %v966_v33, %v526_v62  ;;  %v5221_v33 = vpack.c.bf16 %v1625_v19, %v1617_v34  ;;  %v1696_v62 = vld [vmem:[#allocation8 + $0x1208] sm:$0xff]  ;;  %v1698_v34 = vld [vmem:[#allocation8 + $0x1218] sm:$0xff] }
 0x1e3   :  { %5194 = vmatpush1.bf16.msra.mxu1 %v5193_v23  ;;  %v1634_v23 = vld [vmem:[#allocation8 + $0x1018] sm:$0xff] }
 0x1e4   :  { %5196 = vmatprep.subr.bf16.mxu1 %v5195_v24  ;;  %v1642_v24 = vld [vmem:[#allocation8 + $0x1058] sm:$0xff] }
 0x1e5   :  { %v5223_v37 = vpack.c.bf16 %v1642_v24, %v1634_v23  ;;  %v1706_v19 = vld [vmem:[#allocation8 + $0x1258] sm:$0xff]  ;;  %v1719_v23 = vld [vmem:[#allocation8 + $0x12c0] sm:$0xff] }
 0x1e7   :  { %5198 = vmatpush1.bf16.msra.mxu1 %v5197_v32  ;;  %v6704_v32 = vmax.f32 %v6254_v14, 0.0  ;;  %v1720_v14 = vld [vmem:[#allocation8 + $0x12c8] sm:$0xff] }
 0x1e8   :  { %5200 = vmatprep.subr.bf16.mxu1 %v5199_v36  ;;  %v1664_v36 = vld [vmem:[#allocation8 + $0x1108] sm:$0xff] }
 0x1e9   :  { %v4975_v42 = vpack.c.bf16 %v1672_v4, %v1664_v36  ;;  %v1705_v36 = vld [vmem:[#allocation8 + $0x1250] sm:$0xff] }
 0x1eb   :  { %5202 = vmatpush1.bf16.msra.mxu1 %v5201_v39  ;;  %v4973_v39 = vpack.c.bf16 %v1655_v29, %v1647_v28  ;;  %v1736_v28 = vld [vmem:[#allocation8 + $0x1348] sm:$0xff]  ;;  %v5239_v29 = vpack.c.bf16 %v1706_v19, %v1698_v34  ;;  %v1783_v34 = vld [vmem:[#allocation8 + $0x14c0] sm:$0xff] }
 0x1ec   :  { %5204 = vmatprep.subr.bf16.mxu1 %v5203_v40  ;;  %v1650_v40 = vld [vmem:[#allocation8 + $0x1098] sm:$0xff] }
 0x1ed   :  { %v5227_v48 = vpack.c.bf16 %v1658_v41, %v1650_v40  ;;  %v1735_v40 = vld [vmem:[#allocation8 + $0x1340] sm:$0xff] }
 0x1ef   :  { %5206 = vmatpush1.bf16.msra.mxu1 %v5205_v45  ;;  %v5225_v45 = vpack.c.bf16 %v1641_v0, %v1633_v38  ;;  %v1722_v38 = vld [vmem:[#allocation8 + $0x12d8] sm:$0xff] }
 0x1f0   :  { %5208 = vmatprep.subr.bf16.mxu1 %v5207_v46  ;;  %v1680_v46 = vld [vmem:[#allocation8 + $0x1188] sm:$0xff] }
 0x1f1   :  { %v4979_v57 = vpack.c.bf16 %v1688_v47, %v1680_v46  ;;  %v1721_v46 = vld [vmem:[#allocation8 + $0x12d0] sm:$0xff] }
 0x1f3   :  { %5210 = vmatpush1.bf16.msra.mxu1 %v5209_v53  ;;  %v4977_v53 = vpack.c.bf16 %v1671_v44, %v1663_v43  ;;  %v1752_v43 = vld [vmem:[#allocation8 + $0x13c8] sm:$0xff] }
 0x1f4   :  { %5212 = vmatprep.subr.bf16.mxu1 %v5211_v55  ;;  %v1666_v55 = vld [vmem:[#allocation8 + $0x1118] sm:$0xff] }
 0x1f5   :  { %v822_v8 = vpop.f32.mrb[2].mxu1 }
 0x1f6   :  { %v6251_v61 = vadd.f32 %v822_v8, %v514_v60  ;;  %v824_v10 = vpop.f32.mrb[3].mxu1  ;;  %v5229_v60 = vpack.c.bf16 %v1657_v50, %v1649_v49  ;;  %v1682_v8 = vld [vmem:[#allocation8 + $0x1198] sm:$0xff] }
 0x1f7   :  { %v6252_v15 = vadd.f32 %v824_v10, %v518_v63  ;;  %5214 = vmatpush1.bf16.msra.mxu1 %v5213_v3  ;;  %v1704_v63 = vld [vmem:[#allocation8 + $0x1248] sm:$0xff]  ;;  %v5231_v3 = vpack.c.bf16 %v1674_v56, %v1666_v55  ;;  %v1695_v10 = vld [vmem:[#allocation8 + $0x1200] sm:$0xff]  ;;  %v1738_v49 = vld [vmem:[#allocation8 + $0x1358] sm:$0xff] }
 0x1f8   :  { %5216 = vmatprep.subr.bf16.mxu1 %v5215_v5  ;;  %v6702_v26 = vmax.f32 %v6251_v61, 0.0  ;;  %v1665_v5 = vld [vmem:[#allocation8 + $0x1110] sm:$0xff]  ;;  %v4983_v61 = vpack.c.bf16 %v1704_v63, %v1696_v62  ;;  %v4985_v18 = vpack.c.bf16 %v1703_v12, %v1695_v10  ;;  %v1751_v55 = vld [vmem:[#allocation8 + $0x13c0] sm:$0xff]  ;;  %v1784_v10 = vld [vmem:[#allocation8 + $0x14c8] sm:$0xff] }
 0x1f9   :  { %v6700_v20 = vmax.f32 %v6252_v15, 0.0  ;;  %v5233_v11 = vpack.c.bf16 %v1673_v6, %v1665_v5  ;;  %v5235_v15 = vpack.c.bf16 %v1690_v9, %v1682_v8  ;;  %v1737_v62 = vld [vmem:[#allocation8 + $0x1350] sm:$0xff]  ;;  %v1754_v5 = vld [vmem:[#allocation8 + $0x13d8] sm:$0xff]  ;;  %v1767_v8 = vld [vmem:[#allocation8 + $0x1440] sm:$0xff] }
 0x1fb   :  { %2320 = vmatprep.mubr.f32.mxu0 %v6700_v20  ;;  %5218 = vmatpush1.bf16.msra.mxu1 %v5217_v16  ;;  %v1681_v16 = vld [vmem:[#allocation8 + $0x1190] sm:$0xff] }
 0x1fc   :  { %2604 = vmatprep.mubr.f32.mxu1 %v6700_v20  ;;  %2321 = vmatmul.mubr.f32.vlgmr.msra.gmra.mrb[4].mxu0 %v6702_v26  ;;  %v5237_v24 = vpack.c.bf16 %v1689_v17, %v1681_v16  ;;  %v1770_v16 = vld [vmem:[#allocation8 + $0x1458] sm:$0xff] }
 0x1fd   :  { %4970 = vmatpush1.bf16.msra.mxu0 %v4969_v21  ;;  %5220 = vmatprep.subr.bf16.mxu1 %v5219_v22  ;;  %v4987_v21 = vpack.c.bf16 %v1720_v14, %v1712_v13  ;;  %v1711_v22 = vld [vmem:[#allocation8 + $0x1280] sm:$0xff]  ;;  %v1753_v13 = vld [vmem:[#allocation8 + $0x13d0] sm:$0xff] }
 0x1fe   :  { %4972 = vmatprep.subr.bf16.mxu0 %v4971_v27  ;;  %2391 = vmatprep.mubr.f32.mxu0 %v6704_v32  ;;  %v1728_v27 = vld [vmem:[#allocation8 + $0x1308] sm:$0xff]  ;;  %v4989_v4 = vpack.c.bf16 %v1719_v23, %v1711_v22 }
 0x1ff   :  { %5222 = vmatpush1.bf16.msra.mxu1 %v5221_v33  ;;  %v1697_v33 = vld [vmem:[#allocation8 + $0x1210] sm:$0xff]  ;;  %v4991_v0 = vpack.c.bf16 %v1736_v28, %v1728_v27  ;;  %v1800_v22 = vld [vmem:[#allocation8 + $0x1548] sm:$0xff] }
 0x200   :  { %5224 = vmatprep.subr.bf16.mxu1 %v5223_v37  ;;  %v1714_v37 = vld [vmem:[#allocation8 + $0x1298] sm:$0xff]  ;;  %v5241_v41 = vpack.c.bf16 %v1705_v36, %v1697_v33  ;;  %v1769_v27 = vld [vmem:[#allocation8 + $0x1450] sm:$0xff] }
 0x201   :  { %4974 = vmatpush1.bf16.msra.mxu0 %v4973_v39  ;;  %v1727_v39 = vld [vmem:[#allocation8 + $0x1300] sm:$0xff]  ;;  %v5243_v44 = vpack.c.bf16 %v1722_v38, %v1714_v37  ;;  %v1786_v33 = vld [vmem:[#allocation8 + $0x14d8] sm:$0xff] }
 0x202   :  { %2605 = vmatmul.mubr.f32.vlgmr.msra.gmra.mrb[6].mxu1 %v6702_v26  ;;  %4976 = vmatprep.subr.bf16.mxu0 %v4975_v42  ;;  %v1744_v42 = vld [vmem:[#allocation8 + $0x1388] sm:$0xff]  ;;  %v4993_v47 = vpack.c.bf16 %v1735_v40, %v1727_v39  ;;  %v1799_v37 = vld [vmem:[#allocation8 + $0x1540] sm:$0xff] }
 0x203   :  { %5226 = vmatpush1.bf16.msra.mxu1 %v5225_v45  ;;  %2675 = vmatprep.mubr.f32.mxu1 %v6704_v32  ;;  %v1713_v45 = vld [vmem:[#allocation8 + $0x1290] sm:$0xff]  ;;  %v4995_v50 = vpack.c.bf16 %v1752_v43, %v1744_v42  ;;  %v1816_v39 = vld [vmem:[#allocation8 + $0x15c8] sm:$0xff] }
 0x204   :  { %5228 = vmatprep.subr.bf16.mxu1 %v5227_v48  ;;  %v1730_v48 = vld [vmem:[#allocation8 + $0x1318] sm:$0xff]  ;;  %v5245_v56 = vpack.c.bf16 %v1721_v46, %v1713_v45  ;;  %v1785_v42 = vld [vmem:[#allocation8 + $0x14d0] sm:$0xff] }
 0x205   :  { %4978 = vmatpush1.bf16.msra.mxu0 %v4977_v53  ;;  %v1743_v53 = vld [vmem:[#allocation8 + $0x1380] sm:$0xff]  ;;  %v5247_v59 = vpack.c.bf16 %v1738_v49, %v1730_v48  ;;  %v1802_v45 = vld [vmem:[#allocation8 + $0x1558] sm:$0xff] }
 0x206   :  { %4980 = vmatprep.subr.bf16.mxu0 %v4979_v57  ;;  %v1760_v57 = vld [vmem:[#allocation8 + $0x1408] sm:$0xff]  ;;  %v4997_v63 = vpack.c.bf16 %v1751_v55, %v1743_v53  ;;  %v1815_v48 = vld [vmem:[#allocation8 + $0x15c0] sm:$0xff] }
 0x207   :  { %5230 = vmatpush1.bf16.msra.mxu1 %v5229_v60  ;;  %v1729_v60 = vld [vmem:[#allocation8 + $0x1310] sm:$0xff]  ;;  %v4999_v6 = vpack.c.bf16 %v1768_v58, %v1760_v57  ;;  %v1832_v53 = vld [vmem:[#allocation8 + $0x1648] sm:$0xff] }
 0x208   :  { %5232 = vmatprep.subr.bf16.mxu1 %v5231_v3  ;;  %v1746_v3 = vld [vmem:[#allocation8 + $0x1398] sm:$0xff]  ;;  %v5249_v9 = vpack.c.bf16 %v1737_v62, %v1729_v60  ;;  %v1801_v57 = vld [vmem:[#allocation8 + $0x1550] sm:$0xff] }
 0x209   :  { %4982 = vmatpush1.bf16.msra.mxu0 %v4981_v7  ;;  %v1759_v7 = vld [vmem:[#allocation8 + $0x1400] sm:$0xff]  ;;  %v5251_v12 = vpack.c.bf16 %v1754_v5, %v1746_v3  ;;  %v1818_v60 = vld [vmem:[#allocation8 + $0x15d8] sm:$0xff] }
 0x20a   :  { %4984 = vmatprep.subr.bf16.mxu0 %v4983_v61  ;;  %v1776_v61 = vld [vmem:[#allocation8 + $0x1488] sm:$0xff]  ;;  %v5001_v14 = vpack.c.bf16 %v1767_v8, %v1759_v7  ;;  %v1831_v3 = vld [vmem:[#allocation8 + $0x1640] sm:$0xff] }
 0x20b   :  { %5234 = vmatpush1.bf16.msra.mxu1 %v5233_v11  ;;  %v1745_v11 = vld [vmem:[#allocation8 + $0x1390] sm:$0xff]  ;;  %v5003_v17 = vpack.c.bf16 %v1784_v10, %v1776_v61  ;;  %v1848_v7 = vld [vmem:[#allocation8 + $0x16c8] sm:$0xff] }
 0x20c   :  { %5236 = vmatprep.subr.bf16.mxu1 %v5235_v15  ;;  %v1762_v15 = vld [vmem:[#allocation8 + $0x1418] sm:$0xff]  ;;  %v5253_v19 = vpack.c.bf16 %v1753_v13, %v1745_v11  ;;  %v1817_v61 = vld [vmem:[#allocation8 + $0x15d0] sm:$0xff] }
 0x20d   :  { %4986 = vmatpush1.bf16.msra.mxu0 %v4985_v18  ;;  %v1775_v18 = vld [vmem:[#allocation8 + $0x1480] sm:$0xff]  ;;  %v5255_v23 = vpack.c.bf16 %v1770_v16, %v1762_v15  ;;  %v1834_v11 = vld [vmem:[#allocation8 + $0x1658] sm:$0xff] }
 0x20e   :  { %4988 = vmatprep.subr.bf16.mxu0 %v4987_v21  ;;  %v1792_v21 = vld [vmem:[#allocation8 + $0x1508] sm:$0xff]  ;;  %v5005_v28 = vpack.c.bf16 %v1783_v34, %v1775_v18  ;;  %v1847_v15 = vld [vmem:[#allocation8 + $0x16c0] sm:$0xff] }
 0x20f   :  { %5238 = vmatpush1.bf16.msra.mxu1 %v5237_v24  ;;  %v1761_v24 = vld [vmem:[#allocation8 + $0x1410] sm:$0xff]  ;;  %v5007_v36 = vpack.c.bf16 %v1800_v22, %v1792_v21  ;;  %v1864_v18 = vld [vmem:[#allocation8 + $0x1748] sm:$0xff] }
 0x210   :  { %5240 = vmatprep.subr.bf16.mxu1 %v5239_v29  ;;  %v1778_v29 = vld [vmem:[#allocation8 + $0x1498] sm:$0xff]  ;;  %v5257_v38 = vpack.c.bf16 %v1769_v27, %v1761_v24  ;;  %v1833_v21 = vld [vmem:[#allocation8 + $0x1650] sm:$0xff]  ;;  %v521_v27 = vsub.s32 4, %v6663_v25 }
 0x211   :  { %4990 = vmatpush1.bf16.msra.mxu0 %v4989_v4  ;;  %v1791_v4 = vld [vmem:[#allocation8 + $0x1500] sm:$0xff]  ;;  %v5259_v40 = vpack.c.bf16 %v1786_v33, %v1778_v29  ;;  %v1850_v24 = vld [vmem:[#allocation8 + $0x16d8] sm:$0xff] }
 0x212   :  { %4992 = vmatprep.subr.bf16.mxu0 %v4991_v0  ;;  %v1808_v0 = vld [vmem:[#allocation8 + $0x1588] sm:$0xff]  ;;  %v5009_v43 = vpack.c.bf16 %v1799_v37, %v1791_v4  ;;  %v1855_v29 = vld [vmem:[#allocation8 + $0x1700] sm:$0xff] }
 0x213   :  { %5242 = vmatpush1.bf16.msra.mxu1 %v5241_v41  ;;  %v1777_v41 = vld [vmem:[#allocation8 + $0x1490] sm:$0xff]  ;;  %v5011_v46 = vpack.c.bf16 %v1816_v39, %v1808_v0  ;;  %v1863_v33 = vld [vmem:[#allocation8 + $0x1740] sm:$0xff]  ;;  %v1872_v4 = vld [vmem:[#allocation8 + $0x1788] sm:$0xff] }
 0x214   :  { %5244 = vmatprep.subr.bf16.mxu1 %v5243_v44  ;;  %v1794_v44 = vld [vmem:[#allocation8 + $0x1518] sm:$0xff]  ;;  %v5261_v49 = vpack.c.bf16 %v1785_v42, %v1777_v41  ;;  %v1880_v37 = vld [vmem:[#allocation8 + $0x17c8] sm:$0xff]  ;;  %v1841_v0 = vld [vmem:[#allocation8 + $0x1690] sm:$0xff] }
 0x215   :  { %4994 = vmatpush1.bf16.msra.mxu0 %v4993_v47  ;;  %v1807_v47 = vld [vmem:[#allocation8 + $0x1580] sm:$0xff]  ;;  %v5263_v55 = vpack.c.bf16 %v1802_v45, %v1794_v44  ;;  %v1849_v39 = vld [vmem:[#allocation8 + $0x16d0] sm:$0xff]  ;;  %v1858_v41 = vld [vmem:[#allocation8 + $0x1718] sm:$0xff]  ;;  %v5027_v45 = vpack.c.bf16 %v1880_v37, %v1872_v4 }
 0x216   :  { %4996 = vmatprep.subr.bf16.mxu0 %v4995_v50  ;;  %v1824_v50 = vld [vmem:[#allocation8 + $0x1608] sm:$0xff]  ;;  %v5013_v58 = vpack.c.bf16 %v1815_v48, %v1807_v47  ;;  %v1866_v42 = vld [vmem:[#allocation8 + $0x1758] sm:$0xff]  ;;  %v1879_v47 = vld [vmem:[#allocation8 + $0x17c0] sm:$0xff]  ;;  %v5277_v48 = vpack.c.bf16 %v1849_v39, %v1841_v0 }
 0x217   :  { %5246 = vmatpush1.bf16.msra.mxu1 %v5245_v56  ;;  %v1793_v56 = vld [vmem:[#allocation8 + $0x1510] sm:$0xff]  ;;  %v5015_v62 = vpack.c.bf16 %v1832_v53, %v1824_v50  ;;  %v1896_v50 = vld [vmem:[#allocation8 + $0x1848] sm:$0xff]  ;;  %v5279_v53 = vpack.c.bf16 %v1866_v42, %v1858_v41  ;;  %v1922_v41 = vld [vmem:[#allocation8 + $0x1918] sm:$0xff] }
 0x218   :  { %5248 = vmatprep.subr.bf16.mxu1 %v5247_v59  ;;  %v1810_v59 = vld [vmem:[#allocation8 + $0x1598] sm:$0xff]  ;;  %v5265_v5 = vpack.c.bf16 %v1801_v57, %v1793_v56  ;;  %v1865_v56 = vld [vmem:[#allocation8 + $0x1750] sm:$0xff]  ;;  %v1936_v4 = vld [vmem:[#allocation8 + $0x1988] sm:$0xff] }
 0x219   :  { %4998 = vmatpush1.bf16.msra.mxu0 %v4997_v63  ;;  %v1823_v63 = vld [vmem:[#allocation8 + $0x1600] sm:$0xff]  ;;  %v5267_v8 = vpack.c.bf16 %v1818_v60, %v1810_v59  ;;  %v1882_v59 = vld [vmem:[#allocation8 + $0x17d8] sm:$0xff]  ;;  %v1944_v37 = vld [vmem:[#allocation8 + $0x19c8] sm:$0xff] }
 0x21a   :  { %5000 = vmatprep.subr.bf16.mxu0 %v4999_v6  ;;  %v1840_v6 = vld [vmem:[#allocation8 + $0x1688] sm:$0xff]  ;;  %v5017_v10 = vpack.c.bf16 %v1831_v3, %v1823_v63  ;;  %v1887_v63 = vld [vmem:[#allocation8 + $0x1800] sm:$0xff]  ;;  %v1905_v0 = vld [vmem:[#allocation8 + $0x1890] sm:$0xff] }
 0x21b   :  { %5250 = vmatpush1.bf16.msra.mxu1 %v5249_v9  ;;  %v1809_v9 = vld [vmem:[#allocation8 + $0x1590] sm:$0xff]  ;;  %v5019_v13 = vpack.c.bf16 %v1848_v7, %v1840_v6  ;;  %v1895_v3 = vld [vmem:[#allocation8 + $0x1840] sm:$0xff]  ;;  %v1904_v6 = vld [vmem:[#allocation8 + $0x1888] sm:$0xff] }
 0x21c   :  { %5252 = vmatprep.subr.bf16.mxu1 %v5251_v12  ;;  %v1826_v12 = vld [vmem:[#allocation8 + $0x1618] sm:$0xff]  ;;  %v5269_v16 = vpack.c.bf16 %v1817_v61, %v1809_v9  ;;  %v1912_v7 = vld [vmem:[#allocation8 + $0x18c8] sm:$0xff]  ;;  %v1873_v9 = vld [vmem:[#allocation8 + $0x1790] sm:$0xff] }
 0x21d   :  { %5002 = vmatpush1.bf16.msra.mxu0 %v5001_v14  ;;  %v1839_v14 = vld [vmem:[#allocation8 + $0x1680] sm:$0xff]  ;;  %v5271_v34 = vpack.c.bf16 %v1834_v11, %v1826_v12  ;;  %v1881_v61 = vld [vmem:[#allocation8 + $0x17d0] sm:$0xff]  ;;  %v1890_v12 = vld [vmem:[#allocation8 + $0x1818] sm:$0xff] }
 0x21e   :  { %5004 = vmatprep.subr.bf16.mxu0 %v5003_v17  ;;  %v1856_v17 = vld [vmem:[#allocation8 + $0x1708] sm:$0xff]  ;;  %v5021_v22 = vpack.c.bf16 %v1847_v15, %v1839_v14  ;;  %v1898_v11 = vld [vmem:[#allocation8 + $0x1858] sm:$0xff]  ;;  %v1903_v14 = vld [vmem:[#allocation8 + $0x1880] sm:$0xff] }
 0x21f   :  { %5254 = vmatpush1.bf16.msra.mxu1 %v5253_v19  ;;  %v1825_v19 = vld [vmem:[#allocation8 + $0x1610] sm:$0xff]  ;;  %v1911_v15 = vld [vmem:[#allocation8 + $0x18c0] sm:$0xff]  ;;  %v1930_v42 = vld [vmem:[#allocation8 + $0x1958] sm:$0xff] }
 0x220   :  { %5256 = vmatprep.subr.bf16.mxu1 %v5255_v23  ;;  %v1842_v23 = vld [vmem:[#allocation8 + $0x1698] sm:$0xff]  ;;  %v1913_v39 = vld [vmem:[#allocation8 + $0x18d0] sm:$0xff] }
 0x221   :  { %5006 = vmatpush1.bf16.msra.mxu0 %v5005_v28  ;;  %v5023_v28 = vpack.c.bf16 %v1864_v18, %v1856_v17  ;;  %v1920_v17 = vld [vmem:[#allocation8 + $0x1908] sm:$0xff] }
 0x222   :  { %5008 = vmatprep.subr.bf16.mxu0 %v5007_v36  ;;  %v5273_v36 = vpack.c.bf16 %v1833_v21, %v1825_v19  ;;  %v1928_v18 = vld [vmem:[#allocation8 + $0x1948] sm:$0xff]  ;;  %v1889_v19 = vld [vmem:[#allocation8 + $0x1810] sm:$0xff] }
 0x223   :  { %5258 = vmatpush1.bf16.msra.mxu1 %v5257_v38  ;;  %v5275_v38 = vpack.c.bf16 %v1850_v24, %v1842_v23  ;;  %v1897_v21 = vld [vmem:[#allocation8 + $0x1850] sm:$0xff]  ;;  %v1906_v23 = vld [vmem:[#allocation8 + $0x1898] sm:$0xff] }
 0x224   :  { %5260 = vmatprep.subr.bf16.mxu1 %v5259_v40  ;;  %v5025_v40 = vpack.c.bf16 %v1863_v33, %v1855_v29  ;;  %v1914_v24 = vld [vmem:[#allocation8 + $0x18d8] sm:$0xff]  ;;  %v1919_v29 = vld [vmem:[#allocation8 + $0x1900] sm:$0xff] }
 0x225   :  { %5010 = vmatpush1.bf16.msra.mxu0 %v5009_v43  ;;  %v6713_v43 = vld [vmem:[#allocation7] sm:$0xff]  ;;  %v1927_v33 = vld [vmem:[#allocation8 + $0x1940] sm:$0xff] }
 0x226   :  { %5012 = vmatprep.subr.bf16.mxu0 %v5011_v46  ;;  %v522_v44 = vrot.slane %v6713_v43, %v521_v27  ;;  %v1871_v46 = vld [vmem:[#allocation8 + $0x1780] sm:$0xff] }
 0x227   :  { %5262 = vmatpush1.bf16.msra.mxu1 %v5261_v49  ;;  %v1888_v49 = vld [vmem:[#allocation8 + $0x1808] sm:$0xff]  ;;  %v5029_v57 = vpack.c.bf16 %v1879_v47, %v1871_v46  ;;  %v1943_v46 = vld [vmem:[#allocation8 + $0x19c0] sm:$0xff]  ;;  %v5293_v47 = vpack.c.bf16 %v1913_v39, %v1905_v0  ;;  %v1977_v0 = vld [vmem:[#allocation8 + $0x1ad0] sm:$0xff] }
 0x228   :  { %5264 = vmatprep.subr.bf16.mxu1 %v5263_v55  ;;  %v1857_v55 = vld [vmem:[#allocation8 + $0x1710] sm:$0xff]  ;;  %v6253_v60 = vadd.f32 %v6685_v31, %v522_v44  ;;  %v5035_v31 = vpack.c.bf16 %v1912_v7, %v1904_v6  ;;  %v5043_v44 = vpack.c.bf16 %v1944_v37, %v1936_v4  ;;  %v2008_v4 = vld [vmem:[#allocation8 + $0x1bc8] sm:$0xff] }
 0x229   :  { %5014 = vmatpush1.bf16.msra.mxu0 %v5013_v58  ;;  %v1874_v58 = vld [vmem:[#allocation8 + $0x1798] sm:$0xff]  ;;  %v1937_v7 = vld [vmem:[#allocation8 + $0x1990] sm:$0xff] }
 0x22a   :  { %5016 = vmatprep.subr.bf16.mxu0 %v5015_v62  ;;  %v5031_v62 = vpack.c.bf16 %v1896_v50, %v1888_v49  ;;  %v1960_v49 = vld [vmem:[#allocation8 + $0x1a48] sm:$0xff]  ;;  %v5295_v50 = vpack.c.bf16 %v1930_v42, %v1922_v41  ;;  %v1994_v41 = vld [vmem:[#allocation8 + $0x1b58] sm:$0xff] }
 0x22b   :  { %5266 = vmatpush1.bf16.msra.mxu1 %v5265_v5  ;;  %v5281_v5 = vpack.c.bf16 %v1865_v56, %v1857_v55  ;;  %v1929_v55 = vld [vmem:[#allocation8 + $0x1950] sm:$0xff] }
 0x22c   :  { %5268 = vmatprep.subr.bf16.mxu1 %v5267_v8  ;;  %v5283_v8 = vpack.c.bf16 %v1882_v59, %v1874_v58  ;;  %v1946_v58 = vld [vmem:[#allocation8 + $0x19d8] sm:$0xff] }
 0x22d   :  { %5018 = vmatpush1.bf16.msra.mxu0 %v5017_v10  ;;  %v5033_v10 = vpack.c.bf16 %v1895_v3, %v1887_v63  ;;  %v1968_v3 = vld [vmem:[#allocation8 + $0x1a88] sm:$0xff] }
 0x22e   :  { %5020 = vmatprep.subr.bf16.mxu0 %v5019_v13  ;;  %v6719_v13 = vmax.f32 %v6253_v60, 0.0  ;;  %v1951_v60 = vld [vmem:[#allocation8 + $0x1a00] sm:$0xff] }
 0x22f   :  { %5270 = vmatpush1.bf16.msra.mxu1 %v5269_v16  ;;  %v5285_v16 = vpack.c.bf16 %v1881_v61, %v1873_v9  ;;  %v1954_v61 = vld [vmem:[#allocation8 + $0x1a18] sm:$0xff] }
 0x230   :  { %5272 = vmatprep.subr.bf16.mxu1 %v5271_v34  ;;  %v5287_v34 = vpack.c.bf16 %v1898_v11, %v1890_v12  ;;  %v1967_v11 = vld [vmem:[#allocation8 + $0x1a80] sm:$0xff] }
 0x231   :  { %5022 = vmatpush1.bf16.msra.mxu0 %v5021_v22  ;;  %v5037_v22 = vpack.c.bf16 %v1911_v15, %v1903_v14  ;;  %v1984_v15 = vld [vmem:[#allocation8 + $0x1b08] sm:$0xff] }
 0x232   :  { %5024 = vmatprep.subr.bf16.mxu0 %v5023_v28  ;;  %v5039_v28 = vpack.c.bf16 %v1928_v18, %v1920_v17  ;;  %v1953_v18 = vld [vmem:[#allocation8 + $0x1a10] sm:$0xff] }
 0x233   :  { %5274 = vmatpush1.bf16.msra.mxu1 %v5273_v36  ;;  %v5289_v36 = vpack.c.bf16 %v1897_v21, %v1889_v19  ;;  %v1970_v21 = vld [vmem:[#allocation8 + $0x1a98] sm:$0xff] }
 0x234   :  { %5276 = vmatprep.subr.bf16.mxu1 %v5275_v38  ;;  %v5291_v38 = vpack.c.bf16 %v1914_v24, %v1906_v23  ;;  %v1983_v24 = vld [vmem:[#allocation8 + $0x1b00] sm:$0xff] }
 0x235   :  { %5026 = vmatpush1.bf16.msra.mxu0 %v5025_v40  ;;  %v5041_v40 = vpack.c.bf16 %v1927_v33, %v1919_v29  ;;  %v533_v33 = vsub.s32 7, %v6663_v25 }
 0x236   :  { %5028 = vmatprep.subr.bf16.mxu0 %v5027_v45  ;;  %v1935_v45 = vld [vmem:[#allocation8 + $0x1980] sm:$0xff] }
 0x237   :  { %5278 = vmatpush1.bf16.msra.mxu1 %v5277_v48  ;;  %v1952_v48 = vld [vmem:[#allocation8 + $0x1a08] sm:$0xff]  ;;  %v5045_v56 = vpack.c.bf16 %v1943_v46, %v1935_v45  ;;  %v2007_v45 = vld [vmem:[#allocation8 + $0x1bc0] sm:$0xff]  ;;  %v534_v46 = vrot.slane %v6713_v43, %v533_v33 }
 0x238   :  { %5280 = vmatprep.subr.bf16.mxu1 %v5279_v53  ;;  %v1921_v53 = vld [vmem:[#allocation8 + $0x1910] sm:$0xff]  ;;  %v5047_v59 = vpack.c.bf16 %v1960_v49, %v1952_v48  ;;  %v2016_v48 = vld [vmem:[#allocation8 + $0x1c08] sm:$0xff] }
 0x239   :  { %5030 = vmatpush1.bf16.msra.mxu0 %v5029_v57  ;;  %v1938_v57 = vld [vmem:[#allocation8 + $0x1998] sm:$0xff]  ;;  %v5297_v63 = vpack.c.bf16 %v1929_v55, %v1921_v53  ;;  %v2024_v49 = vld [vmem:[#allocation8 + $0x1c48] sm:$0xff]  ;;  %v1985_v53 = vld [vmem:[#allocation8 + $0x1b10] sm:$0xff] }
 0x23a   :  { %5032 = vmatprep.subr.bf16.mxu0 %v5031_v62  ;;  %v1959_v62 = vld [vmem:[#allocation8 + $0x1a40] sm:$0xff]  ;;  %v5299_v6 = vpack.c.bf16 %v1946_v58, %v1938_v57  ;;  %v1993_v55 = vld [vmem:[#allocation8 + $0x1b50] sm:$0xff]  ;;  %v2002_v58 = vld [vmem:[#allocation8 + $0x1b98] sm:$0xff] }
 0x23b   :  { %5282 = vmatpush1.bf16.msra.mxu1 %v5281_v5  ;;  %v1976_v5 = vld [vmem:[#allocation8 + $0x1ac8] sm:$0xff]  ;;  %v5049_v9 = vpack.c.bf16 %v1959_v62, %v1951_v60  ;;  %v5063_v62 = vpack.c.bf16 %v2024_v49, %v2016_v48  ;;  %v2063_v48 = vld [vmem:[#allocation8 + $0x1d80] sm:$0xff] }
 0x23c   :  { %2392 = vmatmul.mubr.f32.vlgmr.msra.gmra.mrb[4].mxu0 %v6719_v13  ;;  %5284 = vmatprep.subr.bf16.mxu1 %v5283_v8  ;;  %v1945_v8 = vld [vmem:[#allocation8 + $0x19d0] sm:$0xff]  ;;  %v5051_v12 = vpack.c.bf16 %v1976_v5, %v1968_v3  ;;  %v2023_v3 = vld [vmem:[#allocation8 + $0x1c40] sm:$0xff] }
 0x23d   :  { %5034 = vmatpush1.bf16.msra.mxu0 %v5033_v10  ;;  %v1962_v10 = vld [vmem:[#allocation8 + $0x1a58] sm:$0xff]  ;;  %v5301_v14 = vpack.c.bf16 %v1945_v8, %v1937_v7  ;;  %v2032_v7 = vld [vmem:[#allocation8 + $0x1c88] sm:$0xff]  ;;  %v2071_v49 = vld [vmem:[#allocation8 + $0x1dc0] sm:$0xff] }
 0x23e   :  { %5036 = vmatprep.subr.bf16.mxu0 %v5035_v31  ;;  %v1975_v31 = vld [vmem:[#allocation8 + $0x1ac0] sm:$0xff]  ;;  %v5303_v17 = vpack.c.bf16 %v1962_v10, %v1954_v61  ;;  %v2040_v8 = vld [vmem:[#allocation8 + $0x1cc8] sm:$0xff]  ;;  %v2001_v61 = vld [vmem:[#allocation8 + $0x1b90] sm:$0xff] }
 0x23f   :  { %5286 = vmatpush1.bf16.msra.mxu1 %v5285_v16  ;;  %v1992_v16 = vld [vmem:[#allocation8 + $0x1b48] sm:$0xff]  ;;  %v5053_v19 = vpack.c.bf16 %v1975_v31, %v1967_v11  ;;  %v2009_v10 = vld [vmem:[#allocation8 + $0x1bd0] sm:$0xff]  ;;  %v2018_v31 = vld [vmem:[#allocation8 + $0x1c18] sm:$0xff] }
 0x240   :  { %5288 = vmatprep.subr.bf16.mxu1 %v5287_v34  ;;  %v1961_v34 = vld [vmem:[#allocation8 + $0x1a50] sm:$0xff]  ;;  %v5055_v23 = vpack.c.bf16 %v1992_v16, %v1984_v15  ;;  %v5067_v15 = vpack.c.bf16 %v2040_v8, %v2032_v7  ;;  %v2031_v16 = vld [vmem:[#allocation8 + $0x1c80] sm:$0xff]  ;;  %v2096_v8 = vld [vmem:[#allocation8 + $0x1e88] sm:$0xff] }
 0x241   :  { %5038 = vmatpush1.bf16.msra.mxu0 %v5037_v22  ;;  %v1978_v22 = vld [vmem:[#allocation8 + $0x1ad8] sm:$0xff]  ;;  %v5305_v29 = vpack.c.bf16 %v1961_v34, %v1953_v18  ;;  %v5317_v18 = vpack.c.bf16 %v2009_v10, %v2001_v61  ;;  %v2048_v34 = vld [vmem:[#allocation8 + $0x1d08] sm:$0xff]  ;;  %v2065_v10 = vld [vmem:[#allocation8 + $0x1d90] sm:$0xff] }
 0x242   :  { %2676 = vmatmul.mubr.f32.vlgmr.msra.gmra.mrb[6].mxu1 %v6719_v13  ;;  %5040 = vmatprep.subr.bf16.mxu0 %v5039_v28  ;;  %v1991_v28 = vld [vmem:[#allocation8 + $0x1b40] sm:$0xff]  ;;  %v5307_v37 = vpack.c.bf16 %v1978_v22, %v1970_v21  ;;  %v2017_v22 = vld [vmem:[#allocation8 + $0x1c10] sm:$0xff] }
 0x243   :  { %5290 = vmatpush1.bf16.msra.mxu1 %v5289_v36  ;;  %v2000_v36 = vld [vmem:[#allocation8 + $0x1b88] sm:$0xff]  ;;  %v5057_v39 = vpack.c.bf16 %v1991_v28, %v1983_v24  ;;  %v2034_v28 = vld [vmem:[#allocation8 + $0x1c98] sm:$0xff] }
 0x244   :  { %5292 = vmatprep.subr.bf16.mxu1 %v5291_v38  ;;  %v1969_v38 = vld [vmem:[#allocation8 + $0x1a90] sm:$0xff]  ;;  %v5059_v42 = vpack.c.bf16 %v2008_v4, %v2000_v36  ;;  %v2047_v4 = vld [vmem:[#allocation8 + $0x1d00] sm:$0xff] }
 0x245   :  { %5042 = vmatpush1.bf16.msra.mxu0 %v5041_v40  ;;  %v1986_v40 = vld [vmem:[#allocation8 + $0x1b18] sm:$0xff] }
 0x246   :  { %5044 = vmatprep.subr.bf16.mxu0 %v5043_v44  ;;  %v1999_v44 = vld [vmem:[#allocation8 + $0x1b80] sm:$0xff] }
 0x247   :  { %5294 = vmatpush1.bf16.msra.mxu1 %v5293_v47  ;;  %v5309_v47 = vpack.c.bf16 %v1977_v0, %v1969_v38  ;;  %v5061_v57 = vpack.c.bf16 %v2007_v45, %v1999_v44  ;;  %v2064_v0 = vld [vmem:[#allocation8 + $0x1d88] sm:$0xff]  ;;  %v2050_v45 = vld [vmem:[#allocation8 + $0x1d18] sm:$0xff] }
 0x248   :  { %5296 = vmatprep.subr.bf16.mxu1 %v5295_v50  ;;  %v5311_v50 = vpack.c.bf16 %v1994_v41, %v1986_v40  ;;  %v2033_v41 = vld [vmem:[#allocation8 + $0x1c90] sm:$0xff] }
 0x249   :  { %5046 = vmatpush1.bf16.msra.mxu0 %v5045_v56 }
 0x24a   :  { %5048 = vmatprep.subr.bf16.mxu0 %v5047_v59  ;;  %v2010_v59 = vld [vmem:[#allocation8 + $0x1bd8] sm:$0xff] }
 0x24b   :  { %5298 = vmatpush1.bf16.msra.mxu1 %v5297_v63  ;;  %v2015_v63 = vld [vmem:[#allocation8 + $0x1c00] sm:$0xff] }
 0x24c   :  { %5300 = vmatprep.subr.bf16.mxu1 %v5299_v6  ;;  %v5313_v6 = vpack.c.bf16 %v1993_v55, %v1985_v53  ;;  %v5065_v11 = vpack.c.bf16 %v2023_v3, %v2015_v63  ;;  %v2080_v53 = vld [vmem:[#allocation8 + $0x1e08] sm:$0xff]  ;;  %v2074_v63 = vld [vmem:[#allocation8 + $0x1dd8] sm:$0xff] }
 0x24d   :  { %5050 = vmatpush1.bf16.msra.mxu0 %v5049_v9  ;;  %v5315_v9 = vpack.c.bf16 %v2010_v59, %v2002_v58  ;;  %v2088_v55 = vld [vmem:[#allocation8 + $0x1e48] sm:$0xff]  ;;  %v2049_v58 = vld [vmem:[#allocation8 + $0x1d10] sm:$0xff] }
 0x24e   :  { %5052 = vmatprep.subr.bf16.mxu0 %v5051_v12  ;;  %v2057_v59 = vld [vmem:[#allocation8 + $0x1d50] sm:$0xff]  ;;  %v5079_v3 = vpack.c.bf16 %v2088_v55, %v2080_v53  ;;  %v2127_v53 = vld [vmem:[#allocation8 + $0x1f80] sm:$0xff] }
 0x24f   :  { %5302 = vmatpush1.bf16.msra.mxu1 %v5301_v14  ;;  %v2026_v14 = vld [vmem:[#allocation8 + $0x1c58] sm:$0xff]  ;;  %v5329_v7 = vpack.c.bf16 %v2057_v59, %v2049_v58  ;;  %v2135_v55 = vld [vmem:[#allocation8 + $0x1fc0] sm:$0xff]  ;;  %v1124_v58 = vld [vmem:[#allocation8 + $0x28] sm:$0xff] }
 0x250   :  { %5304 = vmatprep.subr.bf16.mxu1 %v5303_v17  ;;  %v2039_v17 = vld [vmem:[#allocation8 + $0x1cc0] sm:$0xff]  ;;  %v5319_v21 = vpack.c.bf16 %v2026_v14, %v2018_v31  ;;  %v2082_v14 = vld [vmem:[#allocation8 + $0x1e18] sm:$0xff]  ;;  %v1132_v59 = vld [vmem:[#allocation8 + $0x68] sm:$0xff] }
 0x251   :  { %5054 = vmatpush1.bf16.msra.mxu0 %v5053_v19  ;;  %v2056_v19 = vld [vmem:[#allocation8 + $0x1d48] sm:$0xff]  ;;  %v5069_v24 = vpack.c.bf16 %v2039_v17, %v2031_v16  ;;  %v2095_v17 = vld [vmem:[#allocation8 + $0x1e80] sm:$0xff] }
 0x252   :  { %5056 = vmatprep.subr.bf16.mxu0 %v5055_v23  ;;  %v2025_v23 = vld [vmem:[#allocation8 + $0x1c50] sm:$0xff]  ;;  %v5071_v36 = vpack.c.bf16 %v2056_v19, %v2048_v34  ;;  %v2112_v19 = vld [vmem:[#allocation8 + $0x1f08] sm:$0xff] }
 0x253   :  { %5306 = vmatpush1.bf16.msra.mxu1 %v5305_v29  ;;  %v2042_v29 = vld [vmem:[#allocation8 + $0x1cd8] sm:$0xff]  ;;  %v5321_v38 = vpack.c.bf16 %v2025_v23, %v2017_v22  ;;  %v2081_v23 = vld [vmem:[#allocation8 + $0x1e10] sm:$0xff] }
 0x254   :  { %5308 = vmatprep.subr.bf16.mxu1 %v5307_v37  ;;  %v2055_v37 = vld [vmem:[#allocation8 + $0x1d40] sm:$0xff]  ;;  %v5323_v40 = vpack.c.bf16 %v2042_v29, %v2034_v28  ;;  %v2098_v29 = vld [vmem:[#allocation8 + $0x1e98] sm:$0xff] }
 0x255   :  { %5058 = vmatpush1.bf16.msra.mxu0 %v5057_v39  ;;  %v6727_v56 = vpop.f32.mrb[4].mxu1  ;;  %v2072_v39 = vld [vmem:[#allocation8 + $0x1dc8] sm:$0xff]  ;;  %v5073_v44 = vpack.c.bf16 %v2055_v37, %v2047_v4  ;;  %v529_v4 = vsub.s32 6, %v6663_v25 }
 0x256   :  { %v1108_v60 = vpop.f32.mrb[5].mxu1  ;;  %5060 = vmatprep.subr.bf16.mxu0 %v5059_v42  ;;  %v2041_v42 = vld [vmem:[#allocation8 + $0x1cd0] sm:$0xff] }
 0x257   :  { %v6256_v5 = vadd.f32 %v1108_v60, %v534_v46  ;;  %5310 = vmatpush1.bf16.msra.mxu1 %v5309_v47  ;;  %v2058_v46 = vld [vmem:[#allocation8 + $0x1d58] sm:$0xff]  ;;  %v5075_v47 = vpack.c.bf16 %v2072_v39, %v2064_v0  ;;  %v5077_v60 = vpack.c.bf16 %v2071_v49, %v2063_v48  ;;  %v2119_v0 = vld [vmem:[#allocation8 + $0x1f40] sm:$0xff]  ;;  %v530_v49 = vrot.slane %v6713_v43, %v529_v4 }
 0x258   :  { %5312 = vmatprep.subr.bf16.mxu1 %v5311_v50  ;;  %v5325_v50 = vpack.c.bf16 %v2041_v42, %v2033_v41  ;;  %v2136_v41 = vld [vmem:[#allocation8 + $0x1fc8] sm:$0xff]  ;;  %v2122_v48 = vld [vmem:[#allocation8 + $0x1f58] sm:$0xff]  ;;  %v5351_v43 = vpack.c.bf16 %v1132_v59, %v1124_v58  ;;  %v1179_v58 = vld [vmem:[#allocation8 + $0x1e0] sm:$0xff] }
 0x259   :  { %v6729_v12 = vmax.f32 %v6256_v5, 0.0  ;;  %5062 = vmatpush1.bf16.msra.mxu0 %v5061_v57  ;;  %v5327_v57 = vpack.c.bf16 %v2058_v46, %v2050_v45  ;;  %v2079_v5 = vld [vmem:[#allocation8 + $0x1e00] sm:$0xff]  ;;  %v2105_v45 = vld [vmem:[#allocation8 + $0x1ed0] sm:$0xff] }
 0x25a   :  { %5064 = vmatprep.subr.bf16.mxu0 %v5063_v62  ;;  %v2066_v62 = vld [vmem:[#allocation8 + $0x1d98] sm:$0xff] }
 0x25b   :  { %2462 = vmatprep.mubr.f32.mxu0 %v6729_v12  ;;  %5314 = vmatpush1.bf16.msra.mxu1 %v5313_v6  ;;  %v2087_v6 = vld [vmem:[#allocation8 + $0x1e40] sm:$0xff]  ;;  %v5331_v61 = vpack.c.bf16 %v2074_v63, %v2066_v62  ;;  %v2113_v62 = vld [vmem:[#allocation8 + $0x1f10] sm:$0xff] }
 0x25c   :  { %2746 = vmatprep.mubr.f32.mxu1 %v6729_v12  ;;  %5316 = vmatprep.subr.bf16.mxu1 %v5315_v9  ;;  %v2104_v9 = vld [vmem:[#allocation8 + $0x1ec8] sm:$0xff]  ;;  %v5081_v31 = vpack.c.bf16 %v2087_v6, %v2079_v5  ;;  %v2121_v63 = vld [vmem:[#allocation8 + $0x1f50] sm:$0xff]  ;;  %v2130_v5 = vld [vmem:[#allocation8 + $0x1f98] sm:$0xff] }
 0x25d   :  { %5066 = vmatpush1.bf16.msra.mxu0 %v5065_v11  ;;  %v2073_v11 = vld [vmem:[#allocation8 + $0x1dd0] sm:$0xff]  ;;  %v5083_v16 = vpack.c.bf16 %v2104_v9, %v2096_v8  ;;  %v2138_v6 = vld [vmem:[#allocation8 + $0x1fd8] sm:$0xff]  ;;  %v1123_v8 = vld [vmem:[#allocation8 + $0x20] sm:$0xff] }
 0x25e   :  { %5068 = vmatprep.subr.bf16.mxu0 %v5067_v15  ;;  %v2090_v15 = vld [vmem:[#allocation8 + $0x1e58] sm:$0xff]  ;;  %v5333_v34 = vpack.c.bf16 %v2073_v11, %v2065_v10  ;;  %v1131_v9 = vld [vmem:[#allocation8 + $0x60] sm:$0xff]  ;;  %v1140_v10 = vld [vmem:[#allocation8 + $0xa8] sm:$0xff] }
 0x25f   :  { %5318 = vmatpush1.bf16.msra.mxu1 %v5317_v18  ;;  %v2103_v18 = vld [vmem:[#allocation8 + $0x1ec0] sm:$0xff]  ;;  %v5335_v22 = vpack.c.bf16 %v2090_v15, %v2082_v14  ;;  %v1148_v11 = vld [vmem:[#allocation8 + $0xe8] sm:$0xff]  ;;  %v2129_v14 = vld [vmem:[#allocation8 + $0x1f90] sm:$0xff] }
 0x260   :  { %5320 = vmatprep.subr.bf16.mxu1 %v5319_v21  ;;  %v2120_v21 = vld [vmem:[#allocation8 + $0x1f48] sm:$0xff]  ;;  %v5085_v28 = vpack.c.bf16 %v2103_v18, %v2095_v17  ;;  %v2137_v15 = vld [vmem:[#allocation8 + $0x1fd0] sm:$0xff]  ;;  %v1126_v17 = vld [vmem:[#allocation8 + $0x38] sm:$0xff] }
 0x261   :  { %5070 = vmatpush1.bf16.msra.mxu0 %v5069_v24  ;;  %v2089_v24 = vld [vmem:[#allocation8 + $0x1e50] sm:$0xff]  ;;  %v5087_v37 = vpack.c.bf16 %v2120_v21, %v2112_v19  ;;  %v1134_v18 = vld [vmem:[#allocation8 + $0x78] sm:$0xff]  ;;  %v1139_v19 = vld [vmem:[#allocation8 + $0xa0] sm:$0xff] }
 0x262   :  { %5072 = vmatprep.subr.bf16.mxu0 %v5071_v36  ;;  %v2106_v36 = vld [vmem:[#allocation8 + $0x1ed8] sm:$0xff]  ;;  %v5337_v39 = vpack.c.bf16 %v2089_v24, %v2081_v23  ;;  %v1147_v21 = vld [vmem:[#allocation8 + $0xe0] sm:$0xff]  ;;  %v1156_v23 = vld [vmem:[#allocation8 + $0x128] sm:$0xff] }
 0x263   :  { %5322 = vmatpush1.bf16.msra.mxu1 %v5321_v38  ;;  %v2111_v38 = vld [vmem:[#allocation8 + $0x1f00] sm:$0xff]  ;;  %v5339_v42 = vpack.c.bf16 %v2106_v36, %v2098_v29  ;;  %v1164_v24 = vld [vmem:[#allocation8 + $0x168] sm:$0xff]  ;;  %v1125_v29 = vld [vmem:[#allocation8 + $0x30] sm:$0xff] }
 0x264   :  { %5324 = vmatprep.subr.bf16.mxu1 %v5323_v40  ;;  %v2128_v40 = vld [vmem:[#allocation8 + $0x1f88] sm:$0xff]  ;;  %v5089_v46 = vpack.c.bf16 %v2119_v0, %v2111_v38  ;;  %v1133_v36 = vld [vmem:[#allocation8 + $0x70] sm:$0xff]  ;;  %v1142_v38 = vld [vmem:[#allocation8 + $0xb8] sm:$0xff] }
 0x265   :  { %5074 = vmatpush1.bf16.msra.mxu0 %v5073_v44  ;;  %v2097_v44 = vld [vmem:[#allocation8 + $0x1e90] sm:$0xff]  ;;  %v1150_v0 = vld [vmem:[#allocation8 + $0xf8] sm:$0xff] }
 0x266   :  { %5076 = vmatprep.subr.bf16.mxu0 %v5075_v47  ;;  %v2114_v47 = vld [vmem:[#allocation8 + $0x1f18] sm:$0xff] }
 0x267   :  { %5326 = vmatpush1.bf16.msra.mxu1 %v5325_v50  ;;  %v5091_v50 = vpack.c.bf16 %v2136_v41, %v2128_v40  ;;  %v1155_v40 = vld [vmem:[#allocation8 + $0x120] sm:$0xff] }
 0x268   :  { %5328 = vmatprep.subr.bf16.mxu1 %v5327_v57  ;;  %v5341_v57 = vpack.c.bf16 %v2105_v45, %v2097_v44  ;;  %v1163_v41 = vld [vmem:[#allocation8 + $0x160] sm:$0xff]  ;;  %v1172_v44 = vld [vmem:[#allocation8 + $0x1a8] sm:$0xff] }
 0x269   :  { %5078 = vmatpush1.bf16.msra.mxu0 %v5077_v60  ;;  %v5343_v60 = vpack.c.bf16 %v2122_v48, %v2114_v47  ;;  %v1180_v45 = vld [vmem:[#allocation8 + $0x1e8] sm:$0xff]  ;;  %v1141_v47 = vld [vmem:[#allocation8 + $0xb0] sm:$0xff] }
 0x26a   :  { %5080 = vmatprep.subr.bf16.mxu0 %v5079_v3  ;;  %v5093_v3 = vpack.c.bf16 %v2135_v55, %v2127_v53  ;;  %v1149_v48 = vld [vmem:[#allocation8 + $0xf0] sm:$0xff]  ;;  %v1166_v53 = vld [vmem:[#allocation8 + $0x178] sm:$0xff]  ;;  %v5363_v55 = vpack.c.bf16 %v1180_v45, %v1172_v44  ;;  %v1236_v44 = vld [vmem:[#allocation8 + $0x3a8] sm:$0xff] }
 0x26b   :  { %5330 = vmatpush1.bf16.msra.mxu1 %v5329_v7  ;;  %v6255_v7 = vadd.f32 %v6727_v56, %v530_v49  ;;  %v5355_v56 = vpack.c.bf16 %v1148_v11, %v1140_v10  ;;  %v5361_v49 = vpack.c.bf16 %v1163_v41, %v1155_v40  ;;  %v5613_v59 = vpack.c.bf16 %v1149_v48, %v1141_v47  ;;  %v1204_v11 = vld [vmem:[#allocation8 + $0x2a8] sm:$0xff]  ;;  %v1219_v40 = vld [vmem:[#allocation8 + $0x320] sm:$0xff]  ;;  %v1205_v47 = vld [vmem:[#allocation8 + $0x2b0] sm:$0xff] }
 0x26c   :  { %5332 = vmatprep.subr.bf16.mxu1 %v5331_v61  ;;  %v5345_v61 = vpack.c.bf16 %v2121_v63, %v2113_v62  ;;  %v1196_v62 = vld [vmem:[#allocation8 + $0x268] sm:$0xff]  ;;  %v1227_v41 = vld [vmem:[#allocation8 + $0x360] sm:$0xff]  ;;  %v1213_v48 = vld [vmem:[#allocation8 + $0x2f0] sm:$0xff] }
 0x26d   :  { %5082 = vmatpush1.bf16.msra.mxu0 %v5081_v31  ;;  %v5347_v31 = vpack.c.bf16 %v2138_v6, %v2130_v5  ;;  %v1165_v5 = vld [vmem:[#allocation8 + $0x170] sm:$0xff]  ;;  %v1244_v45 = vld [vmem:[#allocation8 + $0x3e8] sm:$0xff] }
 0x26e   :  { %5084 = vmatprep.subr.bf16.mxu0 %v5083_v16  ;;  %v5353_v16 = vpack.c.bf16 %v1131_v9, %v1123_v8  ;;  %v1187_v9 = vld [vmem:[#allocation8 + $0x220] sm:$0xff] }
 0x26f   :  { %5334 = vmatpush1.bf16.msra.mxu1 %v5333_v34  ;;  %v6738_v34 = vmax.f32 %v6255_v7, 0.0  ;;  %v1174_v7 = vld [vmem:[#allocation8 + $0x1b8] sm:$0xff] }
 0x270   :  { %5336 = vmatprep.subr.bf16.mxu1 %v5335_v22  ;;  %v5349_v22 = vpack.c.bf16 %v2137_v15, %v2129_v14  ;;  %v1173_v14 = vld [vmem:[#allocation8 + $0x1b0] sm:$0xff] }
 0x271   :  { %5086 = vmatpush1.bf16.msra.mxu0 %v5085_v28  ;;  %v5607_v28 = vpack.c.bf16 %v1134_v18, %v1126_v17  ;;  %v1181_v15 = vld [vmem:[#allocation8 + $0x1f0] sm:$0xff]  ;;  %v1190_v17 = vld [vmem:[#allocation8 + $0x238] sm:$0xff] }
 0x272   :  { %5088 = vmatprep.subr.bf16.mxu0 %v5087_v37  ;;  %v5357_v37 = vpack.c.bf16 %v1147_v21, %v1139_v19  ;;  %v1198_v18 = vld [vmem:[#allocation8 + $0x278] sm:$0xff]  ;;  %v1203_v19 = vld [vmem:[#allocation8 + $0x2a0] sm:$0xff] }
 0x273   :  { %5338 = vmatpush1.bf16.msra.mxu1 %v5337_v39  ;;  %v5359_v39 = vpack.c.bf16 %v1164_v24, %v1156_v23  ;;  %v1211_v21 = vld [vmem:[#allocation8 + $0x2e0] sm:$0xff]  ;;  %v1220_v23 = vld [vmem:[#allocation8 + $0x328] sm:$0xff] }
 0x274   :  { %5340 = vmatprep.subr.bf16.mxu1 %v5339_v42  ;;  %v5609_v42 = vpack.c.bf16 %v1133_v36, %v1125_v29  ;;  %v1228_v24 = vld [vmem:[#allocation8 + $0x368] sm:$0xff]  ;;  %v1189_v29 = vld [vmem:[#allocation8 + $0x230] sm:$0xff] }
 0x275   :  { %5090 = vmatpush1.bf16.msra.mxu0 %v5089_v46  ;;  %v5611_v46 = vpack.c.bf16 %v1150_v0, %v1142_v38  ;;  %v1197_v36 = vld [vmem:[#allocation8 + $0x270] sm:$0xff]  ;;  %v1206_v38 = vld [vmem:[#allocation8 + $0x2b8] sm:$0xff] }
 0x276   :  { %5092 = vmatprep.subr.bf16.mxu0 %v5091_v50  ;;  %v1158_v50 = vld [vmem:[#allocation8 + $0x138] sm:$0xff] }
 0x277   :  { %5342 = vmatpush1.bf16.msra.mxu1 %v5341_v57  ;;  %v1171_v57 = vld [vmem:[#allocation8 + $0x1a0] sm:$0xff]  ;;  %v5615_v63 = vpack.c.bf16 %v1166_v53, %v1158_v50  ;;  %v1214_v0 = vld [vmem:[#allocation8 + $0x2f8] sm:$0xff] }
 0x278   :  { %5344 = vmatprep.subr.bf16.mxu1 %v5343_v60  ;;  %v1188_v60 = vld [vmem:[#allocation8 + $0x228] sm:$0xff]  ;;  %v5365_v6 = vpack.c.bf16 %v1179_v58, %v1171_v57  ;;  %v1222_v50 = vld [vmem:[#allocation8 + $0x338] sm:$0xff]  ;;  %v1235_v57 = vld [vmem:[#allocation8 + $0x3a0] sm:$0xff] }
 0x279   :  { %5094 = vmatpush1.bf16.msra.mxu0 %v5093_v3  ;;  %v1157_v3 = vld [vmem:[#allocation8 + $0x130] sm:$0xff]  ;;  %v5367_v8 = vpack.c.bf16 %v1196_v62, %v1188_v60  ;;  %v1230_v53 = vld [vmem:[#allocation8 + $0x378] sm:$0xff]  ;;  %v1243_v58 = vld [vmem:[#allocation8 + $0x3e0] sm:$0xff] }
 0x27a   :  { %5352 = vmatprep.subr.bf16.mxu0 %v5351_v43  ;;  %v1182_v43 = vld [vmem:[#allocation8 + $0x1f8] sm:$0xff]  ;;  %v5617_v10 = vpack.c.bf16 %v1165_v5, %v1157_v3  ;;  %v1252_v60 = vld [vmem:[#allocation8 + $0x428] sm:$0xff]  ;;  %v1221_v3 = vld [vmem:[#allocation8 + $0x330] sm:$0xff] }
 0x27b   :  { %5346 = vmatpush1.bf16.msra.mxu1 %v5345_v61  ;;  %v1195_v61 = vld [vmem:[#allocation8 + $0x260] sm:$0xff]  ;;  %v1260_v62 = vld [vmem:[#allocation8 + $0x468] sm:$0xff]  ;;  %v1229_v5 = vld [vmem:[#allocation8 + $0x370] sm:$0xff] }
 0x27c   :  { %2463 = vmatmul.mubr.f32.vlgmr.msra.gmra.mrb[4].mxu0 %v6738_v34  ;;  %5348 = vmatprep.subr.bf16.mxu1 %v5347_v31  ;;  %v1212_v31 = vld [vmem:[#allocation8 + $0x2e8] sm:$0xff] }
 0x27d   :  { %5354 = vmatpush1.bf16.msra.mxu0 %v5353_v16  ;;  %2817 = vmatprep.mubr.f32.mxu0 %v6679_v2  ;;  %v5369_v16 = vpack.c.bf16 %v1195_v61, %v1187_v9  ;;  %v1251_v9 = vld [vmem:[#allocation8 + $0x420] sm:$0xff] }
 0x27e   :  { %5356 = vmatprep.subr.bf16.mxu0 %v5355_v56  ;;  %v5371_v56 = vpack.c.bf16 %v1212_v31, %v1204_v11  ;;  %v1259_v61 = vld [vmem:[#allocation8 + $0x460] sm:$0xff]  ;;  %v1268_v11 = vld [vmem:[#allocation8 + $0x4a8] sm:$0xff] }
 0x27f   :  { %5350 = vmatpush1.bf16.msra.mxu1 %v5349_v22  ;;  %v5621_v22 = vpack.c.bf16 %v1181_v15, %v1173_v14  ;;  %v1276_v31 = vld [vmem:[#allocation8 + $0x4e8] sm:$0xff]  ;;  %v1237_v14 = vld [vmem:[#allocation8 + $0x3b0] sm:$0xff] }
 0x280   :  { %5608 = vmatprep.subr.bf16.mxu1 %v5607_v28  ;;  %v5623_v28 = vpack.c.bf16 %v1198_v18, %v1190_v17  ;;  %v1245_v15 = vld [vmem:[#allocation8 + $0x3f0] sm:$0xff]  ;;  %v1254_v17 = vld [vmem:[#allocation8 + $0x438] sm:$0xff] }
 0x281   :  { %5358 = vmatpush1.bf16.msra.mxu0 %v5357_v37  ;;  %v5373_v37 = vpack.c.bf16 %v1211_v21, %v1203_v19  ;;  %v1262_v18 = vld [vmem:[#allocation8 + $0x478] sm:$0xff]  ;;  %v1267_v19 = vld [vmem:[#allocation8 + $0x4a0] sm:$0xff] }
 0x282   :  { %2747 = vmatmul.mubr.f32.vlgmr.msra.gmra.mrb[6].mxu1 %v6738_v34  ;;  %5360 = vmatprep.subr.bf16.mxu0 %v5359_v39  ;;  %v5375_v39 = vpack.c.bf16 %v1228_v24, %v1220_v23  ;;  %v1275_v21 = vld [vmem:[#allocation8 + $0x4e0] sm:$0xff]  ;;  %v1284_v23 = vld [vmem:[#allocation8 + $0x528] sm:$0xff] }
 0x283   :  { %5610 = vmatpush1.bf16.msra.mxu1 %v5609_v42  ;;  %3101 = vmatprep.mubr.f32.mxu1 %v6679_v2  ;;  %v5619_v2 = vpack.c.bf16 %v1182_v43, %v1174_v7  ;;  %v5625_v42 = vpack.c.bf16 %v1197_v36, %v1189_v29  ;;  %v1238_v7 = vld [vmem:[#allocation8 + $0x3b8] sm:$0xff]  ;;  %v1292_v24 = vld [vmem:[#allocation8 + $0x568] sm:$0xff]  ;;  %v1253_v29 = vld [vmem:[#allocation8 + $0x430] sm:$0xff] }
 0x284   :  { %5612 = vmatprep.subr.bf16.mxu1 %v5611_v46  ;;  %v5627_v46 = vpack.c.bf16 %v1214_v0, %v1206_v38  ;;  %v1246_v43 = vld [vmem:[#allocation8 + $0x3f8] sm:$0xff]  ;;  %v1261_v36 = vld [vmem:[#allocation8 + $0x470] sm:$0xff] }
 0x285   :  { %5362 = vmatpush1.bf16.msra.mxu0 %v5361_v49  ;;  %v5377_v49 = vpack.c.bf16 %v1227_v41, %v1219_v40  ;;  %v1270_v38 = vld [vmem:[#allocation8 + $0x4b8] sm:$0xff]  ;;  %v1283_v40 = vld [vmem:[#allocation8 + $0x520] sm:$0xff] }
 0x286   :  { %5364 = vmatprep.subr.bf16.mxu0 %v5363_v55  ;;  %v5379_v55 = vpack.c.bf16 %v1244_v45, %v1236_v44  ;;  %v1278_v0 = vld [vmem:[#allocation8 + $0x4f8] sm:$0xff]  ;;  %v1291_v41 = vld [vmem:[#allocation8 + $0x560] sm:$0xff]  ;;  %v1300_v44 = vld [vmem:[#allocation8 + $0x5a8] sm:$0xff] }
 0x287   :  { %5614 = vmatpush1.bf16.msra.mxu1 %v5613_v59  ;;  %v5629_v59 = vpack.c.bf16 %v1213_v48, %v1205_v47  ;;  %v1308_v45 = vld [vmem:[#allocation8 + $0x5e8] sm:$0xff]  ;;  %v1269_v47 = vld [vmem:[#allocation8 + $0x4b0] sm:$0xff] }
 0x288   :  { %5616 = vmatprep.subr.bf16.mxu1 %v5615_v63  ;;  %v5631_v63 = vpack.c.bf16 %v1230_v53, %v1222_v50  ;;  %v1277_v48 = vld [vmem:[#allocation8 + $0x4f0] sm:$0xff]  ;;  %v1286_v50 = vld [vmem:[#allocation8 + $0x538] sm:$0xff] }
 0x289   :  { %5366 = vmatpush1.bf16.msra.mxu0 %v5365_v6  ;;  %v5381_v6 = vpack.c.bf16 %v1243_v58, %v1235_v57  ;;  %v1294_v53 = vld [vmem:[#allocation8 + $0x578] sm:$0xff]  ;;  %v1299_v57 = vld [vmem:[#allocation8 + $0x5a0] sm:$0xff] }
 0x28a   :  { %5368 = vmatprep.subr.bf16.mxu0 %v5367_v8  ;;  %v5383_v8 = vpack.c.bf16 %v1260_v62, %v1252_v60  ;;  %v1307_v58 = vld [vmem:[#allocation8 + $0x5e0] sm:$0xff]  ;;  %v1316_v60 = vld [vmem:[#allocation8 + $0x628] sm:$0xff] }
 0x28b   :  { %5618 = vmatpush1.bf16.msra.mxu1 %v5617_v10  ;;  %v5633_v10 = vpack.c.bf16 %v1229_v5, %v1221_v3  ;;  %v1324_v62 = vld [vmem:[#allocation8 + $0x668] sm:$0xff]  ;;  %v1285_v3 = vld [vmem:[#allocation8 + $0x530] sm:$0xff] }
 0x28c   :  { %5620 = vmatprep.subr.bf16.mxu1 %v5619_v2  ;;  %v5635_v2 = vpack.c.bf16 %v1246_v43, %v1238_v7  ;;  %v1293_v5 = vld [vmem:[#allocation8 + $0x570] sm:$0xff]  ;;  %v1302_v7 = vld [vmem:[#allocation8 + $0x5b8] sm:$0xff] }
 0x28d   :  { %5370 = vmatpush1.bf16.msra.mxu0 %v5369_v16  ;;  %v5385_v16 = vpack.c.bf16 %v1259_v61, %v1251_v9  ;;  %v1310_v43 = vld [vmem:[#allocation8 + $0x5f8] sm:$0xff]  ;;  %v1315_v9 = vld [vmem:[#allocation8 + $0x620] sm:$0xff] }
 0x28e   :  { %5372 = vmatprep.subr.bf16.mxu0 %v5371_v56  ;;  %v5387_v56 = vpack.c.bf16 %v1276_v31, %v1268_v11  ;;  %v1323_v61 = vld [vmem:[#allocation8 + $0x660] sm:$0xff]  ;;  %v1332_v11 = vld [vmem:[#allocation8 + $0x6a8] sm:$0xff] }
 0x28f   :  { %5622 = vmatpush1.bf16.msra.mxu1 %v5621_v22  ;;  %v5637_v22 = vpack.c.bf16 %v1245_v15, %v1237_v14  ;;  %v1340_v31 = vld [vmem:[#allocation8 + $0x6e8] sm:$0xff]  ;;  %v1301_v14 = vld [vmem:[#allocation8 + $0x5b0] sm:$0xff] }
 0x290   :  { %5624 = vmatprep.subr.bf16.mxu1 %v5623_v28  ;;  %v5639_v28 = vpack.c.bf16 %v1262_v18, %v1254_v17  ;;  %v1309_v15 = vld [vmem:[#allocation8 + $0x5f0] sm:$0xff]  ;;  %v1318_v17 = vld [vmem:[#allocation8 + $0x638] sm:$0xff] }
 0x291   :  { %5374 = vmatpush1.bf16.msra.mxu0 %v5373_v37  ;;  %v5389_v37 = vpack.c.bf16 %v1275_v21, %v1267_v19  ;;  %v1326_v18 = vld [vmem:[#allocation8 + $0x678] sm:$0xff]  ;;  %v1331_v19 = vld [vmem:[#allocation8 + $0x6a0] sm:$0xff] }
 0x292   :  { %5376 = vmatprep.subr.bf16.mxu0 %v5375_v39  ;;  %v5391_v39 = vpack.c.bf16 %v1292_v24, %v1284_v23  ;;  %v1339_v21 = vld [vmem:[#allocation8 + $0x6e0] sm:$0xff]  ;;  %v1348_v23 = vld [vmem:[#allocation8 + $0x728] sm:$0xff] }
 0x293   :  { %5626 = vmatpush1.bf16.msra.mxu1 %v5625_v42  ;;  %v5641_v42 = vpack.c.bf16 %v1261_v36, %v1253_v29  ;;  %v1356_v24 = vld [vmem:[#allocation8 + $0x768] sm:$0xff]  ;;  %v1317_v29 = vld [vmem:[#allocation8 + $0x630] sm:$0xff] }
 0x294   :  { %5628 = vmatprep.subr.bf16.mxu1 %v5627_v46  ;;  %v5643_v46 = vpack.c.bf16 %v1278_v0, %v1270_v38  ;;  %v1325_v36 = vld [vmem:[#allocation8 + $0x670] sm:$0xff]  ;;  %v1334_v38 = vld [vmem:[#allocation8 + $0x6b8] sm:$0xff] }
 0x295   :  { %5378 = vmatpush1.bf16.msra.mxu0 %v5377_v49  ;;  %v5393_v49 = vpack.c.bf16 %v1291_v41, %v1283_v40  ;;  %v1342_v0 = vld [vmem:[#allocation8 + $0x6f8] sm:$0xff]  ;;  %v1347_v40 = vld [vmem:[#allocation8 + $0x720] sm:$0xff] }
 0x296   :  { %5380 = vmatprep.subr.bf16.mxu0 %v5379_v55  ;;  %v5395_v55 = vpack.c.bf16 %v1308_v45, %v1300_v44  ;;  %v1355_v41 = vld [vmem:[#allocation8 + $0x760] sm:$0xff]  ;;  %v1364_v44 = vld [vmem:[#allocation8 + $0x7a8] sm:$0xff] }
 0x297   :  { %5630 = vmatpush1.bf16.msra.mxu1 %v5629_v59  ;;  %v5645_v59 = vpack.c.bf16 %v1277_v48, %v1269_v47  ;;  %v1372_v45 = vld [vmem:[#allocation8 + $0x7e8] sm:$0xff]  ;;  %v1333_v47 = vld [vmem:[#allocation8 + $0x6b0] sm:$0xff] }
 0x298   :  { %5632 = vmatprep.subr.bf16.mxu1 %v5631_v63  ;;  %v5647_v63 = vpack.c.bf16 %v1294_v53, %v1286_v50  ;;  %v1341_v48 = vld [vmem:[#allocation8 + $0x6f0] sm:$0xff]  ;;  %v1350_v50 = vld [vmem:[#allocation8 + $0x738] sm:$0xff] }
 0x299   :  { %5382 = vmatpush1.bf16.msra.mxu0 %v5381_v6  ;;  %v5397_v6 = vpack.c.bf16 %v1307_v58, %v1299_v57  ;;  %v1358_v53 = vld [vmem:[#allocation8 + $0x778] sm:$0xff]  ;;  %v1363_v57 = vld [vmem:[#allocation8 + $0x7a0] sm:$0xff] }
 0x29a   :  { %5384 = vmatprep.subr.bf16.mxu0 %v5383_v8  ;;  %v5399_v8 = vpack.c.bf16 %v1324_v62, %v1316_v60  ;;  %v1371_v58 = vld [vmem:[#allocation8 + $0x7e0] sm:$0xff]  ;;  %v1380_v60 = vld [vmem:[#allocation8 + $0x828] sm:$0xff] }
 0x29b   :  { %5634 = vmatpush1.bf16.msra.mxu1 %v5633_v10  ;;  %v5649_v10 = vpack.c.bf16 %v1293_v5, %v1285_v3  ;;  %v1388_v62 = vld [vmem:[#allocation8 + $0x868] sm:$0xff]  ;;  %v1349_v3 = vld [vmem:[#allocation8 + $0x730] sm:$0xff] }
 0x29c   :  { %5636 = vmatprep.subr.bf16.mxu1 %v5635_v2  ;;  %v5651_v2 = vpack.c.bf16 %v1310_v43, %v1302_v7  ;;  %v1357_v5 = vld [vmem:[#allocation8 + $0x770] sm:$0xff]  ;;  %v1366_v7 = vld [vmem:[#allocation8 + $0x7b8] sm:$0xff] }
 0x29d   :  { %5386 = vmatpush1.bf16.msra.mxu0 %v5385_v16  ;;  %v5401_v16 = vpack.c.bf16 %v1323_v61, %v1315_v9  ;;  %v1374_v43 = vld [vmem:[#allocation8 + $0x7f8] sm:$0xff]  ;;  %v1379_v9 = vld [vmem:[#allocation8 + $0x820] sm:$0xff] }
 0x29e   :  { %5388 = vmatprep.subr.bf16.mxu0 %v5387_v56  ;;  %v5403_v56 = vpack.c.bf16 %v1340_v31, %v1332_v11  ;;  %v1387_v61 = vld [vmem:[#allocation8 + $0x860] sm:$0xff]  ;;  %v1396_v11 = vld [vmem:[#allocation8 + $0x8a8] sm:$0xff] }
 0x29f   :  { %5638 = vmatpush1.bf16.msra.mxu1 %v5637_v22  ;;  %v5653_v22 = vpack.c.bf16 %v1309_v15, %v1301_v14  ;;  %v1404_v31 = vld [vmem:[#allocation8 + $0x8e8] sm:$0xff]  ;;  %v1365_v14 = vld [vmem:[#allocation8 + $0x7b0] sm:$0xff] }
 0x2a0   :  { %5640 = vmatprep.subr.bf16.mxu1 %v5639_v28  ;;  %v5655_v28 = vpack.c.bf16 %v1326_v18, %v1318_v17  ;;  %v1373_v15 = vld [vmem:[#allocation8 + $0x7f0] sm:$0xff]  ;;  %v1382_v17 = vld [vmem:[#allocation8 + $0x838] sm:$0xff] }
 0x2a1   :  { %5390 = vmatpush1.bf16.msra.mxu0 %v5389_v37  ;;  %v5405_v37 = vpack.c.bf16 %v1339_v21, %v1331_v19  ;;  %v1390_v18 = vld [vmem:[#allocation8 + $0x878] sm:$0xff]  ;;  %v1395_v19 = vld [vmem:[#allocation8 + $0x8a0] sm:$0xff] }
 0x2a2   :  { %5392 = vmatprep.subr.bf16.mxu0 %v5391_v39  ;;  %v5407_v39 = vpack.c.bf16 %v1356_v24, %v1348_v23  ;;  %v1403_v21 = vld [vmem:[#allocation8 + $0x8e0] sm:$0xff]  ;;  %v1412_v23 = vld [vmem:[#allocation8 + $0x928] sm:$0xff] }
 0x2a3   :  { %5642 = vmatpush1.bf16.msra.mxu1 %v5641_v42  ;;  %v5657_v42 = vpack.c.bf16 %v1325_v36, %v1317_v29  ;;  %v1420_v24 = vld [vmem:[#allocation8 + $0x968] sm:$0xff]  ;;  %v1381_v29 = vld [vmem:[#allocation8 + $0x830] sm:$0xff] }
 0x2a4   :  { %5644 = vmatprep.subr.bf16.mxu1 %v5643_v46  ;;  %v5659_v46 = vpack.c.bf16 %v1342_v0, %v1334_v38  ;;  %v1389_v36 = vld [vmem:[#allocation8 + $0x870] sm:$0xff]  ;;  %v1398_v38 = vld [vmem:[#allocation8 + $0x8b8] sm:$0xff] }
 0x2a5   :  { %5394 = vmatpush1.bf16.msra.mxu0 %v5393_v49  ;;  %v5409_v49 = vpack.c.bf16 %v1355_v41, %v1347_v40  ;;  %v1406_v0 = vld [vmem:[#allocation8 + $0x8f8] sm:$0xff]  ;;  %v1411_v40 = vld [vmem:[#allocation8 + $0x920] sm:$0xff] }
 0x2a6   :  { %5396 = vmatprep.subr.bf16.mxu0 %v5395_v55  ;;  %v5411_v55 = vpack.c.bf16 %v1372_v45, %v1364_v44  ;;  %v1419_v41 = vld [vmem:[#allocation8 + $0x960] sm:$0xff]  ;;  %v1428_v44 = vld [vmem:[#allocation8 + $0x9a8] sm:$0xff] }
 0x2a7   :  { %5646 = vmatpush1.bf16.msra.mxu1 %v5645_v59  ;;  %v5661_v59 = vpack.c.bf16 %v1341_v48, %v1333_v47  ;;  %v1436_v45 = vld [vmem:[#allocation8 + $0x9e8] sm:$0xff]  ;;  %v1397_v47 = vld [vmem:[#allocation8 + $0x8b0] sm:$0xff] }
 0x2a8   :  { %5648 = vmatprep.subr.bf16.mxu1 %v5647_v63  ;;  %v5663_v63 = vpack.c.bf16 %v1358_v53, %v1350_v50  ;;  %v1405_v48 = vld [vmem:[#allocation8 + $0x8f0] sm:$0xff]  ;;  %v1414_v50 = vld [vmem:[#allocation8 + $0x938] sm:$0xff] }
 0x2a9   :  { %5398 = vmatpush1.bf16.msra.mxu0 %v5397_v6  ;;  %v5413_v6 = vpack.c.bf16 %v1371_v58, %v1363_v57  ;;  %v1422_v53 = vld [vmem:[#allocation8 + $0x978] sm:$0xff]  ;;  %v1427_v57 = vld [vmem:[#allocation8 + $0x9a0] sm:$0xff] }
 0x2aa   :  { %5400 = vmatprep.subr.bf16.mxu0 %v5399_v8  ;;  %v5415_v8 = vpack.c.bf16 %v1388_v62, %v1380_v60  ;;  %v1435_v58 = vld [vmem:[#allocation8 + $0x9e0] sm:$0xff]  ;;  %v1444_v60 = vld [vmem:[#allocation8 + $0xa28] sm:$0xff] }
 0x2ab   :  { %5650 = vmatpush1.bf16.msra.mxu1 %v5649_v10  ;;  %v5665_v10 = vpack.c.bf16 %v1357_v5, %v1349_v3  ;;  %v1452_v62 = vld [vmem:[#allocation8 + $0xa68] sm:$0xff]  ;;  %v1413_v3 = vld [vmem:[#allocation8 + $0x930] sm:$0xff] }
 0x2ac   :  { %5652 = vmatprep.subr.bf16.mxu1 %v5651_v2  ;;  %v5667_v2 = vpack.c.bf16 %v1374_v43, %v1366_v7  ;;  %v1421_v5 = vld [vmem:[#allocation8 + $0x970] sm:$0xff]  ;;  %v1430_v7 = vld [vmem:[#allocation8 + $0x9b8] sm:$0xff] }
 0x2ad   :  { %5402 = vmatpush1.bf16.msra.mxu0 %v5401_v16  ;;  %v5417_v16 = vpack.c.bf16 %v1387_v61, %v1379_v9  ;;  %v1438_v43 = vld [vmem:[#allocation8 + $0x9f8] sm:$0xff]  ;;  %v1451_v9 = vld [vmem:[#allocation8 + $0xa60] sm:$0xff]  ;;  %v5681_v61 = vpack.c.bf16 %v1421_v5, %v1413_v3 }
 0x2ae   :  { %5404 = vmatprep.subr.bf16.mxu0 %v5403_v56  ;;  %v5419_v56 = vpack.c.bf16 %v1404_v31, %v1396_v11  ;;  %v1468_v11 = vld [vmem:[#allocation8 + $0xae8] sm:$0xff]  ;;  %v1429_v31 = vld [vmem:[#allocation8 + $0x9b0] sm:$0xff]  ;;  %v1494_v5 = vld [vmem:[#allocation8 + $0xbb8] sm:$0xff] }
 0x2af   :  { %5654 = vmatpush1.bf16.msra.mxu1 %v5653_v22  ;;  %v5669_v22 = vpack.c.bf16 %v1373_v15, %v1365_v14  ;;  %v1446_v15 = vld [vmem:[#allocation8 + $0xa38] sm:$0xff] }
 0x2b0   :  { %5656 = vmatprep.subr.bf16.mxu1 %v5655_v28  ;;  %v5671_v28 = vpack.c.bf16 %v1390_v18, %v1382_v17  ;;  %v1459_v18 = vld [vmem:[#allocation8 + $0xaa0] sm:$0xff] }
 0x2b1   :  { %5406 = vmatpush1.bf16.msra.mxu0 %v5405_v37  ;;  %v5421_v37 = vpack.c.bf16 %v1403_v21, %v1395_v19  ;;  %v1476_v21 = vld [vmem:[#allocation8 + $0xb28] sm:$0xff] }
 0x2b2   :  { %5408 = vmatprep.subr.bf16.mxu0 %v5407_v39  ;;  %v5423_v39 = vpack.c.bf16 %v1420_v24, %v1412_v23  ;;  %v1445_v24 = vld [vmem:[#allocation8 + $0xa30] sm:$0xff] }
 0x2b3   :  { %5658 = vmatpush1.bf16.msra.mxu1 %v5657_v42  ;;  %v5673_v42 = vpack.c.bf16 %v1389_v36, %v1381_v29  ;;  %v1462_v36 = vld [vmem:[#allocation8 + $0xab8] sm:$0xff] }
 0x2b4   :  { %5660 = vmatprep.subr.bf16.mxu1 %v5659_v46  ;;  %v5675_v46 = vpack.c.bf16 %v1406_v0, %v1398_v38  ;;  %v1475_v0 = vld [vmem:[#allocation8 + $0xb20] sm:$0xff] }
 0x2b5   :  { %5410 = vmatpush1.bf16.msra.mxu0 %v5409_v49  ;;  %v5425_v49 = vpack.c.bf16 %v1419_v41, %v1411_v40  ;;  %v1492_v41 = vld [vmem:[#allocation8 + $0xba8] sm:$0xff] }
 0x2b6   :  { %5412 = vmatprep.subr.bf16.mxu0 %v5411_v55  ;;  %v5427_v55 = vpack.c.bf16 %v1436_v45, %v1428_v44  ;;  %v1461_v45 = vld [vmem:[#allocation8 + $0xab0] sm:$0xff] }
 0x2b7   :  { %5662 = vmatpush1.bf16.msra.mxu1 %v5661_v59  ;;  %v5677_v59 = vpack.c.bf16 %v1405_v48, %v1397_v47  ;;  %v1478_v48 = vld [vmem:[#allocation8 + $0xb38] sm:$0xff] }
 0x2b8   :  { %5664 = vmatprep.subr.bf16.mxu1 %v5663_v63  ;;  %v5679_v63 = vpack.c.bf16 %v1422_v53, %v1414_v50  ;;  %v1491_v53 = vld [vmem:[#allocation8 + $0xba0] sm:$0xff] }
 0x2b9   :  { %5414 = vmatpush1.bf16.msra.mxu0 %v5413_v6  ;;  %v5429_v6 = vpack.c.bf16 %v1435_v58, %v1427_v57  ;;  %v1508_v58 = vld [vmem:[#allocation8 + $0xc28] sm:$0xff] }
 0x2ba   :  { %5416 = vmatprep.subr.bf16.mxu0 %v5415_v8  ;;  %v1443_v8 = vld [vmem:[#allocation8 + $0xa20] sm:$0xff] }
 0x2bb   :  { %5666 = vmatpush1.bf16.msra.mxu1 %v5665_v10  ;;  %v1460_v10 = vld [vmem:[#allocation8 + $0xaa8] sm:$0xff]  ;;  %v5433_v14 = vpack.c.bf16 %v1451_v9, %v1443_v8 }
 0x2bc   :  { %2818 = vmatmul.mubr.f32.vlgmr.msra.gmra.mrb[6].mxu0 %v6677_v1  ;;  %5668 = vmatprep.subr.bf16.mxu1 %v5667_v2  ;;  %v1437_v2 = vld [vmem:[#allocation8 + $0x9f0] sm:$0xff]  ;;  %v5435_v17 = vpack.c.bf16 %v1468_v11, %v1460_v10  ;;  %v1524_v9 = vld [vmem:[#allocation8 + $0xca8] sm:$0xff] }
 0x2bd   :  { %5418 = vmatpush1.bf16.msra.mxu0 %v5417_v16  ;;  %2888 = vmatprep.mubr.f32.mxu0 %v6700_v20  ;;  %v1454_v16 = vld [vmem:[#allocation8 + $0xa78] sm:$0xff]  ;;  %v5685_v19 = vpack.c.bf16 %v1437_v2, %v1429_v31  ;;  %v1493_v11 = vld [vmem:[#allocation8 + $0xbb0] sm:$0xff] }
 0x2be   :  { %5420 = vmatprep.subr.bf16.mxu0 %v5419_v56  ;;  %v1467_v56 = vld [vmem:[#allocation8 + $0xae0] sm:$0xff]  ;;  %v5687_v23 = vpack.c.bf16 %v1454_v16, %v1446_v15  ;;  %v1510_v2 = vld [vmem:[#allocation8 + $0xc38] sm:$0xff] }
 0x2bf   :  { %5670 = vmatpush1.bf16.msra.mxu1 %v5669_v22  ;;  %v1484_v22 = vld [vmem:[#allocation8 + $0xb68] sm:$0xff]  ;;  %v5437_v29 = vpack.c.bf16 %v1467_v56, %v1459_v18  ;;  %v1523_v16 = vld [vmem:[#allocation8 + $0xca0] sm:$0xff] }
 0x2c0   :  { %5672 = vmatprep.subr.bf16.mxu1 %v5671_v28  ;;  %v1453_v28 = vld [vmem:[#allocation8 + $0xa70] sm:$0xff]  ;;  %v5439_v38 = vpack.c.bf16 %v1484_v22, %v1476_v21  ;;  %v1540_v56 = vld [vmem:[#allocation8 + $0xd28] sm:$0xff] }
 0x2c1   :  { %5422 = vmatpush1.bf16.msra.mxu0 %v5421_v37  ;;  %v1470_v37 = vld [vmem:[#allocation8 + $0xaf8] sm:$0xff]  ;;  %v5689_v40 = vpack.c.bf16 %v1453_v28, %v1445_v24  ;;  %v1509_v22 = vld [vmem:[#allocation8 + $0xc30] sm:$0xff] }
 0x2c2   :  { %3102 = vmatmul.mubr.f32.vlgmr.msra.gmra.mrb[8].mxu1 %v6677_v1  ;;  %5424 = vmatprep.subr.bf16.mxu0 %v5423_v39  ;;  %v5431_v1 = vpack.c.bf16 %v1452_v62, %v1444_v60  ;;  %v1483_v39 = vld [vmem:[#allocation8 + $0xb60] sm:$0xff]  ;;  %v5691_v44 = vpack.c.bf16 %v1470_v37, %v1462_v36  ;;  %v1477_v62 = vld [vmem:[#allocation8 + $0xb30] sm:$0xff]  ;;  %v1526_v28 = vld [vmem:[#allocation8 + $0xcb8] sm:$0xff] }
 0x2c3   :  { %5674 = vmatpush1.bf16.msra.mxu1 %v5673_v42  ;;  %3172 = vmatprep.mubr.f32.mxu1 %v6700_v20  ;;  %v5683_v20 = vpack.c.bf16 %v1438_v43, %v1430_v7  ;;  %v1500_v42 = vld [vmem:[#allocation8 + $0xbe8] sm:$0xff]  ;;  %v5441_v47 = vpack.c.bf16 %v1483_v39, %v1475_v0  ;;  %v1507_v43 = vld [vmem:[#allocation8 + $0xc20] sm:$0xff] }
 0x2c4   :  { %5676 = vmatprep.subr.bf16.mxu1 %v5675_v46  ;;  %v1469_v46 = vld [vmem:[#allocation8 + $0xaf0] sm:$0xff]  ;;  %v5443_v50 = vpack.c.bf16 %v1500_v42, %v1492_v41  ;;  %v1539_v37 = vld [vmem:[#allocation8 + $0xd20] sm:$0xff]  ;;  %v1556_v39 = vld [vmem:[#allocation8 + $0xda8] sm:$0xff] }
 0x2c5   :  { %5426 = vmatpush1.bf16.msra.mxu0 %v5425_v49  ;;  %v1486_v49 = vld [vmem:[#allocation8 + $0xb78] sm:$0xff]  ;;  %v5693_v57 = vpack.c.bf16 %v1469_v46, %v1461_v45  ;;  %v1525_v42 = vld [vmem:[#allocation8 + $0xcb0] sm:$0xff] }
 0x2c6   :  { %5428 = vmatprep.subr.bf16.mxu0 %v5427_v55  ;;  %v1499_v55 = vld [vmem:[#allocation8 + $0xbe0] sm:$0xff]  ;;  %v5695_v60 = vpack.c.bf16 %v1486_v49, %v1478_v48  ;;  %v1542_v46 = vld [vmem:[#allocation8 + $0xd38] sm:$0xff] }
 0x2c7   :  { %5678 = vmatpush1.bf16.msra.mxu1 %v5677_v59  ;;  %v1516_v59 = vld [vmem:[#allocation8 + $0xc68] sm:$0xff]  ;;  %v5445_v3 = vpack.c.bf16 %v1499_v55, %v1491_v53  ;;  %v1555_v49 = vld [vmem:[#allocation8 + $0xda0] sm:$0xff] }
 0x2c8   :  { %5680 = vmatprep.subr.bf16.mxu1 %v5679_v63  ;;  %v1485_v63 = vld [vmem:[#allocation8 + $0xb70] sm:$0xff]  ;;  %v5447_v7 = vpack.c.bf16 %v1516_v59, %v1508_v58  ;;  %v1572_v55 = vld [vmem:[#allocation8 + $0xe28] sm:$0xff] }
 0x2c9   :  { %5430 = vmatpush1.bf16.msra.mxu0 %v5429_v6  ;;  %v1502_v6 = vld [vmem:[#allocation8 + $0xbf8] sm:$0xff]  ;;  %v5697_v8 = vpack.c.bf16 %v1485_v63, %v1477_v62  ;;  %v1541_v59 = vld [vmem:[#allocation8 + $0xd30] sm:$0xff] }
 0x2ca   :  { %5432 = vmatprep.subr.bf16.mxu0 %v5431_v1  ;;  %v1515_v1 = vld [vmem:[#allocation8 + $0xc60] sm:$0xff]  ;;  %v5699_v10 = vpack.c.bf16 %v1502_v6, %v1494_v5  ;;  %v1558_v63 = vld [vmem:[#allocation8 + $0xdb8] sm:$0xff] }
 0x2cb   :  { %5682 = vmatpush1.bf16.msra.mxu1 %v5681_v61  ;;  %v1532_v61 = vld [vmem:[#allocation8 + $0xce8] sm:$0xff]  ;;  %v5449_v31 = vpack.c.bf16 %v1515_v1, %v1507_v43  ;;  %v1571_v6 = vld [vmem:[#allocation8 + $0xe20] sm:$0xff] }
 0x2cc   :  { %5684 = vmatprep.subr.bf16.mxu1 %v5683_v20  ;;  %v1501_v20 = vld [vmem:[#allocation8 + $0xbf0] sm:$0xff]  ;;  %v5451_v15 = vpack.c.bf16 %v1532_v61, %v1524_v9  ;;  %v1588_v1 = vld [vmem:[#allocation8 + $0xea8] sm:$0xff] }
 0x2cd   :  { %5434 = vmatpush1.bf16.msra.mxu0 %v5433_v14  ;;  %v1518_v14 = vld [vmem:[#allocation8 + $0xc78] sm:$0xff]  ;;  %v5701_v18 = vpack.c.bf16 %v1501_v20, %v1493_v11  ;;  %v1557_v61 = vld [vmem:[#allocation8 + $0xdb0] sm:$0xff] }
 0x2ce   :  { %5436 = vmatprep.subr.bf16.mxu0 %v5435_v17  ;;  %v1531_v17 = vld [vmem:[#allocation8 + $0xce0] sm:$0xff]  ;;  %v5703_v21 = vpack.c.bf16 %v1518_v14, %v1510_v2  ;;  %v1574_v20 = vld [vmem:[#allocation8 + $0xe38] sm:$0xff] }
 0x2cf   :  { %5686 = vmatpush1.bf16.msra.mxu1 %v5685_v19  ;;  %v1548_v19 = vld [vmem:[#allocation8 + $0xd68] sm:$0xff]  ;;  %v5453_v24 = vpack.c.bf16 %v1531_v17, %v1523_v16  ;;  %v1587_v14 = vld [vmem:[#allocation8 + $0xea0] sm:$0xff] }
 0x2d0   :  { %5688 = vmatprep.subr.bf16.mxu1 %v5687_v23  ;;  %v1517_v23 = vld [vmem:[#allocation8 + $0xc70] sm:$0xff]  ;;  %v5455_v36 = vpack.c.bf16 %v1548_v19, %v1540_v56  ;;  %v1604_v17 = vld [vmem:[#allocation8 + $0xf28] sm:$0xff] }
 0x2d1   :  { %5438 = vmatpush1.bf16.msra.mxu0 %v5437_v29  ;;  %v1534_v29 = vld [vmem:[#allocation8 + $0xcf8] sm:$0xff]  ;;  %v5705_v0 = vpack.c.bf16 %v1517_v23, %v1509_v22  ;;  %v1573_v19 = vld [vmem:[#allocation8 + $0xe30] sm:$0xff] }
 0x2d2   :  { %5440 = vmatprep.subr.bf16.mxu0 %v5439_v38  ;;  %v1547_v38 = vld [vmem:[#allocation8 + $0xd60] sm:$0xff]  ;;  %v5707_v41 = vpack.c.bf16 %v1534_v29, %v1526_v28  ;;  %v1590_v23 = vld [vmem:[#allocation8 + $0xeb8] sm:$0xff] }
 0x2d3   :  { %5690 = vmatpush1.bf16.msra.mxu1 %v5689_v40  ;;  %v1564_v40 = vld [vmem:[#allocation8 + $0xde8] sm:$0xff]  ;;  %v5457_v45 = vpack.c.bf16 %v1547_v38, %v1539_v37  ;;  %v1603_v29 = vld [vmem:[#allocation8 + $0xf20] sm:$0xff] }
 0x2d4   :  { %5692 = vmatprep.subr.bf16.mxu1 %v5691_v44  ;;  %v1533_v44 = vld [vmem:[#allocation8 + $0xcf0] sm:$0xff]  ;;  %v5459_v48 = vpack.c.bf16 %v1564_v40, %v1556_v39  ;;  %v1620_v38 = vld [vmem:[#allocation8 + $0xfa8] sm:$0xff] }
 0x2d5   :  { %5442 = vmatpush1.bf16.msra.mxu0 %v5441_v47  ;;  %v1550_v47 = vld [vmem:[#allocation8 + $0xd78] sm:$0xff]  ;;  %v5709_v53 = vpack.c.bf16 %v1533_v44, %v1525_v42  ;;  %v1589_v40 = vld [vmem:[#allocation8 + $0xeb0] sm:$0xff] }
 0x2d6   :  { %5444 = vmatprep.subr.bf16.mxu0 %v5443_v50  ;;  %v1563_v50 = vld [vmem:[#allocation8 + $0xde0] sm:$0xff]  ;;  %v5711_v58 = vpack.c.bf16 %v1550_v47, %v1542_v46  ;;  %v1606_v44 = vld [vmem:[#allocation8 + $0xf38] sm:$0xff] }
 0x2d7   :  { %5694 = vmatpush1.bf16.msra.mxu1 %v5693_v57  ;;  %v1580_v57 = vld [vmem:[#allocation8 + $0xe68] sm:$0xff]  ;;  %v5461_v62 = vpack.c.bf16 %v1563_v50, %v1555_v49  ;;  %v1619_v47 = vld [vmem:[#allocation8 + $0xfa0] sm:$0xff] }
 0x2d8   :  { %5696 = vmatprep.subr.bf16.mxu1 %v5695_v60  ;;  %v1549_v60 = vld [vmem:[#allocation8 + $0xd70] sm:$0xff]  ;;  %v5463_v5 = vpack.c.bf16 %v1580_v57, %v1572_v55  ;;  %v1636_v50 = vld [vmem:[#allocation8 + $0x1028] sm:$0xff] }
 0x2d9   :  { %5446 = vmatpush1.bf16.msra.mxu0 %v5445_v3  ;;  %v1566_v3 = vld [vmem:[#allocation8 + $0xdf8] sm:$0xff]  ;;  %v5713_v43 = vpack.c.bf16 %v1549_v60, %v1541_v59  ;;  %v1605_v57 = vld [vmem:[#allocation8 + $0xf30] sm:$0xff] }
 0x2da   :  { %5448 = vmatprep.subr.bf16.mxu0 %v5447_v7  ;;  %v1579_v7 = vld [vmem:[#allocation8 + $0xe60] sm:$0xff]  ;;  %v5715_v9 = vpack.c.bf16 %v1566_v3, %v1558_v63  ;;  %v1622_v60 = vld [vmem:[#allocation8 + $0xfb8] sm:$0xff] }
 0x2db   :  { %5698 = vmatpush1.bf16.msra.mxu1 %v5697_v8  ;;  %v1596_v8 = vld [vmem:[#allocation8 + $0xee8] sm:$0xff]  ;;  %v5465_v11 = vpack.c.bf16 %v1579_v7, %v1571_v6  ;;  %v1635_v3 = vld [vmem:[#allocation8 + $0x1020] sm:$0xff] }
 0x2dc   :  { %5700 = vmatprep.subr.bf16.mxu1 %v5699_v10  ;;  %v1565_v10 = vld [vmem:[#allocation8 + $0xdf0] sm:$0xff]  ;;  %v5467_v2 = vpack.c.bf16 %v1596_v8, %v1588_v1  ;;  %v1652_v7 = vld [vmem:[#allocation8 + $0x10a8] sm:$0xff] }
 0x2dd   :  { %5450 = vmatpush1.bf16.msra.mxu0 %v5449_v31  ;;  %v1582_v31 = vld [vmem:[#allocation8 + $0xe78] sm:$0xff]  ;;  %v5717_v16 = vpack.c.bf16 %v1565_v10, %v1557_v61  ;;  %v1621_v8 = vld [vmem:[#allocation8 + $0xfb0] sm:$0xff] }
 0x2de   :  { %5452 = vmatprep.subr.bf16.mxu0 %v5451_v15  ;;  %v1595_v15 = vld [vmem:[#allocation8 + $0xee0] sm:$0xff]  ;;  %v5719_v56 = vpack.c.bf16 %v1582_v31, %v1574_v20  ;;  %v1638_v10 = vld [vmem:[#allocation8 + $0x1038] sm:$0xff] }
 0x2df   :  { %5702 = vmatpush1.bf16.msra.mxu1 %v5701_v18  ;;  %v1612_v18 = vld [vmem:[#allocation8 + $0xf68] sm:$0xff]  ;;  %v5469_v22 = vpack.c.bf16 %v1595_v15, %v1587_v14  ;;  %v1651_v31 = vld [vmem:[#allocation8 + $0x10a0] sm:$0xff] }
 0x2e0   :  { %5704 = vmatprep.subr.bf16.mxu1 %v5703_v21  ;;  %v1581_v21 = vld [vmem:[#allocation8 + $0xe70] sm:$0xff]  ;;  %v5471_v28 = vpack.c.bf16 %v1612_v18, %v1604_v17  ;;  %v1668_v15 = vld [vmem:[#allocation8 + $0x1128] sm:$0xff] }
 0x2e1   :  { %5454 = vmatpush1.bf16.msra.mxu0 %v5453_v24  ;;  %v1598_v24 = vld [vmem:[#allocation8 + $0xef8] sm:$0xff]  ;;  %v5721_v37 = vpack.c.bf16 %v1581_v21, %v1573_v19  ;;  %v1637_v18 = vld [vmem:[#allocation8 + $0x1030] sm:$0xff] }
 0x2e2   :  { %5456 = vmatprep.subr.bf16.mxu0 %v5455_v36  ;;  %v1611_v36 = vld [vmem:[#allocation8 + $0xf60] sm:$0xff]  ;;  %v5723_v39 = vpack.c.bf16 %v1598_v24, %v1590_v23  ;;  %v1654_v21 = vld [vmem:[#allocation8 + $0x10b8] sm:$0xff] }
 0x2e3   :  { %5706 = vmatpush1.bf16.msra.mxu1 %v5705_v0  ;;  %v1628_v0 = vld [vmem:[#allocation8 + $0xfe8] sm:$0xff]  ;;  %v5473_v42 = vpack.c.bf16 %v1611_v36, %v1603_v29  ;;  %v1667_v24 = vld [vmem:[#allocation8 + $0x1120] sm:$0xff] }
 0x2e4   :  { %5708 = vmatprep.subr.bf16.mxu1 %v5707_v41  ;;  %v1597_v41 = vld [vmem:[#allocation8 + $0xef0] sm:$0xff]  ;;  %v5475_v46 = vpack.c.bf16 %v1628_v0, %v1620_v38  ;;  %v1684_v36 = vld [vmem:[#allocation8 + $0x11a8] sm:$0xff] }
 0x2e5   :  { %5458 = vmatpush1.bf16.msra.mxu0 %v5457_v45  ;;  %v1614_v45 = vld [vmem:[#allocation8 + $0xf78] sm:$0xff]  ;;  %v5725_v49 = vpack.c.bf16 %v1597_v41, %v1589_v40  ;;  %v1653_v0 = vld [vmem:[#allocation8 + $0x10b0] sm:$0xff] }
 0x2e6   :  { %5460 = vmatprep.subr.bf16.mxu0 %v5459_v48  ;;  %v1627_v48 = vld [vmem:[#allocation8 + $0xfe0] sm:$0xff]  ;;  %v5727_v55 = vpack.c.bf16 %v1614_v45, %v1606_v44  ;;  %v1670_v41 = vld [vmem:[#allocation8 + $0x1138] sm:$0xff] }
 0x2e7   :  { %5710 = vmatpush1.bf16.msra.mxu1 %v5709_v53  ;;  %v1644_v53 = vld [vmem:[#allocation8 + $0x1068] sm:$0xff]  ;;  %v5477_v59 = vpack.c.bf16 %v1627_v48, %v1619_v47  ;;  %v1683_v45 = vld [vmem:[#allocation8 + $0x11a0] sm:$0xff] }
 0x2e8   :  { %5712 = vmatprep.subr.bf16.mxu1 %v5711_v58  ;;  %v1613_v58 = vld [vmem:[#allocation8 + $0xf70] sm:$0xff]  ;;  %v5479_v63 = vpack.c.bf16 %v1644_v53, %v1636_v50  ;;  %v1700_v48 = vld [vmem:[#allocation8 + $0x1228] sm:$0xff] }
 0x2e9   :  { %5462 = vmatpush1.bf16.msra.mxu0 %v5461_v62  ;;  %v1630_v62 = vld [vmem:[#allocation8 + $0xff8] sm:$0xff]  ;;  %v5729_v6 = vpack.c.bf16 %v1613_v58, %v1605_v57  ;;  %v1669_v53 = vld [vmem:[#allocation8 + $0x1130] sm:$0xff] }
 0x2ea   :  { %5464 = vmatprep.subr.bf16.mxu0 %v5463_v5  ;;  %v1643_v5 = vld [vmem:[#allocation8 + $0x1060] sm:$0xff]  ;;  %v5731_v1 = vpack.c.bf16 %v1630_v62, %v1622_v60  ;;  %v1686_v58 = vld [vmem:[#allocation8 + $0x11b8] sm:$0xff] }
 0x2eb   :  { %5714 = vmatpush1.bf16.msra.mxu1 %v5713_v43  ;;  %v1660_v43 = vld [vmem:[#allocation8 + $0x10e8] sm:$0xff]  ;;  %v5481_v61 = vpack.c.bf16 %v1643_v5, %v1635_v3  ;;  %v1699_v60 = vld [vmem:[#allocation8 + $0x1220] sm:$0xff] }
 0x2ec   :  { %5716 = vmatprep.subr.bf16.mxu1 %v5715_v9  ;;  %v1629_v9 = vld [vmem:[#allocation8 + $0xff0] sm:$0xff]  ;;  %v5483_v20 = vpack.c.bf16 %v1660_v43, %v1652_v7  ;;  %v1707_v62 = vld [vmem:[#allocation8 + $0x1260] sm:$0xff]  ;;  %v1716_v3 = vld [vmem:[#allocation8 + $0x12a8] sm:$0xff] }
 0x2ed   :  { %5466 = vmatpush1.bf16.msra.mxu0 %v5465_v11  ;;  %v1646_v11 = vld [vmem:[#allocation8 + $0x1078] sm:$0xff]  ;;  %v5733_v14 = vpack.c.bf16 %v1629_v9, %v1621_v8  ;;  %v1724_v5 = vld [vmem:[#allocation8 + $0x12e8] sm:$0xff]  ;;  %v1693_v7 = vld [vmem:[#allocation8 + $0x11f0] sm:$0xff]  ;;  %v5497_v43 = vpack.c.bf16 %v1707_v62, %v1699_v60 }
 0x2ee   :  { %5468 = vmatprep.subr.bf16.mxu0 %v5467_v2  ;;  %v1659_v2 = vld [vmem:[#allocation8 + $0x10e0] sm:$0xff]  ;;  %v5735_v17 = vpack.c.bf16 %v1646_v11, %v1638_v10  ;;  %v1710_v8 = vld [vmem:[#allocation8 + $0x1278] sm:$0xff]  ;;  %v5499_v9 = vpack.c.bf16 %v1724_v5, %v1716_v3  ;;  %v1788_v60 = vld [vmem:[#allocation8 + $0x14e8] sm:$0xff] }
 0x2ef   :  { %5718 = vmatpush1.bf16.msra.mxu1 %v5717_v16  ;;  %v1676_v16 = vld [vmem:[#allocation8 + $0x1168] sm:$0xff]  ;;  %v5485_v19 = vpack.c.bf16 %v1659_v2, %v1651_v31  ;;  %v1723_v10 = vld [vmem:[#allocation8 + $0x12e0] sm:$0xff]  ;;  %v1757_v3 = vld [vmem:[#allocation8 + $0x13f0] sm:$0xff] }
 0x2f0   :  { %5720 = vmatprep.subr.bf16.mxu1 %v5719_v56  ;;  %v1645_v56 = vld [vmem:[#allocation8 + $0x1070] sm:$0xff]  ;;  %v5487_v23 = vpack.c.bf16 %v1676_v16, %v1668_v15  ;;  %v1740_v31 = vld [vmem:[#allocation8 + $0x1368] sm:$0xff] }
 0x2f1   :  { %5470 = vmatpush1.bf16.msra.mxu0 %v5469_v22  ;;  %v1662_v22 = vld [vmem:[#allocation8 + $0x10f8] sm:$0xff]  ;;  %v5737_v29 = vpack.c.bf16 %v1645_v56, %v1637_v18  ;;  %v1709_v15 = vld [vmem:[#allocation8 + $0x1270] sm:$0xff] }
 0x2f2   :  { %5472 = vmatprep.subr.bf16.mxu0 %v5471_v28  ;;  %v1675_v28 = vld [vmem:[#allocation8 + $0x1160] sm:$0xff]  ;;  %v5739_v38 = vpack.c.bf16 %v1662_v22, %v1654_v21  ;;  %v1726_v18 = vld [vmem:[#allocation8 + $0x12f8] sm:$0xff] }
 0x2f3   :  { %5722 = vmatpush1.bf16.msra.mxu1 %v5721_v37  ;;  %v1692_v37 = vld [vmem:[#allocation8 + $0x11e8] sm:$0xff]  ;;  %v5489_v40 = vpack.c.bf16 %v1675_v28, %v1667_v24  ;;  %v1739_v21 = vld [vmem:[#allocation8 + $0x1360] sm:$0xff] }
 0x2f4   :  { %5724 = vmatprep.subr.bf16.mxu1 %v5723_v39  ;;  %v1661_v39 = vld [vmem:[#allocation8 + $0x10f0] sm:$0xff]  ;;  %v5491_v44 = vpack.c.bf16 %v1692_v37, %v1684_v36  ;;  %v1756_v24 = vld [vmem:[#allocation8 + $0x13e8] sm:$0xff] }
 0x2f5   :  { %5474 = vmatpush1.bf16.msra.mxu0 %v5473_v42  ;;  %v1678_v42 = vld [vmem:[#allocation8 + $0x1178] sm:$0xff]  ;;  %v5741_v47 = vpack.c.bf16 %v1661_v39, %v1653_v0  ;;  %v1725_v36 = vld [vmem:[#allocation8 + $0x12f0] sm:$0xff] }
 0x2f6   :  { %5476 = vmatprep.subr.bf16.mxu0 %v5475_v46  ;;  %v1691_v46 = vld [vmem:[#allocation8 + $0x11e0] sm:$0xff]  ;;  %v5743_v50 = vpack.c.bf16 %v1678_v42, %v1670_v41  ;;  %v1742_v0 = vld [vmem:[#allocation8 + $0x1378] sm:$0xff] }
 0x2f7   :  { %5726 = vmatpush1.bf16.msra.mxu1 %v5725_v49  ;;  %v1708_v49 = vld [vmem:[#allocation8 + $0x1268] sm:$0xff]  ;;  %v5493_v57 = vpack.c.bf16 %v1691_v46, %v1683_v45  ;;  %v1755_v41 = vld [vmem:[#allocation8 + $0x13e0] sm:$0xff] }
 0x2f8   :  { %5728 = vmatprep.subr.bf16.mxu1 %v5727_v55  ;;  %v1677_v55 = vld [vmem:[#allocation8 + $0x1170] sm:$0xff]  ;;  %v1772_v45 = vld [vmem:[#allocation8 + $0x1468] sm:$0xff] }
 0x2f9   :  { %5478 = vmatpush1.bf16.msra.mxu0 %v5477_v59  ;;  %v1694_v59 = vld [vmem:[#allocation8 + $0x11f8] sm:$0xff] }
 0x2fa   :  { %5480 = vmatprep.subr.bf16.mxu0 %v5479_v63  ;;  %v5745_v63 = vpack.c.bf16 %v1677_v55, %v1669_v53  ;;  %v1758_v53 = vld [vmem:[#allocation8 + $0x13f8] sm:$0xff] }
 0x2fb   :  { %5730 = vmatpush1.bf16.msra.mxu1 %v5729_v6  ;;  %v1685_v6 = vld [vmem:[#allocation8 + $0x11b0] sm:$0xff] }
 0x2fc   :  { %2889 = vmatmul.mubr.f32.vlgmr.msra.gmra.mrb[6].mxu0 %v6702_v26  ;;  %5732 = vmatprep.subr.bf16.mxu1 %v5731_v1  ;;  %v1702_v1 = vld [vmem:[#allocation8 + $0x1238] sm:$0xff]  ;;  %v5749_v11 = vpack.c.bf16 %v1693_v7, %v1685_v6 }
 0x2fd   :  { %5482 = vmatpush1.bf16.msra.mxu0 %v5481_v61  ;;  %2959 = vmatprep.mubr.f32.mxu0 %v6704_v32  ;;  %v1715_v61 = vld [vmem:[#allocation8 + $0x12a0] sm:$0xff]  ;;  %v5751_v2 = vpack.c.bf16 %v1710_v8, %v1702_v1  ;;  %v1774_v6 = vld [vmem:[#allocation8 + $0x1478] sm:$0xff] }
 0x2fe   :  { %5484 = vmatprep.subr.bf16.mxu0 %v5483_v20  ;;  %v1732_v20 = vld [vmem:[#allocation8 + $0x1328] sm:$0xff]  ;;  %v5501_v16 = vpack.c.bf16 %v1723_v10, %v1715_v61  ;;  %v1787_v1 = vld [vmem:[#allocation8 + $0x14e0] sm:$0xff] }
 0x2ff   :  { %5734 = vmatpush1.bf16.msra.mxu1 %v5733_v14  ;;  %v1701_v14 = vld [vmem:[#allocation8 + $0x1230] sm:$0xff]  ;;  %v5503_v56 = vpack.c.bf16 %v1740_v31, %v1732_v20  ;;  %v1804_v61 = vld [vmem:[#allocation8 + $0x1568] sm:$0xff] }
 0x300   :  { %5736 = vmatprep.subr.bf16.mxu1 %v5735_v17  ;;  %v1718_v17 = vld [vmem:[#allocation8 + $0x12b8] sm:$0xff]  ;;  %v5753_v22 = vpack.c.bf16 %v1709_v15, %v1701_v14  ;;  %v1773_v20 = vld [vmem:[#allocation8 + $0x1470] sm:$0xff] }
 0x301   :  { %5486 = vmatpush1.bf16.msra.mxu0 %v5485_v19  ;;  %v1731_v19 = vld [vmem:[#allocation8 + $0x1320] sm:$0xff]  ;;  %v5755_v28 = vpack.c.bf16 %v1726_v18, %v1718_v17  ;;  %v1790_v14 = vld [vmem:[#allocation8 + $0x14f8] sm:$0xff] }
 0x302   :  { %3173 = vmatmul.mubr.f32.vlgmr.msra.gmra.mrb[8].mxu1 %v6702_v26  ;;  %5488 = vmatprep.subr.bf16.mxu0 %v5487_v23  ;;  %v5495_v26 = vpack.c.bf16 %v1708_v49, %v1700_v48  ;;  %v1748_v23 = vld [vmem:[#allocation8 + $0x13a8] sm:$0xff]  ;;  %v5505_v37 = vpack.c.bf16 %v1739_v21, %v1731_v19  ;;  %v1741_v48 = vld [vmem:[#allocation8 + $0x1370] sm:$0xff]  ;;  %v1803_v17 = vld [vmem:[#allocation8 + $0x1560] sm:$0xff] }
 0x303   :  { %5738 = vmatpush1.bf16.msra.mxu1 %v5737_v29  ;;  %3243 = vmatprep.mubr.f32.mxu1 %v6704_v32  ;;  %v5747_v32 = vpack.c.bf16 %v1694_v59, %v1686_v58  ;;  %v1717_v29 = vld [vmem:[#allocation8 + $0x12b0] sm:$0xff]  ;;  %v5507_v39 = vpack.c.bf16 %v1756_v24, %v1748_v23  ;;  %v1771_v58 = vld [vmem:[#allocation8 + $0x1460] sm:$0xff]  ;;  %v1820_v19 = vld [vmem:[#allocation8 + $0x15e8] sm:$0xff] }
 0x304   :  { %5740 = vmatprep.subr.bf16.mxu1 %v5739_v38  ;;  %v1734_v38 = vld [vmem:[#allocation8 + $0x1338] sm:$0xff]  ;;  %v5757_v42 = vpack.c.bf16 %v1725_v36, %v1717_v29  ;;  %v1789_v23 = vld [vmem:[#allocation8 + $0x14f0] sm:$0xff] }
 0x305   :  { %5490 = vmatpush1.bf16.msra.mxu0 %v5489_v40  ;;  %v1747_v40 = vld [vmem:[#allocation8 + $0x13a0] sm:$0xff]  ;;  %v5759_v46 = vpack.c.bf16 %v1742_v0, %v1734_v38  ;;  %v1806_v29 = vld [vmem:[#allocation8 + $0x1578] sm:$0xff] }
 0x306   :  { %5492 = vmatprep.subr.bf16.mxu0 %v5491_v44  ;;  %v1764_v44 = vld [vmem:[#allocation8 + $0x1428] sm:$0xff]  ;;  %v5509_v49 = vpack.c.bf16 %v1755_v41, %v1747_v40  ;;  %v1819_v38 = vld [vmem:[#allocation8 + $0x15e0] sm:$0xff] }
 0x307   :  { %5742 = vmatpush1.bf16.msra.mxu1 %v5741_v47  ;;  %v1733_v47 = vld [vmem:[#allocation8 + $0x1330] sm:$0xff]  ;;  %v5511_v55 = vpack.c.bf16 %v1772_v45, %v1764_v44  ;;  %v1836_v40 = vld [vmem:[#allocation8 + $0x1668] sm:$0xff] }
 0x308   :  { %5744 = vmatprep.subr.bf16.mxu1 %v5743_v50  ;;  %v1750_v50 = vld [vmem:[#allocation8 + $0x13b8] sm:$0xff]  ;;  %v5761_v59 = vpack.c.bf16 %v1741_v48, %v1733_v47  ;;  %v1805_v44 = vld [vmem:[#allocation8 + $0x1570] sm:$0xff] }
 0x309   :  { %5494 = vmatpush1.bf16.msra.mxu0 %v5493_v57  ;;  %v1763_v57 = vld [vmem:[#allocation8 + $0x1420] sm:$0xff]  ;;  %v5763_v62 = vpack.c.bf16 %v1758_v53, %v1750_v50  ;;  %v1822_v47 = vld [vmem:[#allocation8 + $0x15f8] sm:$0xff] }
 0x30a   :  { %5496 = vmatprep.subr.bf16.mxu0 %v5495_v26  ;;  %v1780_v26 = vld [vmem:[#allocation8 + $0x14a8] sm:$0xff]  ;;  %v5513_v5 = vpack.c.bf16 %v1771_v58, %v1763_v57  ;;  %v1835_v50 = vld [vmem:[#allocation8 + $0x1660] sm:$0xff] }
 0x30b   :  { %5746 = vmatpush1.bf16.msra.mxu1 %v5745_v63  ;;  %v1749_v63 = vld [vmem:[#allocation8 + $0x13b0] sm:$0xff]  ;;  %v5515_v7 = vpack.c.bf16 %v1788_v60, %v1780_v26  ;;  %v1852_v57 = vld [vmem:[#allocation8 + $0x16e8] sm:$0xff] }
 0x30c   :  { %5748 = vmatprep.subr.bf16.mxu1 %v5747_v32  ;;  %v1766_v32 = vld [vmem:[#allocation8 + $0x1438] sm:$0xff]  ;;  %v5765_v8 = vpack.c.bf16 %v1757_v3, %v1749_v63  ;;  %v1821_v26 = vld [vmem:[#allocation8 + $0x15f0] sm:$0xff] }
 0x30d   :  { %5498 = vmatpush1.bf16.msra.mxu0 %v5497_v43  ;;  %v1779_v43 = vld [vmem:[#allocation8 + $0x14a0] sm:$0xff]  ;;  %v5767_v10 = vpack.c.bf16 %v1774_v6, %v1766_v32  ;;  %v1838_v63 = vld [vmem:[#allocation8 + $0x1678] sm:$0xff] }
 0x30e   :  { %5500 = vmatprep.subr.bf16.mxu0 %v5499_v9  ;;  %v1796_v9 = vld [vmem:[#allocation8 + $0x1528] sm:$0xff]  ;;  %v5517_v31 = vpack.c.bf16 %v1787_v1, %v1779_v43  ;;  %v1851_v32 = vld [vmem:[#allocation8 + $0x16e0] sm:$0xff] }
 0x30f   :  { %5750 = vmatpush1.bf16.msra.mxu1 %v5749_v11  ;;  %v1765_v11 = vld [vmem:[#allocation8 + $0x1430] sm:$0xff]  ;;  %v5519_v15 = vpack.c.bf16 %v1804_v61, %v1796_v9  ;;  %v1868_v43 = vld [vmem:[#allocation8 + $0x1768] sm:$0xff] }
 0x310   :  { %5752 = vmatprep.subr.bf16.mxu1 %v5751_v2  ;;  %v1782_v2 = vld [vmem:[#allocation8 + $0x14b8] sm:$0xff]  ;;  %v5769_v18 = vpack.c.bf16 %v1773_v20, %v1765_v11  ;;  %v1837_v9 = vld [vmem:[#allocation8 + $0x1670] sm:$0xff] }
 0x311   :  { %5502 = vmatpush1.bf16.msra.mxu0 %v5501_v16  ;;  %v1795_v16 = vld [vmem:[#allocation8 + $0x1520] sm:$0xff]  ;;  %v5771_v21 = vpack.c.bf16 %v1790_v14, %v1782_v2  ;;  %v1854_v11 = vld [vmem:[#allocation8 + $0x16f8] sm:$0xff] }
 0x312   :  { %5504 = vmatprep.subr.bf16.mxu0 %v5503_v56  ;;  %v1812_v56 = vld [vmem:[#allocation8 + $0x15a8] sm:$0xff]  ;;  %v5521_v24 = vpack.c.bf16 %v1803_v17, %v1795_v16  ;;  %v1867_v2 = vld [vmem:[#allocation8 + $0x1760] sm:$0xff] }
 0x313   :  { %5754 = vmatpush1.bf16.msra.mxu1 %v5753_v22  ;;  %v1781_v22 = vld [vmem:[#allocation8 + $0x14b0] sm:$0xff]  ;;  %v5523_v36 = vpack.c.bf16 %v1820_v19, %v1812_v56  ;;  %v1884_v16 = vld [vmem:[#allocation8 + $0x17e8] sm:$0xff] }
 0x314   :  { %5756 = vmatprep.subr.bf16.mxu1 %v5755_v28  ;;  %v1798_v28 = vld [vmem:[#allocation8 + $0x1538] sm:$0xff]  ;;  %v5773_v0 = vpack.c.bf16 %v1789_v23, %v1781_v22  ;;  %v1853_v56 = vld [vmem:[#allocation8 + $0x16f0] sm:$0xff] }
 0x315   :  { %5506 = vmatpush1.bf16.msra.mxu0 %v5505_v37  ;;  %v1811_v37 = vld [vmem:[#allocation8 + $0x15a0] sm:$0xff]  ;;  %v5775_v41 = vpack.c.bf16 %v1806_v29, %v1798_v28  ;;  %v1870_v22 = vld [vmem:[#allocation8 + $0x1778] sm:$0xff] }
 0x316   :  { %5508 = vmatprep.subr.bf16.mxu0 %v5507_v39  ;;  %v1828_v39 = vld [vmem:[#allocation8 + $0x1628] sm:$0xff]  ;;  %v5525_v45 = vpack.c.bf16 %v1819_v38, %v1811_v37  ;;  %v1883_v28 = vld [vmem:[#allocation8 + $0x17e0] sm:$0xff] }
 0x317   :  { %5758 = vmatpush1.bf16.msra.mxu1 %v5757_v42  ;;  %v1797_v42 = vld [vmem:[#allocation8 + $0x1530] sm:$0xff]  ;;  %v5527_v48 = vpack.c.bf16 %v1836_v40, %v1828_v39  ;;  %v1900_v37 = vld [vmem:[#allocation8 + $0x1868] sm:$0xff] }
 0x318   :  { %5760 = vmatprep.subr.bf16.mxu1 %v5759_v46  ;;  %v1814_v46 = vld [vmem:[#allocation8 + $0x15b8] sm:$0xff]  ;;  %v5777_v53 = vpack.c.bf16 %v1805_v44, %v1797_v42  ;;  %v1869_v39 = vld [vmem:[#allocation8 + $0x1770] sm:$0xff] }
 0x319   :  { %5510 = vmatpush1.bf16.msra.mxu0 %v5509_v49  ;;  %v1827_v49 = vld [vmem:[#allocation8 + $0x1620] sm:$0xff]  ;;  %v5779_v58 = vpack.c.bf16 %v1822_v47, %v1814_v46  ;;  %v1886_v42 = vld [vmem:[#allocation8 + $0x17f8] sm:$0xff] }
 0x31a   :  { %5512 = vmatprep.subr.bf16.mxu0 %v5511_v55  ;;  %v1844_v55 = vld [vmem:[#allocation8 + $0x16a8] sm:$0xff]  ;;  %v5529_v60 = vpack.c.bf16 %v1835_v50, %v1827_v49  ;;  %v1899_v46 = vld [vmem:[#allocation8 + $0x1860] sm:$0xff] }
 0x31b   :  { %5762 = vmatpush1.bf16.msra.mxu1 %v5761_v59  ;;  %v1813_v59 = vld [vmem:[#allocation8 + $0x15b0] sm:$0xff]  ;;  %v5531_v3 = vpack.c.bf16 %v1852_v57, %v1844_v55  ;;  %v1916_v49 = vld [vmem:[#allocation8 + $0x18e8] sm:$0xff] }
 0x31c   :  { %5764 = vmatprep.subr.bf16.mxu1 %v5763_v62  ;;  %v1830_v62 = vld [vmem:[#allocation8 + $0x1638] sm:$0xff]  ;;  %v5781_v6 = vpack.c.bf16 %v1821_v26, %v1813_v59  ;;  %v1885_v55 = vld [vmem:[#allocation8 + $0x17f0] sm:$0xff] }
 0x31d   :  { %5514 = vmatpush1.bf16.msra.mxu0 %v5513_v5  ;;  %v1843_v5 = vld [vmem:[#allocation8 + $0x16a0] sm:$0xff]  ;;  %v5783_v1 = vpack.c.bf16 %v1838_v63, %v1830_v62  ;;  %v1902_v59 = vld [vmem:[#allocation8 + $0x1878] sm:$0xff] }
 0x31e   :  { %5516 = vmatprep.subr.bf16.mxu0 %v5515_v7  ;;  %v1860_v7 = vld [vmem:[#allocation8 + $0x1728] sm:$0xff]  ;;  %v5533_v61 = vpack.c.bf16 %v1851_v32, %v1843_v5  ;;  %v1915_v62 = vld [vmem:[#allocation8 + $0x18e0] sm:$0xff] }
 0x31f   :  { %5766 = vmatpush1.bf16.msra.mxu1 %v5765_v8  ;;  %v1829_v8 = vld [vmem:[#allocation8 + $0x1630] sm:$0xff]  ;;  %v5535_v20 = vpack.c.bf16 %v1868_v43, %v1860_v7  ;;  %v1932_v5 = vld [vmem:[#allocation8 + $0x1968] sm:$0xff] }
 0x320   :  { %5768 = vmatprep.subr.bf16.mxu1 %v5767_v10  ;;  %v1846_v10 = vld [vmem:[#allocation8 + $0x16b8] sm:$0xff]  ;;  %v5785_v14 = vpack.c.bf16 %v1837_v9, %v1829_v8  ;;  %v1901_v7 = vld [vmem:[#allocation8 + $0x1870] sm:$0xff] }
 0x321   :  { %5518 = vmatpush1.bf16.msra.mxu0 %v5517_v31  ;;  %v1859_v31 = vld [vmem:[#allocation8 + $0x1720] sm:$0xff]  ;;  %v5787_v17 = vpack.c.bf16 %v1854_v11, %v1846_v10  ;;  %v1918_v8 = vld [vmem:[#allocation8 + $0x18f8] sm:$0xff] }
 0x322   :  { %5520 = vmatprep.subr.bf16.mxu0 %v5519_v15  ;;  %v1876_v15 = vld [vmem:[#allocation8 + $0x17a8] sm:$0xff]  ;;  %v5537_v19 = vpack.c.bf16 %v1867_v2, %v1859_v31  ;;  %v1931_v10 = vld [vmem:[#allocation8 + $0x1960] sm:$0xff] }
 0x323   :  { %5770 = vmatpush1.bf16.msra.mxu1 %v5769_v18  ;;  %v1845_v18 = vld [vmem:[#allocation8 + $0x16b0] sm:$0xff]  ;;  %v5539_v23 = vpack.c.bf16 %v1884_v16, %v1876_v15  ;;  %v1948_v31 = vld [vmem:[#allocation8 + $0x19e8] sm:$0xff] }
 0x324   :  { %5772 = vmatprep.subr.bf16.mxu1 %v5771_v21  ;;  %v1862_v21 = vld [vmem:[#allocation8 + $0x1738] sm:$0xff]  ;;  %v5789_v29 = vpack.c.bf16 %v1853_v56, %v1845_v18  ;;  %v1917_v15 = vld [vmem:[#allocation8 + $0x18f0] sm:$0xff] }
 0x325   :  { %5522 = vmatpush1.bf16.msra.mxu0 %v5521_v24  ;;  %v1875_v24 = vld [vmem:[#allocation8 + $0x17a0] sm:$0xff]  ;;  %v5791_v38 = vpack.c.bf16 %v1870_v22, %v1862_v21  ;;  %v1934_v18 = vld [vmem:[#allocation8 + $0x1978] sm:$0xff] }
 0x326   :  { %5524 = vmatprep.subr.bf16.mxu0 %v5523_v36  ;;  %v1892_v36 = vld [vmem:[#allocation8 + $0x1828] sm:$0xff]  ;;  %v5541_v40 = vpack.c.bf16 %v1883_v28, %v1875_v24  ;;  %v1947_v21 = vld [vmem:[#allocation8 + $0x19e0] sm:$0xff] }
 0x327   :  { %5774 = vmatpush1.bf16.msra.mxu1 %v5773_v0  ;;  %v1861_v0 = vld [vmem:[#allocation8 + $0x1730] sm:$0xff]  ;;  %v5543_v44 = vpack.c.bf16 %v1900_v37, %v1892_v36  ;;  %v1964_v24 = vld [vmem:[#allocation8 + $0x1a68] sm:$0xff] }
 0x328   :  { %5776 = vmatprep.subr.bf16.mxu1 %v5775_v41  ;;  %v1878_v41 = vld [vmem:[#allocation8 + $0x17b8] sm:$0xff]  ;;  %v5793_v47 = vpack.c.bf16 %v1869_v39, %v1861_v0  ;;  %v1933_v36 = vld [vmem:[#allocation8 + $0x1970] sm:$0xff]  ;;  %v1955_v39 = vld [vmem:[#allocation8 + $0x1a20] sm:$0xff] }
 0x329   :  { %5526 = vmatpush1.bf16.msra.mxu0 %v5525_v45  ;;  %v1891_v45 = vld [vmem:[#allocation8 + $0x1820] sm:$0xff]  ;;  %v5795_v50 = vpack.c.bf16 %v1886_v42, %v1878_v41  ;;  %v1950_v0 = vld [vmem:[#allocation8 + $0x19f8] sm:$0xff]  ;;  %v1972_v42 = vld [vmem:[#allocation8 + $0x1aa8] sm:$0xff] }
 0x32a   :  { %5528 = vmatprep.subr.bf16.mxu0 %v5527_v48  ;;  %v1908_v48 = vld [vmem:[#allocation8 + $0x18a8] sm:$0xff]  ;;  %v5545_v57 = vpack.c.bf16 %v1899_v46, %v1891_v45  ;;  %v1941_v45 = vld [vmem:[#allocation8 + $0x19b0] sm:$0xff] }
 0x32b   :  { %5778 = vmatpush1.bf16.msra.mxu1 %v5777_v53  ;;  %v1877_v53 = vld [vmem:[#allocation8 + $0x17b0] sm:$0xff]  ;;  %v5547_v26 = vpack.c.bf16 %v1916_v49, %v1908_v48  ;;  %v1958_v48 = vld [vmem:[#allocation8 + $0x1a38] sm:$0xff] }
 0x32c   :  { %5780 = vmatprep.subr.bf16.mxu1 %v5779_v58  ;;  %v1894_v58 = vld [vmem:[#allocation8 + $0x1838] sm:$0xff]  ;;  %v5797_v63 = vpack.c.bf16 %v1885_v55, %v1877_v53  ;;  %v1949_v46 = vld [vmem:[#allocation8 + $0x19f0] sm:$0xff]  ;;  %v1971_v53 = vld [vmem:[#allocation8 + $0x1aa0] sm:$0xff] }
 0x32d   :  { %5530 = vmatpush1.bf16.msra.mxu0 %v5529_v60  ;;  %v1907_v60 = vld [vmem:[#allocation8 + $0x18a0] sm:$0xff]  ;;  %v5799_v32 = vpack.c.bf16 %v1902_v59, %v1894_v58  ;;  %v1966_v49 = vld [vmem:[#allocation8 + $0x1a78] sm:$0xff]  ;;  %v1988_v58 = vld [vmem:[#allocation8 + $0x1b28] sm:$0xff] }
 0x32e   :  { %5532 = vmatprep.subr.bf16.mxu0 %v5531_v3  ;;  %v1924_v3 = vld [vmem:[#allocation8 + $0x1928] sm:$0xff]  ;;  %v5549_v43 = vpack.c.bf16 %v1915_v62, %v1907_v60  ;;  %v1979_v55 = vld [vmem:[#allocation8 + $0x1ae0] sm:$0xff]  ;;  %v1957_v60 = vld [vmem:[#allocation8 + $0x1a30] sm:$0xff] }
 0x32f   :  { %5782 = vmatpush1.bf16.msra.mxu1 %v5781_v6  ;;  %v1893_v6 = vld [vmem:[#allocation8 + $0x1830] sm:$0xff]  ;;  %v5551_v9 = vpack.c.bf16 %v1932_v5, %v1924_v3  ;;  %v1996_v59 = vld [vmem:[#allocation8 + $0x1b68] sm:$0xff]  ;;  %v1974_v3 = vld [vmem:[#allocation8 + $0x1ab8] sm:$0xff] }
 0x330   :  { %5784 = vmatprep.subr.bf16.mxu1 %v5783_v1  ;;  %v1910_v1 = vld [vmem:[#allocation8 + $0x18b8] sm:$0xff]  ;;  %v5801_v11 = vpack.c.bf16 %v1901_v7, %v1893_v6  ;;  %v1965_v62 = vld [vmem:[#allocation8 + $0x1a70] sm:$0xff]  ;;  %v1987_v6 = vld [vmem:[#allocation8 + $0x1b20] sm:$0xff] }
 0x331   :  { %5534 = vmatpush1.bf16.msra.mxu0 %v5533_v61  ;;  %v1923_v61 = vld [vmem:[#allocation8 + $0x1920] sm:$0xff]  ;;  %v5803_v2 = vpack.c.bf16 %v1918_v8, %v1910_v1  ;;  %v1982_v5 = vld [vmem:[#allocation8 + $0x1af8] sm:$0xff]  ;;  %v5817_v1 = vpack.c.bf16 %v1965_v62, %v1957_v60  ;;  %v2004_v8 = vld [vmem:[#allocation8 + $0x1ba8] sm:$0xff] }
 0x332   :  { %5536 = vmatprep.subr.bf16.mxu0 %v5535_v20  ;;  %v1940_v20 = vld [vmem:[#allocation8 + $0x19a8] sm:$0xff]  ;;  %v5553_v16 = vpack.c.bf16 %v1931_v10, %v1923_v61  ;;  %v1995_v7 = vld [vmem:[#allocation8 + $0x1b60] sm:$0xff]  ;;  %v5819_v10 = vpack.c.bf16 %v1982_v5, %v1974_v3  ;;  %v2038_v62 = vld [vmem:[#allocation8 + $0x1cb8] sm:$0xff] }
 0x333   :  { %5786 = vmatpush1.bf16.msra.mxu1 %v5785_v14  ;;  %v1909_v14 = vld [vmem:[#allocation8 + $0x18b0] sm:$0xff]  ;;  %v5555_v56 = vpack.c.bf16 %v1948_v31, %v1940_v20  ;;  %v5569_v31 = vpack.c.bf16 %v1995_v7, %v1987_v6  ;;  %v2051_v5 = vld [vmem:[#allocation8 + $0x1d20] sm:$0xff]  ;;  %v2068_v7 = vld [vmem:[#allocation8 + $0x1da8] sm:$0xff] }
 0x334   :  { %5788 = vmatprep.subr.bf16.mxu1 %v5787_v17  ;;  %v1926_v17 = vld [vmem:[#allocation8 + $0x1938] sm:$0xff]  ;;  %v5805_v22 = vpack.c.bf16 %v1917_v15, %v1909_v14  ;;  %v1981_v20 = vld [vmem:[#allocation8 + $0x1af0] sm:$0xff] }
 0x335   :  { %5538 = vmatpush1.bf16.msra.mxu0 %v5537_v19  ;;  %v1939_v19 = vld [vmem:[#allocation8 + $0x19a0] sm:$0xff]  ;;  %v5807_v28 = vpack.c.bf16 %v1934_v18, %v1926_v17  ;;  %v1998_v14 = vld [vmem:[#allocation8 + $0x1b78] sm:$0xff] }
 0x336   :  { %5540 = vmatprep.subr.bf16.mxu0 %v5539_v23  ;;  %v1956_v23 = vld [vmem:[#allocation8 + $0x1a28] sm:$0xff]  ;;  %v5557_v37 = vpack.c.bf16 %v1947_v21, %v1939_v19  ;;  %v2011_v17 = vld [vmem:[#allocation8 + $0x1be0] sm:$0xff] }
 0x337   :  { %5790 = vmatpush1.bf16.msra.mxu1 %v5789_v29  ;;  %v1925_v29 = vld [vmem:[#allocation8 + $0x1930] sm:$0xff]  ;;  %v2028_v19 = vld [vmem:[#allocation8 + $0x1c68] sm:$0xff] }
 0x338   :  { %5792 = vmatprep.subr.bf16.mxu1 %v5791_v38  ;;  %v1942_v38 = vld [vmem:[#allocation8 + $0x19b8] sm:$0xff]  ;;  %v5809_v41 = vpack.c.bf16 %v1933_v36, %v1925_v29 }
 0x339   :  { %5542 = vmatpush1.bf16.msra.mxu0 %v5541_v40  ;;  %v1963_v40 = vld [vmem:[#allocation8 + $0x1a60] sm:$0xff]  ;;  %v2006_v29 = vld [vmem:[#allocation8 + $0x1bb8] sm:$0xff] }
 0x33a   :  { %5544 = vmatprep.subr.bf16.mxu0 %v5543_v44  ;;  %v1980_v44 = vld [vmem:[#allocation8 + $0x1ae8] sm:$0xff]  ;;  %v2014_v36 = vld [vmem:[#allocation8 + $0x1bf8] sm:$0xff] }
 0x33b   :  { %5794 = vmatpush1.bf16.msra.mxu1 %v5793_v47  ;;  %v5561_v47 = vpack.c.bf16 %v1963_v40, %v1955_v39  ;;  %v2036_v40 = vld [vmem:[#allocation8 + $0x1ca8] sm:$0xff] }
 0x33c   :  { %2960 = vmatmul.mubr.f32.vlgmr.msra.gmra.mrb[6].mxu0 %v6719_v13  ;;  %5796 = vmatprep.subr.bf16.mxu1 %v5795_v50  ;;  %v5563_v50 = vpack.c.bf16 %v1980_v44, %v1972_v42  ;;  %v5827_v42 = vpack.c.bf16 %v2014_v36, %v2006_v29  ;;  %v2005_v44 = vld [vmem:[#allocation8 + $0x1bb0] sm:$0xff]  ;;  %v2083_v36 = vld [vmem:[#allocation8 + $0x1e20] sm:$0xff] }
 0x33d   :  { %5546 = vmatpush1.bf16.msra.mxu0 %v5545_v57  ;;  %3030 = vmatprep.mubr.f32.mxu0 %v6729_v12  ;;  %v5813_v57 = vpack.c.bf16 %v1949_v46, %v1941_v45  ;;  %v2022_v46 = vld [vmem:[#allocation8 + $0x1c38] sm:$0xff] }
 0x33e   :  { %5548 = vmatprep.subr.bf16.mxu0 %v5547_v26  ;;  %v5815_v26 = vpack.c.bf16 %v1966_v49, %v1958_v48  ;;  %v2035_v49 = vld [vmem:[#allocation8 + $0x1ca0] sm:$0xff] }
 0x33f   :  { %5798 = vmatpush1.bf16.msra.mxu1 %v5797_v63  ;;  %v5565_v63 = vpack.c.bf16 %v1979_v55, %v1971_v53  ;;  %v2052_v55 = vld [vmem:[#allocation8 + $0x1d28] sm:$0xff] }
 0x340   :  { %5800 = vmatprep.subr.bf16.mxu1 %v5799_v32  ;;  %v5567_v32 = vpack.c.bf16 %v1996_v59, %v1988_v58  ;;  %v2021_v59 = vld [vmem:[#allocation8 + $0x1c30] sm:$0xff] }
 0x341   :  { %5550 = vmatpush1.bf16.msra.mxu0 %v5549_v43 }
 0x342   :  { %3244 = vmatmul.mubr.f32.vlgmr.msra.gmra.mrb[8].mxu1 %v6719_v13  ;;  %5552 = vmatprep.subr.bf16.mxu0 %v5551_v9  ;;  %v5559_v13 = vpack.c.bf16 %v1964_v24, %v1956_v23  ;;  %v2012_v9 = vld [vmem:[#allocation8 + $0x1be8] sm:$0xff]  ;;  %v1997_v23 = vld [vmem:[#allocation8 + $0x1b70] sm:$0xff] }
 0x343   :  { %5802 = vmatpush1.bf16.msra.mxu1 %v5801_v11  ;;  %3314 = vmatprep.mubr.f32.mxu1 %v6729_v12  ;;  %v5811_v12 = vpack.c.bf16 %v1950_v0, %v1942_v38  ;;  %v1973_v11 = vld [vmem:[#allocation8 + $0x1ab0] sm:$0xff]  ;;  %v5571_v15 = vpack.c.bf16 %v2012_v9, %v2004_v8  ;;  %v2019_v0 = vld [vmem:[#allocation8 + $0x1c20] sm:$0xff] }
 0x344   :  { %5804 = vmatprep.subr.bf16.mxu1 %v5803_v2  ;;  %v1990_v2 = vld [vmem:[#allocation8 + $0x1b38] sm:$0xff]  ;;  %v5821_v18 = vpack.c.bf16 %v1981_v20, %v1973_v11  ;;  %v2037_v9 = vld [vmem:[#allocation8 + $0x1cb0] sm:$0xff] }
 0x345   :  { %5554 = vmatpush1.bf16.msra.mxu0 %v5553_v16  ;;  %v2003_v16 = vld [vmem:[#allocation8 + $0x1ba0] sm:$0xff]  ;;  %v5823_v21 = vpack.c.bf16 %v1998_v14, %v1990_v2  ;;  %v2054_v20 = vld [vmem:[#allocation8 + $0x1d38] sm:$0xff] }
 0x346   :  { %5556 = vmatprep.subr.bf16.mxu0 %v5555_v56  ;;  %v2020_v56 = vld [vmem:[#allocation8 + $0x1c28] sm:$0xff]  ;;  %v2067_v14 = vld [vmem:[#allocation8 + $0x1da0] sm:$0xff] }
 0x347   :  { %5806 = vmatpush1.bf16.msra.mxu1 %v5805_v22  ;;  %v1989_v22 = vld [vmem:[#allocation8 + $0x1b30] sm:$0xff]  ;;  %v5575_v38 = vpack.c.bf16 %v2028_v19, %v2020_v56 }
 0x348   :  { %5808 = vmatprep.subr.bf16.mxu1 %v5807_v28  ;;  %v5573_v28 = vpack.c.bf16 %v2011_v17, %v2003_v16  ;;  %v5825_v39 = vpack.c.bf16 %v1997_v23, %v1989_v22  ;;  %v2084_v17 = vld [vmem:[#allocation8 + $0x1e28] sm:$0xff]  ;;  %v2053_v19 = vld [vmem:[#allocation8 + $0x1d30] sm:$0xff]  ;;  %v2070_v23 = vld [vmem:[#allocation8 + $0x1db8] sm:$0xff] }
 0x349   :  { %5558 = vmatpush1.bf16.msra.mxu0 %v5557_v37 }
 0x34a   :  { %5560 = vmatprep.subr.bf16.mxu0 %v5559_v13  ;;  %v2027_v13 = vld [vmem:[#allocation8 + $0x1c60] sm:$0xff] }
 0x34b   :  { %5810 = vmatpush1.bf16.msra.mxu1 %v5809_v41  ;;  %v2044_v41 = vld [vmem:[#allocation8 + $0x1ce8] sm:$0xff]  ;;  %v5577_v45 = vpack.c.bf16 %v2027_v13, %v2019_v0 }
 0x34c   :  { %5812 = vmatprep.subr.bf16.mxu1 %v5811_v12  ;;  %v2013_v12 = vld [vmem:[#allocation8 + $0x1bf0] sm:$0xff]  ;;  %v5579_v48 = vpack.c.bf16 %v2044_v41, %v2036_v40  ;;  %v2100_v13 = vld [vmem:[#allocation8 + $0x1ea8] sm:$0xff] }
 0x34d   :  { %5562 = vmatpush1.bf16.msra.mxu0 %v5561_v47  ;;  %v2030_v47 = vld [vmem:[#allocation8 + $0x1c78] sm:$0xff]  ;;  %v5829_v53 = vpack.c.bf16 %v2013_v12, %v2005_v44  ;;  %v2069_v41 = vld [vmem:[#allocation8 + $0x1db0] sm:$0xff] }
 0x34e   :  { %5564 = vmatprep.subr.bf16.mxu0 %v5563_v50  ;;  %v2043_v50 = vld [vmem:[#allocation8 + $0x1ce0] sm:$0xff]  ;;  %v5831_v58 = vpack.c.bf16 %v2030_v47, %v2022_v46  ;;  %v2086_v12 = vld [vmem:[#allocation8 + $0x1e38] sm:$0xff] }
 0x34f   :  { %v6756_v43 = vpop.f32.mrb[4].mxu0  ;;  %5814 = vmatpush1.bf16.msra.mxu1 %v5813_v57  ;;  %v2060_v57 = vld [vmem:[#allocation8 + $0x1d68] sm:$0xff]  ;;  %v5581_v60 = vpack.c.bf16 %v2043_v50, %v2035_v49  ;;  %v2099_v47 = vld [vmem:[#allocation8 + $0x1ea0] sm:$0xff] }
 0x350   :  { %v6758_v61 = vpop.f32.mrb[5].mxu0  ;;  %5816 = vmatprep.subr.bf16.mxu1 %v5815_v26  ;;  %v2029_v26 = vld [vmem:[#allocation8 + $0x1c70] sm:$0xff]  ;;  %v5583_v3 = vpack.c.bf16 %v2060_v57, %v2052_v55  ;;  %v2116_v50 = vld [vmem:[#allocation8 + $0x1f28] sm:$0xff] }
 0x351   :  { %5566 = vmatpush1.bf16.msra.mxu0 %v5565_v63  ;;  %v2046_v63 = vld [vmem:[#allocation8 + $0x1cf8] sm:$0xff]  ;;  %v5833_v6 = vpack.c.bf16 %v2029_v26, %v2021_v59  ;;  %v2085_v57 = vld [vmem:[#allocation8 + $0x1e30] sm:$0xff] }
 0x352   :  { %5568 = vmatprep.subr.bf16.mxu0 %v5567_v32  ;;  %v2059_v32 = vld [vmem:[#allocation8 + $0x1d60] sm:$0xff]  ;;  %v5835_v8 = vpack.c.bf16 %v2046_v63, %v2038_v62  ;;  %v2102_v26 = vld [vmem:[#allocation8 + $0x1eb8] sm:$0xff] }
 0x353   :  { %5818 = vmatpush1.bf16.msra.mxu1 %v5817_v1  ;;  %v2076_v1 = vld [vmem:[#allocation8 + $0x1de8] sm:$0xff]  ;;  %v5585_v11 = vpack.c.bf16 %v2059_v32, %v2051_v5  ;;  %v2115_v63 = vld [vmem:[#allocation8 + $0x1f20] sm:$0xff] }
 0x354   :  { %5820 = vmatprep.subr.bf16.mxu1 %v5819_v10  ;;  %v2045_v10 = vld [vmem:[#allocation8 + $0x1cf0] sm:$0xff]  ;;  %v5587_v2 = vpack.c.bf16 %v2076_v1, %v2068_v7  ;;  %v2132_v32 = vld [vmem:[#allocation8 + $0x1fa8] sm:$0xff]  ;;  %v6764_v7 = vld [vmem:[#allocation10] sm:$0xff] }
 0x355   :  { %5570 = vmatpush1.bf16.msra.mxu0 %v5569_v31  ;;  %v6760_v24 = vpop.f32.mrb[6].mxu1  ;;  %v2062_v31 = vld [vmem:[#allocation8 + $0x1d78] sm:$0xff]  ;;  %v5837_v16 = vpack.c.bf16 %v2045_v10, %v2037_v9  ;;  %v2109_v9 = vld [vmem:[#allocation8 + $0x1ef0] sm:$0xff] }
 0x356   :  { %v6762_v37 = vpop.f32.mrb[7].mxu1  ;;  %5572 = vmatprep.subr.bf16.mxu0 %v5571_v15  ;;  %v2075_v15 = vld [vmem:[#allocation8 + $0x1de0] sm:$0xff]  ;;  %v5839_v56 = vpack.c.bf16 %v2062_v31, %v2054_v20  ;;  %v2126_v20 = vld [vmem:[#allocation8 + $0x1f78] sm:$0xff] }
 0x357   :  { %5822 = vmatpush1.bf16.msra.mxu1 %v5821_v18  ;;  %v2092_v18 = vld [vmem:[#allocation8 + $0x1e68] sm:$0xff]  ;;  %v5589_v22 = vpack.c.bf16 %v2075_v15, %v2067_v14  ;;  %v2139_v14 = vld [vmem:[#allocation8 + $0x1fe0] sm:$0xff]  ;;  %v2152_v15 = vrot.slane %v6764_v7, %v6671_v35 }
 0x358   :  { %5824 = vmatprep.subr.bf16.mxu1 %v5823_v21  ;;  %v2061_v21 = vld [vmem:[#allocation8 + $0x1d70] sm:$0xff]  ;;  %v5591_v29 = vpack.c.bf16 %v2092_v18, %v2084_v17  ;;  %v3333_v18 = vld [vmem:[#allocation11 + $0x20] sm:$0xff] }
 0x359   :  { %5574 = vmatpush1.bf16.msra.mxu0 %v5573_v28  ;;  %v2078_v28 = vld [vmem:[#allocation8 + $0x1df8] sm:$0xff]  ;;  %v5841_v0 = vpack.c.bf16 %v2061_v21, %v2053_v19  ;;  %v3330_v17 = vld [vmem:[#allocation11 + $0x8] sm:$0xff] }
 0x35a   :  { %5576 = vmatprep.subr.bf16.mxu0 %v5575_v38  ;;  %v2091_v38 = vld [vmem:[#allocation8 + $0x1e60] sm:$0xff]  ;;  %v5843_v40 = vpack.c.bf16 %v2078_v28, %v2070_v23  ;;  %v2117_v19 = vld [vmem:[#allocation8 + $0x1f30] sm:$0xff]  ;;  %v2134_v23 = vld [vmem:[#allocation8 + $0x1fb8] sm:$0xff] }
 0x35b   :  { %5826 = vmatpush1.bf16.msra.mxu1 %v5825_v39  ;;  %v2108_v39 = vld [vmem:[#allocation8 + $0x1ee8] sm:$0xff]  ;;  %v5593_v44 = vpack.c.bf16 %v2091_v38, %v2083_v36  ;;  %v2125_v21 = vld [vmem:[#allocation8 + $0x1f70] sm:$0xff]  ;;  %v2142_v28 = vld [vmem:[#allocation8 + $0x1ff8] sm:$0xff] }
 0x35c   :  { %5828 = vmatprep.subr.bf16.mxu1 %v5827_v42  ;;  %v2077_v42 = vld [vmem:[#allocation8 + $0x1df0] sm:$0xff]  ;;  %v5595_v46 = vpack.c.bf16 %v2108_v39, %v2100_v13  ;;  %v3329_v36 = vld [vmem:[#allocation11] sm:$0xff]  ;;  %v3332_v38 = vld [vmem:[#allocation11 + $0x18] sm:$0xff]  ;;  %v5857_v13 = vpack.c.bf16 %v2125_v21, %v2117_v19 }
 0x35d   :  { %5578 = vmatpush1.bf16.msra.mxu0 %v5577_v45  ;;  %v2094_v45 = vld [vmem:[#allocation8 + $0x1e78] sm:$0xff]  ;;  %v5845_v49 = vpack.c.bf16 %v2077_v42, %v2069_v41  ;;  %v3336_v39 = vld [vmem:[#allocation11 + $0x38] sm:$0xff]  ;;  %v5859_v41 = vpack.c.bf16 %v2142_v28, %v2134_v23  ;;  %v2133_v42 = vld [vmem:[#allocation8 + $0x1fb0] sm:$0xff] }
 0x35e   :  { %5580 = vmatprep.subr.bf16.mxu0 %v5579_v48  ;;  %v2107_v48 = vld [vmem:[#allocation8 + $0x1ee0] sm:$0xff]  ;;  %v5847_v55 = vpack.c.bf16 %v2094_v45, %v2086_v12  ;;  %v5865_v12 = vpack.c.bf16 %v3332_v38, %v3329_v36  ;;  %v3379_v45 = vld [vmem:[#allocation11 + $0x190] sm:$0xff]  ;;  %v3346_v21 = vld [vmem:[#allocation11 + $0x88] sm:$0xff] }
 0x35f   :  { %5830 = vmatpush1.bf16.msra.mxu1 %v5829_v53  ;;  %v2124_v53 = vld [vmem:[#allocation8 + $0x1f68] sm:$0xff]  ;;  %v5597_v59 = vpack.c.bf16 %v2107_v48, %v2099_v47  ;;  %v3335_v48 = vld [vmem:[#allocation11 + $0x30] sm:$0xff]  ;;  %v3400_v28 = vld [vmem:[#allocation11 + $0x238] sm:$0xff] }
 0x360   :  { %5832 = vmatprep.subr.bf16.mxu1 %v5831_v58  ;;  %v2093_v58 = vld [vmem:[#allocation8 + $0x1e70] sm:$0xff]  ;;  %v5599_v62 = vpack.c.bf16 %v2124_v53, %v2116_v50  ;;  %v3343_v19 = vld [vmem:[#allocation11 + $0x70] sm:$0xff]  ;;  %v3397_v23 = vld [vmem:[#allocation11 + $0x220] sm:$0xff] }
 0x361   :  { %5582 = vmatpush1.bf16.msra.mxu0 %v5581_v60  ;;  %v2110_v60 = vld [vmem:[#allocation8 + $0x1ef8] sm:$0xff]  ;;  %v5849_v5 = vpack.c.bf16 %v2093_v58, %v2085_v57  ;;  %v3356_v36 = vld [vmem:[#allocation11 + $0xd8] sm:$0xff]  ;;  %v6129_v38 = vpack.c.bf16 %v3346_v21, %v3343_v19  ;;  %v3421_v19 = vld [vmem:[#allocation11 + $0x2e0] sm:$0xff] }
 0x362   :  { %5584 = vmatprep.subr.bf16.mxu0 %v5583_v3  ;;  %v2123_v3 = vld [vmem:[#allocation8 + $0x1f60] sm:$0xff]  ;;  %v5851_v1 = vpack.c.bf16 %v2110_v60, %v2102_v26  ;;  %v3331_v58 = vld [vmem:[#allocation11 + $0x10] sm:$0xff]  ;;  %v3385_v60 = vld [vmem:[#allocation11 + $0x1c0] sm:$0xff] }
 0x363   :  { %5834 = vmatpush1.bf16.msra.mxu1 %v5833_v6  ;;  %v2140_v6 = vld [vmem:[#allocation8 + $0x1fe8] sm:$0xff]  ;;  %v5601_v10 = vpack.c.bf16 %v2123_v3, %v2115_v63  ;;  %v3424_v21 = vld [vmem:[#allocation11 + $0x2f8] sm:$0xff] }
 0x364   :  { %5836 = vmatprep.subr.bf16.mxu1 %v5835_v8  ;;  %v2101_v8 = vld [vmem:[#allocation8 + $0x1eb0] sm:$0xff]  ;;  %v5603_v31 = vpack.c.bf16 %v2140_v6, %v2132_v32  ;;  %v3341_v3 = vld [vmem:[#allocation11 + $0x60] sm:$0xff]  ;;  %v3348_v6 = vld [vmem:[#allocation11 + $0x98] sm:$0xff] }
 0x365   :  { %5586 = vmatpush1.bf16.msra.mxu0 %v5585_v11  ;;  %v2118_v11 = vld [vmem:[#allocation8 + $0x1f38] sm:$0xff] }
 0x366   :  { %5588 = vmatprep.subr.bf16.mxu0 %v5587_v2  ;;  %v2131_v2 = vld [vmem:[#allocation8 + $0x1fa0] sm:$0xff] }
 0x367   :  { %5838 = vmatpush1.bf16.msra.mxu1 %v5837_v16  ;;  %v5853_v16 = vpack.c.bf16 %v2109_v9, %v2101_v8  ;;  %v3337_v9 = vld [vmem:[#allocation11 + $0x40] sm:$0xff] }
 0x368   :  { %5840 = vmatprep.subr.bf16.mxu1 %v5839_v56  ;;  %v5855_v56 = vpack.c.bf16 %v2126_v20, %v2118_v11  ;;  %v3391_v20 = vld [vmem:[#allocation11 + $0x1f0] sm:$0xff] }
 0x369   :  { %5590 = vmatpush1.bf16.msra.mxu0 %v5589_v22  ;;  %v5605_v22 = vpack.c.bf16 %v2139_v14, %v2131_v2  ;;  %v3347_v14 = vld [vmem:[#allocation11 + $0x90] sm:$0xff] }
 0x36a   :  { %5592 = vmatprep.subr.bf16.mxu0 %v5591_v29  ;;  %v5863_v29 = vpack.c.bf16 %v3333_v18, %v3330_v17  ;;  %v3354_v17 = vld [vmem:[#allocation11 + $0xc8] sm:$0xff]  ;;  %v3357_v18 = vld [vmem:[#allocation11 + $0xe0] sm:$0xff] }
 0x36b   :  { %5842 = vmatpush1.bf16.msra.mxu1 %v5841_v0  ;;  %v6258_v0 = vadd.f32 %v6758_v61, %v2152_v15  ;;  %v3342_v61 = vld [vmem:[#allocation11 + $0x68] sm:$0xff] }
 0x36c   :  { %5844 = vmatprep.subr.bf16.mxu1 %v5843_v40  ;;  %v3339_v40 = vld [vmem:[#allocation11 + $0x50] sm:$0xff]  ;;  %v3350_v15 = vld [vmem:[#allocation11 + $0xa8] sm:$0xff] }
 0x36d   :  { %5594 = vmatpush1.bf16.msra.mxu0 %v5593_v44  ;;  %v2141_v44 = vld [vmem:[#allocation8 + $0x1ff0] sm:$0xff]  ;;  %v5867_v47 = vpack.c.bf16 %v3339_v40, %v3336_v39  ;;  %v3322_v50 = vmax.f32 %v6258_v0, 0.0  ;;  %v3360_v0 = vld [vmem:[#allocation11 + $0xf8] sm:$0xff]  ;;  %v6131_v39 = vpack.c.bf16 %v3400_v28, %v3397_v23  ;;  %v3349_v40 = vld [vmem:[#allocation11 + $0xa0] sm:$0xff] }
 0x36e   :  { %5596 = vmatprep.subr.bf16.mxu0 %v5595_v46  ;;  %v3382_v46 = vld [vmem:[#allocation11 + $0x1a8] sm:$0xff]  ;;  %v5861_v53 = vpack.c.bf16 %v2141_v44, %v2133_v42  ;;  %v3403_v44 = vld [vmem:[#allocation11 + $0x250] sm:$0xff]  ;;  %v3377_v23 = vld [vmem:[#allocation11 + $0x180] sm:$0xff] }
 0x36f   :  { %5846 = vmatpush1.bf16.msra.mxu1 %v5845_v49  ;;  %v3338_v49 = vld [vmem:[#allocation11 + $0x48] sm:$0xff]  ;;  %v6119_v57 = vpack.c.bf16 %v3382_v46, %v3379_v45  ;;  %v3359_v46 = vld [vmem:[#allocation11 + $0xf0] sm:$0xff]  ;;  %v3380_v28 = vld [vmem:[#allocation11 + $0x198] sm:$0xff] }
 0x370   :  { %5848 = vmatprep.subr.bf16.mxu1 %v5847_v55  ;;  %v3345_v55 = vld [vmem:[#allocation11 + $0x80] sm:$0xff]  ;;  %v5869_v26 = vpack.c.bf16 %v3338_v49, %v3335_v48  ;;  %v3366_v49 = vld [vmem:[#allocation11 + $0x128] sm:$0xff] }
 0x371   :  { %5598 = vmatpush1.bf16.msra.mxu0 %v5597_v59  ;;  %v3334_v59 = vld [vmem:[#allocation11 + $0x28] sm:$0xff]  ;;  %v5871_v63 = vpack.c.bf16 %v3345_v55, %v3342_v61  ;;  %v3355_v61 = vld [vmem:[#allocation11 + $0xd0] sm:$0xff] }
 0x372   :  { %5600 = vmatprep.subr.bf16.mxu0 %v5599_v62  ;;  %v3388_v62 = vld [vmem:[#allocation11 + $0x1d8] sm:$0xff]  ;;  %v6121_v32 = vpack.c.bf16 %v3334_v59, %v3331_v58  ;;  %v3358_v55 = vld [vmem:[#allocation11 + $0xe8] sm:$0xff]  ;;  %v3409_v58 = vld [vmem:[#allocation11 + $0x280] sm:$0xff] }
 0x373   :  { %5850 = vmatpush1.bf16.msra.mxu1 %v5849_v5  ;;  %v3344_v5 = vld [vmem:[#allocation11 + $0x78] sm:$0xff]  ;;  %v6123_v8 = vpack.c.bf16 %v3388_v62, %v3385_v60  ;;  %v3365_v60 = vld [vmem:[#allocation11 + $0x120] sm:$0xff] }
 0x374   :  { %5852 = vmatprep.subr.bf16.mxu1 %v5851_v1  ;;  %v3351_v1 = vld [vmem:[#allocation11 + $0xb0] sm:$0xff]  ;;  %v5873_v11 = vpack.c.bf16 %v3344_v5, %v3341_v3  ;;  %v3412_v59 = vld [vmem:[#allocation11 + $0x298] sm:$0xff] }
 0x375   :  { %5602 = vmatpush1.bf16.msra.mxu0 %v5601_v10  ;;  %v3340_v10 = vld [vmem:[#allocation11 + $0x58] sm:$0xff]  ;;  %v5875_v2 = vpack.c.bf16 %v3351_v1, %v3348_v6  ;;  %v3375_v5 = vld [vmem:[#allocation11 + $0x170] sm:$0xff]  ;;  %v3361_v6 = vld [vmem:[#allocation11 + $0x100] sm:$0xff] }
 0x376   :  { %5604 = vmatprep.subr.bf16.mxu0 %v5603_v31  ;;  %v3394_v31 = vld [vmem:[#allocation11 + $0x208] sm:$0xff]  ;;  %v3368_v62 = vld [vmem:[#allocation11 + $0x138] sm:$0xff] }
 0x377   :  { %5854 = vmatpush1.bf16.msra.mxu1 %v5853_v16  ;;  %v6125_v16 = vpack.c.bf16 %v3340_v10, %v3337_v9  ;;  %v3372_v3 = vld [vmem:[#allocation11 + $0x158] sm:$0xff]  ;;  %v3415_v9 = vld [vmem:[#allocation11 + $0x2b0] sm:$0xff]  ;;  %v3418_v10 = vld [vmem:[#allocation11 + $0x2c8] sm:$0xff] }
 0x378   :  { %5856 = vmatprep.subr.bf16.mxu1 %v5855_v56  ;;  %v6127_v56 = vpack.c.bf16 %v3394_v31, %v3391_v20  ;;  %v3364_v1 = vld [vmem:[#allocation11 + $0x118] sm:$0xff]  ;;  %v3371_v20 = vld [vmem:[#allocation11 + $0x150] sm:$0xff]  ;;  %v3374_v31 = vld [vmem:[#allocation11 + $0x168] sm:$0xff] }
 0x379   :  { %5606 = vmatpush1.bf16.msra.mxu0 %v5605_v22  ;;  %v5877_v22 = vpack.c.bf16 %v3350_v15, %v3347_v14  ;;  %v3378_v14 = vld [vmem:[#allocation11 + $0x188] sm:$0xff]  ;;  %v3381_v15 = vld [vmem:[#allocation11 + $0x1a0] sm:$0xff] }
 0x37a   :  { %5864 = vmatprep.subr.bf16.mxu0 %v5863_v29  ;;  %v5879_v29 = vpack.c.bf16 %v3357_v18, %v3354_v17  ;;  %v3367_v17 = vld [vmem:[#allocation11 + $0x130] sm:$0xff]  ;;  %v3370_v18 = vld [vmem:[#allocation11 + $0x148] sm:$0xff] }
 0x37b   :  { %5858 = vmatpush1.bf16.msra.mxu1 %v5857_v13  ;;  %v3363_v13 = vld [vmem:[#allocation11 + $0x110] sm:$0xff] }
 0x37c   :  { %3031 = vmatmul.mubr.f32.vlgmr.msra.gmra.mrb[6].mxu0 %v6738_v34  ;;  %5860 = vmatprep.subr.bf16.mxu1 %v5859_v41  ;;  %v3352_v41 = vld [vmem:[#allocation11 + $0xb8] sm:$0xff]  ;;  %v5883_v45 = vpack.c.bf16 %v3363_v13, %v3360_v0  ;;  %v6147_v0 = vpack.c.bf16 %v3424_v21, %v3421_v19  ;;  %v3373_v13 = vld [vmem:[#allocation11 + $0x160] sm:$0xff] }
 0x37d   :  { %5866 = vmatpush1.bf16.msra.mxu0 %v5865_v12  ;;  %3794 = vmatprep.mubr.f32.mxu0 %v3322_v50  ;;  %v3406_v12 = vld [vmem:[#allocation11 + $0x268] sm:$0xff]  ;;  %v6133_v48 = vpack.c.bf16 %v3352_v41, %v3349_v40  ;;  %v2160_v40 = vrot.slane %v6764_v7, %v517_v54  ;;  %v5897_v41 = vpack.c.bf16 %v3380_v28, %v3377_v23  ;;  %v3493_v19 = vld [vmem:[#allocation11 + $0x520] sm:$0xff]  ;;  %v3496_v21 = vld [vmem:[#allocation11 + $0x538] sm:$0xff] }
 0x37e   :  { %5868 = vmatprep.subr.bf16.mxu0 %v5867_v47  ;;  %v3362_v47 = vld [vmem:[#allocation11 + $0x108] sm:$0xff]  ;;  %v3401_v23 = vld [vmem:[#allocation11 + $0x240] sm:$0xff]  ;;  %v3404_v28 = vld [vmem:[#allocation11 + $0x258] sm:$0xff] }
 0x37f   :  { %5862 = vmatpush1.bf16.msra.mxu1 %v5861_v53  ;;  %v6135_v53 = vpack.c.bf16 %v3406_v12, %v3403_v44  ;;  %v3478_v44 = vld [vmem:[#allocation11 + $0x4a8] sm:$0xff]  ;;  %v6780_v54 = vadd.f32 %v6762_v37, %v2160_v40  ;;  %v3499_v40 = vld [vmem:[#allocation11 + $0x550] sm:$0xff] }
 0x380   :  { %6120 = vmatprep.subr.bf16.mxu1 %v6119_v57  ;;  %v5885_v57 = vpack.c.bf16 %v3362_v47, %v3359_v46  ;;  %v3386_v46 = vld [vmem:[#allocation11 + $0x1c8] sm:$0xff] }
 0x381   :  { %5870 = vmatpush1.bf16.msra.mxu0 %v5869_v26  ;;  %v3324_v37 = vmax.f32 %v6780_v54, 0.0 }
 0x382   :  { %3315 = vmatmul.mubr.f32.vlgmr.msra.gmra.mrb[8].mxu1 %v6738_v34  ;;  %5872 = vmatprep.subr.bf16.mxu0 %v5871_v63  ;;  %v3353_v34 = vld [vmem:[#allocation11 + $0xc0] sm:$0xff]  ;;  %v6137_v63 = vpack.c.bf16 %v3358_v55, %v3355_v61  ;;  %v3427_v61 = vld [vmem:[#allocation11 + $0x310] sm:$0xff]  ;;  %v3430_v55 = vld [vmem:[#allocation11 + $0x328] sm:$0xff] }
 0x383   :  { %6122 = vmatpush3.bf16.msra.mxu1 %v6121_v32  ;;  %4078 = vmatprep.mubr.f32.mxu1 %v3322_v50  ;;  %v5881_v42 = vpack.c.bf16 %v3356_v36, %v3353_v34  ;;  %v3369_v50 = vld [vmem:[#allocation11 + $0x140] sm:$0xff]  ;;  %v6139_v32 = vpack.c.bf16 %v3412_v59, %v3409_v58  ;;  %v3384_v34 = vld [vmem:[#allocation11 + $0x1b8] sm:$0xff]  ;;  %v3387_v36 = vld [vmem:[#allocation11 + $0x1d0] sm:$0xff] }
 0x384   :  { %6124 = vmatprep.subr.bf16.mxu1 %v6123_v8  ;;  %v5887_v26 = vpack.c.bf16 %v3369_v50, %v3366_v49  ;;  %v5889_v8 = vpack.c.bf16 %v3368_v62, %v3365_v60  ;;  %v5899_v12 = vpack.c.bf16 %v3387_v36, %v3384_v34  ;;  %v3393_v49 = vld [vmem:[#allocation11 + $0x200] sm:$0xff]  ;;  %v3484_v59 = vld [vmem:[#allocation11 + $0x4d8] sm:$0xff]  ;;  %v3411_v36 = vld [vmem:[#allocation11 + $0x290] sm:$0xff] }
 0x385   :  { %5874 = vmatpush1.bf16.msra.mxu0 %v5873_v11  ;;  %v5891_v11 = vpack.c.bf16 %v3375_v5, %v3372_v3  ;;  %v3481_v58 = vld [vmem:[#allocation11 + $0x4c0] sm:$0xff]  ;;  %v3392_v62 = vld [vmem:[#allocation11 + $0x1f8] sm:$0xff] }
 0x386   :  { %5876 = vmatprep.subr.bf16.mxu0 %v5875_v2  ;;  %v6141_v2 = vpack.c.bf16 %v3364_v1, %v3361_v6  ;;  %v3389_v60 = vld [vmem:[#allocation11 + $0x1e0] sm:$0xff]  ;;  %v3396_v3 = vld [vmem:[#allocation11 + $0x218] sm:$0xff] }
 0x387   :  { %6126 = vmatpush3.bf16.msra.mxu1 %v6125_v16  ;;  %v6143_v16 = vpack.c.bf16 %v3418_v10, %v3415_v9  ;;  %v3433_v6 = vld [vmem:[#allocation11 + $0x340] sm:$0xff]  ;;  %v3436_v1 = vld [vmem:[#allocation11 + $0x358] sm:$0xff]  ;;  %v3487_v9 = vld [vmem:[#allocation11 + $0x4f0] sm:$0xff] }
 0x388   :  { %6128 = vmatprep.subr.bf16.mxu1 %v6127_v56  ;;  %v5893_v56 = vpack.c.bf16 %v3374_v31, %v3371_v20  ;;  %v3490_v10 = vld [vmem:[#allocation11 + $0x508] sm:$0xff]  ;;  %v3395_v20 = vld [vmem:[#allocation11 + $0x210] sm:$0xff]  ;;  %v3408_v34 = vld [vmem:[#allocation11 + $0x278] sm:$0xff] }
 0x389   :  { %5878 = vmatpush1.bf16.msra.mxu0 %v5877_v22  ;;  %v5895_v22 = vpack.c.bf16 %v3381_v15, %v3378_v14  ;;  %v3398_v31 = vld [vmem:[#allocation11 + $0x228] sm:$0xff]  ;;  %v3405_v15 = vld [vmem:[#allocation11 + $0x260] sm:$0xff] }
 0x38a   :  { %5880 = vmatprep.subr.bf16.mxu0 %v5879_v29  ;;  %v6145_v29 = vpack.c.bf16 %v3370_v18, %v3367_v17  ;;  %v3402_v14 = vld [vmem:[#allocation11 + $0x248] sm:$0xff]  ;;  %v3439_v17 = vld [vmem:[#allocation11 + $0x370] sm:$0xff] }
 0x38b   :  { %6130 = vmatpush3.bf16.msra.mxu1 %v6129_v38  ;;  %v2148_v38 = vrot.slane %v6764_v7, %v6666_v30  ;;  %v3442_v18 = vld [vmem:[#allocation11 + $0x388] sm:$0xff] }
 0x38c   :  { %6132 = vmatprep.subr.bf16.mxu1 %v6131_v39  ;;  %v3376_v39 = vld [vmem:[#allocation11 + $0x178] sm:$0xff] }
 0x38d   :  { %5882 = vmatpush1.bf16.msra.mxu0 %v5881_v42  ;;  %v3475_v42 = vld [vmem:[#allocation11 + $0x490] sm:$0xff]  ;;  %v6149_v47 = vpack.c.bf16 %v3376_v39, %v3373_v13  ;;  %v6777_v50 = vadd.f32 %v6756_v43, %v2148_v38  ;;  %v6163_v38 = vpack.c.bf16 %v3496_v21, %v3493_v19  ;;  %v3448_v13 = vld [vmem:[#allocation11 + $0x3b8] sm:$0xff]  ;;  %v5913_v39 = vpack.c.bf16 %v3404_v28, %v3401_v23  ;;  %v3425_v21 = vld [vmem:[#allocation11 + $0x300] sm:$0xff] }
 0x38e   :  { %5884 = vmatprep.subr.bf16.mxu0 %v5883_v45  ;;  %v3383_v45 = vld [vmem:[#allocation11 + $0x1b0] sm:$0xff]  ;;  %v3432_v28 = vld [vmem:[#allocation11 + $0x338] sm:$0xff] }
 0x38f   :  { %6134 = vmatpush3.bf16.msra.mxu1 %v6133_v48  ;;  %v3390_v48 = vld [vmem:[#allocation11 + $0x1e8] sm:$0xff]  ;;  %v3399_v43 = vld [vmem:[#allocation11 + $0x230] sm:$0xff]  ;;  %v3321_v5 = vmax.f32 %v6777_v50, 0.0 }
 0x390   :  { %6136 = vmatprep.subr.bf16.mxu1 %v6135_v53  ;;  %v6151_v53 = vpack.c.bf16 %v3478_v44, %v3475_v42  ;;  %v5915_v42 = vpack.c.bf16 %v3411_v36, %v3408_v34  ;;  %v3407_v44 = vld [vmem:[#allocation11 + $0x270] sm:$0xff]  ;;  %v2156_v34 = vrot.slane %v6764_v7, %v6688_v51 }
 0x391   :  { %5886 = vmatpush1.bf16.msra.mxu0 %v5885_v57  ;;  %v5901_v57 = vpack.c.bf16 %v3386_v46, %v3383_v45  ;;  %v3414_v46 = vld [vmem:[#allocation11 + $0x2a8] sm:$0xff] }
 0x392   :  { %5888 = vmatprep.subr.bf16.mxu0 %v5887_v26  ;;  %v5903_v26 = vpack.c.bf16 %v3393_v49, %v3390_v48  ;;  %v3451_v49 = vld [vmem:[#allocation11 + $0x3d0] sm:$0xff] }
 0x393   :  { %6138 = vmatpush3.bf16.msra.mxu1 %v6137_v63  ;;  %v6153_v63 = vpack.c.bf16 %v3430_v55, %v3427_v61  ;;  %v3505_v55 = vld [vmem:[#allocation11 + $0x580] sm:$0xff] }
 0x394   :  { %6140 = vmatprep.subr.bf16.mxu1 %v6139_v32  ;;  %v6155_v32 = vpack.c.bf16 %v3484_v59, %v3481_v58  ;;  %v3413_v59 = vld [vmem:[#allocation11 + $0x2a0] sm:$0xff] }
 0x395   :  { %5890 = vmatpush1.bf16.msra.mxu0 %v5889_v8  ;;  %v5905_v8 = vpack.c.bf16 %v3392_v62, %v3389_v60  ;;  %v3420_v62 = vld [vmem:[#allocation11 + $0x2d8] sm:$0xff] }
 0x396   :  { %5892 = vmatprep.subr.bf16.mxu0 %v5891_v11  ;;  %v5907_v11 = vpack.c.bf16 %v3399_v43, %v3396_v3  ;;  %v3457_v43 = vld [vmem:[#allocation11 + $0x400] sm:$0xff] }
 0x397   :  { %6142 = vmatpush3.bf16.msra.mxu1 %v6141_v2  ;;  %v6157_v2 = vpack.c.bf16 %v3436_v1, %v3433_v6  ;;  %v3511_v1 = vld [vmem:[#allocation11 + $0x5b0] sm:$0xff] }
 0x398   :  { %6144 = vmatprep.subr.bf16.mxu1 %v6143_v16  ;;  %v6159_v16 = vpack.c.bf16 %v3490_v10, %v3487_v9  ;;  %v3419_v10 = vld [vmem:[#allocation11 + $0x2d0] sm:$0xff] }
 0x399   :  { %5894 = vmatpush1.bf16.msra.mxu0 %v5893_v56  ;;  %v5909_v56 = vpack.c.bf16 %v3398_v31, %v3395_v20  ;;  %v3426_v31 = vld [vmem:[#allocation11 + $0x308] sm:$0xff] }
 0x39a   :  { %5896 = vmatprep.subr.bf16.mxu0 %v5895_v22  ;;  %v5911_v22 = vpack.c.bf16 %v3405_v15, %v3402_v14  ;;  %v3463_v15 = vld [vmem:[#allocation11 + $0x430] sm:$0xff] }
 0x39b   :  { %6146 = vmatpush3.bf16.msra.mxu1 %v6145_v29  ;;  %v6161_v29 = vpack.c.bf16 %v3442_v18, %v3439_v17  ;;  %v3517_v18 = vld [vmem:[#allocation11 + $0x5e0] sm:$0xff] }
 0x39c   :  { %6148 = vmatprep.subr.bf16.mxu1 %v6147_v0  ;;  %v3445_v0 = vld [vmem:[#allocation11 + $0x3a0] sm:$0xff] }
 0x39d   :  { %5898 = vmatpush1.bf16.msra.mxu0 %v5897_v41  ;;  %v3502_v41 = vld [vmem:[#allocation11 + $0x568] sm:$0xff]  ;;  %v6165_v45 = vpack.c.bf16 %v3448_v13, %v3445_v0  ;;  %v3472_v0 = vld [vmem:[#allocation11 + $0x478] sm:$0xff] }
 0x39e   :  { %5900 = vmatprep.subr.bf16.mxu0 %v5899_v12  ;;  %v3410_v12 = vld [vmem:[#allocation11 + $0x288] sm:$0xff]  ;;  %v6167_v48 = vpack.c.bf16 %v3502_v41, %v3499_v40 }
 0x39f   :  { %6150 = vmatpush3.bf16.msra.mxu1 %v6149_v47  ;;  %v3417_v47 = vld [vmem:[#allocation11 + $0x2c0] sm:$0xff]  ;;  %v5917_v61 = vpack.c.bf16 %v3410_v12, %v3407_v44  ;;  %v3574_v40 = vld [vmem:[#allocation11 + $0x7a8] sm:$0xff] }
 0x3a0   :  { %6152 = vmatprep.subr.bf16.mxu1 %v6151_v53  ;;  %v3454_v53 = vld [vmem:[#allocation11 + $0x3e8] sm:$0xff]  ;;  %v5919_v58 = vpack.c.bf16 %v3417_v47, %v3414_v46  ;;  %v3441_v46 = vld [vmem:[#allocation11 + $0x380] sm:$0xff]  ;;  %v6791_v47 = vadd.f32 %v6760_v24, %v2156_v34  ;;  %v3444_v24 = vld [vmem:[#allocation11 + $0x398] sm:$0xff] }
 0x3a1   :  { %5902 = vmatpush1.bf16.msra.mxu0 %v5901_v57  ;;  %v3508_v57 = vld [vmem:[#allocation11 + $0x598] sm:$0xff]  ;;  %v6169_v60 = vpack.c.bf16 %v3454_v53, %v3451_v49  ;;  %v3434_v44 = vld [vmem:[#allocation11 + $0x348] sm:$0xff] }
 0x3a2   :  { %4079 = vmatmul.mubr.f32.vlgmr.msra.gmra.mrb[10].mxu1 %v3321_v5  ;;  %5904 = vmatprep.subr.bf16.mxu0 %v5903_v26  ;;  %v3416_v26 = vld [vmem:[#allocation11 + $0x2b8] sm:$0xff]  ;;  %v6171_v3 = vpack.c.bf16 %v3508_v57, %v3505_v55  ;;  %v3526_v49 = vld [vmem:[#allocation11 + $0x628] sm:$0xff] }
 0x3a3   :  { %6154 = vmatpush3.bf16.msra.mxu1 %v6153_v63  ;;  %4148 = vmatprep.mubr.f32.mxu1 %v3324_v37  ;;  %v3423_v63 = vld [vmem:[#allocation11 + $0x2f0] sm:$0xff]  ;;  %v5921_v6 = vpack.c.bf16 %v3416_v26, %v3413_v59  ;;  %v3580_v55 = vld [vmem:[#allocation11 + $0x7d8] sm:$0xff]  ;;  %v3598_v34 = vld [vmem:[#allocation11 + $0x868] sm:$0xff] }
 0x3a4   :  { %6156 = vmatprep.subr.bf16.mxu1 %v6155_v32  ;;  %v3460_v32 = vld [vmem:[#allocation11 + $0x418] sm:$0xff]  ;;  %v5923_v9 = vpack.c.bf16 %v3423_v63, %v3420_v62  ;;  %v3447_v26 = vld [vmem:[#allocation11 + $0x3b0] sm:$0xff]  ;;  %v3529_v62 = vld [vmem:[#allocation11 + $0x640] sm:$0xff] }
 0x3a5   :  { %5906 = vmatpush1.bf16.msra.mxu0 %v5905_v8  ;;  %v3514_v8 = vld [vmem:[#allocation11 + $0x5c8] sm:$0xff]  ;;  %v6173_v20 = vpack.c.bf16 %v3460_v32, %v3457_v43  ;;  %v3440_v59 = vld [vmem:[#allocation11 + $0x378] sm:$0xff]  ;;  %v5939_v43 = vpack.c.bf16 %v3447_v26, %v3444_v24  ;;  %v3443_v32 = vld [vmem:[#allocation11 + $0x390] sm:$0xff] }
 0x3a6   :  { %5908 = vmatprep.subr.bf16.mxu0 %v5907_v11  ;;  %v3422_v11 = vld [vmem:[#allocation11 + $0x2e8] sm:$0xff]  ;;  %v6175_v14 = vpack.c.bf16 %v3514_v8, %v3511_v1  ;;  %v3532_v63 = vld [vmem:[#allocation11 + $0x658] sm:$0xff]  ;;  %v3453_v8 = vld [vmem:[#allocation11 + $0x3e0] sm:$0xff] }
 0x3a7   :  { %6158 = vmatpush3.bf16.msra.mxu1 %v6157_v2  ;;  %v3429_v2 = vld [vmem:[#allocation11 + $0x320] sm:$0xff]  ;;  %v5925_v17 = vpack.c.bf16 %v3422_v11, %v3419_v10  ;;  %v3450_v1 = vld [vmem:[#allocation11 + $0x3c8] sm:$0xff]  ;;  %v3535_v11 = vld [vmem:[#allocation11 + $0x670] sm:$0xff] }
 0x3a8   :  { %6160 = vmatprep.subr.bf16.mxu1 %v6159_v16  ;;  %v3466_v16 = vld [vmem:[#allocation11 + $0x448] sm:$0xff]  ;;  %v5927_v19 = vpack.c.bf16 %v3429_v2, %v3426_v31  ;;  %v3589_v2 = vld [vmem:[#allocation11 + $0x820] sm:$0xff]  ;;  %v3607_v26 = vld [vmem:[#allocation11 + $0x8b0] sm:$0xff] }
 0x3a9   :  { %5910 = vmatpush1.bf16.msra.mxu0 %v5909_v56  ;;  %v3520_v56 = vld [vmem:[#allocation11 + $0x5f8] sm:$0xff]  ;;  %v6177_v23 = vpack.c.bf16 %v3466_v16, %v3463_v15  ;;  %v5943_v15 = vpack.c.bf16 %v3453_v8, %v3450_v1  ;;  %v3449_v16 = vld [vmem:[#allocation11 + $0x3c0] sm:$0xff] }
 0x3aa   :  { %5912 = vmatprep.subr.bf16.mxu0 %v5911_v22  ;;  %v3428_v22 = vld [vmem:[#allocation11 + $0x318] sm:$0xff]  ;;  %v6179_v36 = vpack.c.bf16 %v3520_v56, %v3517_v18  ;;  %v3459_v56 = vld [vmem:[#allocation11 + $0x410] sm:$0xff]  ;;  %v3613_v8 = vld [vmem:[#allocation11 + $0x8e0] sm:$0xff] }
 0x3ab   :  { %6162 = vmatpush3.bf16.msra.mxu1 %v6161_v29  ;;  %v3435_v29 = vld [vmem:[#allocation11 + $0x350] sm:$0xff]  ;;  %v5929_v13 = vpack.c.bf16 %v3428_v22, %v3425_v21  ;;  %v3456_v18 = vld [vmem:[#allocation11 + $0x3f8] sm:$0xff]  ;;  %v3541_v22 = vld [vmem:[#allocation11 + $0x6a0] sm:$0xff] }
 0x3ac   :  { %6164 = vmatprep.subr.bf16.mxu1 %v6163_v38  ;;  %v3469_v38 = vld [vmem:[#allocation11 + $0x460] sm:$0xff]  ;;  %v5931_v41 = vpack.c.bf16 %v3435_v29, %v3432_v28  ;;  %v3595_v29 = vld [vmem:[#allocation11 + $0x850] sm:$0xff] }
 0x3ad   :  { %5914 = vmatpush1.bf16.msra.mxu0 %v5913_v39  ;;  %v3571_v39 = vld [vmem:[#allocation11 + $0x790] sm:$0xff]  ;;  %v6181_v12 = vpack.c.bf16 %v3472_v0, %v3469_v38  ;;  %v3458_v0 = vld [vmem:[#allocation11 + $0x408] sm:$0xff] }
 0x3ae   :  { %5916 = vmatprep.subr.bf16.mxu0 %v5915_v42  ;;  %v3431_v42 = vld [vmem:[#allocation11 + $0x330] sm:$0xff]  ;;  %v6183_v7 = vpack.c.bf16 %v3574_v40, %v3571_v39  ;;  %v3465_v39 = vld [vmem:[#allocation11 + $0x440] sm:$0xff] }
 0x3af   :  { %6166 = vmatpush3.bf16.msra.mxu1 %v6165_v45  ;;  %v3438_v45 = vld [vmem:[#allocation11 + $0x368] sm:$0xff]  ;;  %v5933_v53 = vpack.c.bf16 %v3434_v44, %v3431_v42  ;;  %v3455_v38 = vld [vmem:[#allocation11 + $0x3f0] sm:$0xff] }
 0x3b0   :  { %6168 = vmatprep.subr.bf16.mxu1 %v6167_v48  ;;  %v3523_v48 = vld [vmem:[#allocation11 + $0x610] sm:$0xff]  ;;  %v5935_v57 = vpack.c.bf16 %v3441_v46, %v3438_v45  ;;  %v3550_v44 = vld [vmem:[#allocation11 + $0x6e8] sm:$0xff]  ;;  %v3601_v45 = vld [vmem:[#allocation11 + $0x880] sm:$0xff] }
 0x3b1   :  { %5918 = vmatpush1.bf16.msra.mxu0 %v5917_v61  ;;  %v3577_v61 = vld [vmem:[#allocation11 + $0x7c0] sm:$0xff]  ;;  %v6185_v50 = vpack.c.bf16 %v3526_v49, %v3523_v48  ;;  %v3547_v42 = vld [vmem:[#allocation11 + $0x6d0] sm:$0xff]  ;;  %v3604_v46 = vld [vmem:[#allocation11 + $0x898] sm:$0xff] }
 0x3b2   :  { %5920 = vmatprep.subr.bf16.mxu0 %v5919_v58  ;;  %v3437_v58 = vld [vmem:[#allocation11 + $0x360] sm:$0xff]  ;;  %v3464_v49 = vld [vmem:[#allocation11 + $0x438] sm:$0xff] }
 0x3b3   :  { %6170 = vmatpush3.bf16.msra.mxu1 %v6169_v60  ;;  %v6187_v60 = vpack.c.bf16 %v3580_v55, %v3577_v61  ;;  %v5937_v54 = vpack.c.bf16 %v3440_v59, %v3437_v58  ;;  %v3461_v48 = vld [vmem:[#allocation11 + $0x420] sm:$0xff]  ;;  %v3471_v61 = vld [vmem:[#allocation11 + $0x470] sm:$0xff]  ;;  %v6201_v55 = vpack.c.bf16 %v3550_v44, %v3547_v42  ;;  %v3556_v59 = vld [vmem:[#allocation11 + $0x718] sm:$0xff] }
 0x3b4   :  { %6172 = vmatprep.subr.bf16.mxu1 %v6171_v3  ;;  %v3586_v3 = vld [vmem:[#allocation11 + $0x808] sm:$0xff]  ;;  %v3553_v58 = vld [vmem:[#allocation11 + $0x700] sm:$0xff]  ;;  %v5953_v24 = vpack.c.bf16 %v3464_v49, %v3461_v48 }
 0x3b5   :  { %5922 = vmatpush1.bf16.msra.mxu0 %v5921_v6  ;;  %v3446_v6 = vld [vmem:[#allocation11 + $0x3a8] sm:$0xff] }
 0x3b6   :  { %5924 = vmatprep.subr.bf16.mxu0 %v5923_v9  ;;  %v6189_v9 = vpack.c.bf16 %v3532_v63, %v3529_v62  ;;  %v5941_v31 = vpack.c.bf16 %v3446_v6, %v3443_v32  ;;  %v3467_v62 = vld [vmem:[#allocation11 + $0x450] sm:$0xff]  ;;  %v3470_v63 = vld [vmem:[#allocation11 + $0x468] sm:$0xff] }
 0x3b7   :  { %6174 = vmatpush3.bf16.msra.mxu1 %v6173_v20  ;;  %v3538_v20 = vld [vmem:[#allocation11 + $0x688] sm:$0xff]  ;;  %v3559_v32 = vld [vmem:[#allocation11 + $0x730] sm:$0xff]  ;;  %v5957_v1 = vpack.c.bf16 %v3470_v63, %v3467_v62 }
 0x3b8   :  { %6176 = vmatprep.subr.bf16.mxu1 %v6175_v14  ;;  %v3592_v14 = vld [vmem:[#allocation11 + $0x838] sm:$0xff]  ;;  %v3562_v6 = vld [vmem:[#allocation11 + $0x748] sm:$0xff] }
 0x3b9   :  { %5926 = vmatpush1.bf16.msra.mxu0 %v5925_v17  ;;  %v3452_v17 = vld [vmem:[#allocation11 + $0x3d8] sm:$0xff]  ;;  %v6195_v21 = vpack.c.bf16 %v3592_v14, %v3589_v2  ;;  %v3483_v2 = vld [vmem:[#allocation11 + $0x4d0] sm:$0xff]  ;;  %v6209_v14 = vpack.c.bf16 %v3562_v6, %v3559_v32 }
 0x3ba   :  { %5928 = vmatprep.subr.bf16.mxu0 %v5927_v19  ;;  %v6193_v19 = vpack.c.bf16 %v3538_v20, %v3535_v11  ;;  %v5945_v28 = vpack.c.bf16 %v3452_v17, %v3449_v16  ;;  %v3473_v11 = vld [vmem:[#allocation11 + $0x480] sm:$0xff]  ;;  %v3476_v20 = vld [vmem:[#allocation11 + $0x498] sm:$0xff] }
 0x3bb   :  { %6178 = vmatpush3.bf16.msra.mxu1 %v6177_v23  ;;  %v3544_v23 = vld [vmem:[#allocation11 + $0x6b8] sm:$0xff]  ;;  %v3565_v16 = vld [vmem:[#allocation11 + $0x760] sm:$0xff] }
 0x3bc   :  { %3795 = vmatmul.mubr.f32.vlgmr.msra.gmra.mrb[8].mxu0 %v3321_v5  ;;  %6180 = vmatprep.subr.bf16.mxu1 %v6179_v36  ;;  %v3323_v5 = vmax.f32 %v6791_v47, 0.0  ;;  %v5947_v36 = vpack.c.bf16 %v3459_v56, %v3456_v18  ;;  %v6197_v40 = vpack.c.bf16 %v3544_v23, %v3541_v22  ;;  %v3568_v17 = vld [vmem:[#allocation11 + $0x778] sm:$0xff]  ;;  %v5961_v18 = vpack.c.bf16 %v3476_v20, %v3473_v11  ;;  %v3667_v56 = vld [vmem:[#allocation11 + $0xa90] sm:$0xff]  ;;  %v3482_v23 = vld [vmem:[#allocation11 + $0x4c8] sm:$0xff] }
 0x3bd   :  { %5930 = vmatpush1.bf16.msra.mxu0 %v5929_v13  ;;  %3865 = vmatprep.mubr.f32.mxu0 %v3324_v37  ;;  %v3583_v37 = vld [vmem:[#allocation11 + $0x7f0] sm:$0xff]  ;;  %v3462_v13 = vld [vmem:[#allocation11 + $0x428] sm:$0xff] }
 0x3be   :  { %5932 = vmatprep.subr.bf16.mxu0 %v5931_v41  ;;  %v6191_v10 = vpack.c.bf16 %v3586_v3, %v3583_v37  ;;  %v6199_v41 = vpack.c.bf16 %v3598_v34, %v3595_v29  ;;  %v3477_v37 = vld [vmem:[#allocation11 + $0x4a0] sm:$0xff]  ;;  %v6205_v3 = vpack.c.bf16 %v3556_v59, %v3553_v58  ;;  %v3479_v22 = vld [vmem:[#allocation11 + $0x4b0] sm:$0xff]  ;;  %v6213_v34 = vpack.c.bf16 %v3568_v17, %v3565_v16 }
 0x3bf   :  { %6182 = vmatpush3.bf16.msra.mxu1 %v6181_v12  ;;  %v5949_v12 = vpack.c.bf16 %v3458_v0, %v3455_v38  ;;  %v3489_v29 = vld [vmem:[#allocation11 + $0x500] sm:$0xff]  ;;  %v5965_v38 = vpack.c.bf16 %v3482_v23, %v3479_v22 }
 0x3c0   :  { %6184 = vmatprep.subr.bf16.mxu1 %v6183_v7  ;;  %v5951_v7 = vpack.c.bf16 %v3465_v39, %v3462_v13  ;;  %v3485_v13 = vld [vmem:[#allocation11 + $0x4e0] sm:$0xff]  ;;  %v3488_v39 = vld [vmem:[#allocation11 + $0x4f8] sm:$0xff] }
 0x3c1   :  { %5934 = vmatpush1.bf16.msra.mxu0 %v5933_v53  ;;  %v3468_v53 = vld [vmem:[#allocation11 + $0x458] sm:$0xff]  ;;  %v5969_v42 = vpack.c.bf16 %v3488_v39, %v3485_v13  ;;  %v3539_v13 = vld [vmem:[#allocation11 + $0x690] sm:$0xff]  ;;  %v3542_v39 = vld [vmem:[#allocation11 + $0x6a8] sm:$0xff] }
 0x3c2   :  { %4149 = vmatmul.mubr.f32.vlgmr.msra.gmra.mrb[12].mxu1 %v3323_v5  ;;  %5936 = vmatprep.subr.bf16.mxu0 %v5935_v57  ;;  %v6203_v57 = vpack.c.bf16 %v3604_v46, %v3601_v45  ;;  %v3494_v45 = vld [vmem:[#allocation11 + $0x528] sm:$0xff] }
 0x3c3   :  { %6186 = vmatpush3.bf16.msra.mxu1 %v6185_v50  ;;  %v3610_v50 = vld [vmem:[#allocation11 + $0x8c8] sm:$0xff] }
 0x3c4   :  { %6188 = vmatprep.subr.bf16.mxu1 %v6187_v60  ;;  %v5955_v60 = vpack.c.bf16 %v3471_v61, %v3468_v53  ;;  %v3498_v46 = vld [vmem:[#allocation11 + $0x548] sm:$0xff]  ;;  %v3497_v53 = vld [vmem:[#allocation11 + $0x540] sm:$0xff]  ;;  %v3500_v61 = vld [vmem:[#allocation11 + $0x558] sm:$0xff] }
 0x3c5   :  { %5938 = vmatpush1.bf16.msra.mxu0 %v5937_v54  ;;  %v3474_v54 = vld [vmem:[#allocation11 + $0x488] sm:$0xff]  ;;  %v5977_v58 = vpack.c.bf16 %v3500_v61, %v3497_v53  ;;  %v3561_v61 = vld [vmem:[#allocation11 + $0x740] sm:$0xff] }
 0x3c6   :  { %5940 = vmatprep.subr.bf16.mxu0 %v5939_v43  ;;  %v6207_v43 = vpack.c.bf16 %v3610_v50, %v3607_v26  ;;  %v3506_v26 = vld [vmem:[#allocation11 + $0x588] sm:$0xff] }
 0x3c7   :  { %6190 = vmatpush3.bf16.msra.mxu1 %v6189_v9  ;;  %v3616_v9 = vld [vmem:[#allocation11 + $0x8f8] sm:$0xff]  ;;  %v3510_v50 = vld [vmem:[#allocation11 + $0x5a8] sm:$0xff] }
 0x3c8   :  { %6192 = vmatprep.subr.bf16.mxu1 %v6191_v10  ;;  %v5959_v10 = vpack.c.bf16 %v3477_v37, %v3474_v54  ;;  %v3509_v54 = vld [vmem:[#allocation11 + $0x5a0] sm:$0xff]  ;;  %v3512_v37 = vld [vmem:[#allocation11 + $0x5b8] sm:$0xff]  ;;  %v3558_v53 = vld [vmem:[#allocation11 + $0x728] sm:$0xff] }
 0x3c9   :  { %5942 = vmatpush1.bf16.msra.mxu0 %v5941_v31  ;;  %v3480_v31 = vld [vmem:[#allocation11 + $0x4b8] sm:$0xff]  ;;  %v5985_v32 = vpack.c.bf16 %v3512_v37, %v3509_v54  ;;  %v3570_v54 = vld [vmem:[#allocation11 + $0x788] sm:$0xff]  ;;  %v3573_v37 = vld [vmem:[#allocation11 + $0x7a0] sm:$0xff] }
 0x3ca   :  { %5944 = vmatprep.subr.bf16.mxu0 %v5943_v15  ;;  %v6211_v15 = vpack.c.bf16 %v3616_v9, %v3613_v8  ;;  %v3518_v8 = vld [vmem:[#allocation11 + $0x5e8] sm:$0xff] }
 0x3cb   :  { %6194 = vmatpush3.bf16.msra.mxu1 %v6193_v19  ;;  %v3670_v19 = vld [vmem:[#allocation11 + $0xaa8] sm:$0xff] }
 0x3cc   :  { %6196 = vmatprep.subr.bf16.mxu1 %v6195_v21  ;;  %v5963_v21 = vpack.c.bf16 %v3483_v2, %v3480_v31  ;;  %v3522_v9 = vld [vmem:[#allocation11 + $0x608] sm:$0xff]  ;;  %v3521_v31 = vld [vmem:[#allocation11 + $0x600] sm:$0xff]  ;;  %v3524_v2 = vld [vmem:[#allocation11 + $0x618] sm:$0xff] }
 0x3cd   :  { %5946 = vmatpush1.bf16.msra.mxu0 %v5945_v28  ;;  %v3486_v28 = vld [vmem:[#allocation11 + $0x4e8] sm:$0xff]  ;;  %v5993_v16 = vpack.c.bf16 %v3524_v2, %v3521_v31  ;;  %v3585_v2 = vld [vmem:[#allocation11 + $0x800] sm:$0xff] }
 0x3ce   :  { %5948 = vmatprep.subr.bf16.mxu0 %v5947_v36  ;;  %v6215_v36 = vpack.c.bf16 %v3670_v19, %v3667_v56  ;;  %v5967_v0 = vpack.c.bf16 %v3489_v29, %v3486_v28  ;;  %v3530_v56 = vld [vmem:[#allocation11 + $0x648] sm:$0xff]  ;;  %v3533_v28 = vld [vmem:[#allocation11 + $0x660] sm:$0xff]  ;;  %v3536_v29 = vld [vmem:[#allocation11 + $0x678] sm:$0xff] }
 0x3cf   :  { %6198 = vmatpush3.bf16.msra.mxu1 %v6197_v40  ;;  %v3492_v40 = vld [vmem:[#allocation11 + $0x518] sm:$0xff]  ;;  %v3534_v19 = vld [vmem:[#allocation11 + $0x668] sm:$0xff] }
 0x3d0   :  { %6200 = vmatprep.subr.bf16.mxu1 %v6199_v41  ;;  %v3495_v41 = vld [vmem:[#allocation11 + $0x530] sm:$0xff]  ;;  %v3582_v31 = vld [vmem:[#allocation11 + $0x7e8] sm:$0xff] }
 0x3d1   :  { %5950 = vmatpush1.bf16.msra.mxu0 %v5949_v12  ;;  %v5971_v44 = vpack.c.bf16 %v3495_v41, %v3492_v40  ;;  %v3491_v12 = vld [vmem:[#allocation11 + $0x510] sm:$0xff]  ;;  %v3546_v40 = vld [vmem:[#allocation11 + $0x6c8] sm:$0xff]  ;;  %v3549_v41 = vld [vmem:[#allocation11 + $0x6e0] sm:$0xff] }
 0x3d2   :  { %5952 = vmatprep.subr.bf16.mxu0 %v5951_v7  ;;  %v3501_v7 = vld [vmem:[#allocation11 + $0x560] sm:$0xff]  ;;  %v5973_v48 = vpack.c.bf16 %v3494_v45, %v3491_v12  ;;  %v6007_v47 = vpack.c.bf16 %v3549_v41, %v3546_v40  ;;  %v3552_v12 = vld [vmem:[#allocation11 + $0x6f8] sm:$0xff]  ;;  %v3555_v45 = vld [vmem:[#allocation11 + $0x710] sm:$0xff] }
 0x3d3   :  { %6202 = vmatpush3.bf16.msra.mxu1 %v6201_v55  ;;  %v5975_v49 = vpack.c.bf16 %v3501_v7, %v3498_v46  ;;  %v3504_v55 = vld [vmem:[#allocation11 + $0x578] sm:$0xff]  ;;  %v6011_v7 = vpack.c.bf16 %v3555_v45, %v3552_v12 }
 0x3d4   :  { %6204 = vmatprep.subr.bf16.mxu1 %v6203_v57  ;;  %v3507_v57 = vld [vmem:[#allocation11 + $0x590] sm:$0xff] }
 0x3d5   :  { %5954 = vmatpush1.bf16.msra.mxu0 %v5953_v24  ;;  %v5979_v59 = vpack.c.bf16 %v3507_v57, %v3504_v55  ;;  %v3503_v24 = vld [vmem:[#allocation11 + $0x570] sm:$0xff]  ;;  %v6015_v57 = vpack.c.bf16 %v3561_v61, %v3558_v53 }
 0x3d6   :  { %5956 = vmatprep.subr.bf16.mxu0 %v5955_v60  ;;  %v3513_v60 = vld [vmem:[#allocation11 + $0x5c0] sm:$0xff]  ;;  %v5981_v62 = vpack.c.bf16 %v3506_v26, %v3503_v24  ;;  %v3564_v24 = vld [vmem:[#allocation11 + $0x758] sm:$0xff]  ;;  %v3567_v26 = vld [vmem:[#allocation11 + $0x770] sm:$0xff] }
 0x3d7   :  { %6206 = vmatpush3.bf16.msra.mxu1 %v6205_v3  ;;  %v5983_v63 = vpack.c.bf16 %v3513_v60, %v3510_v50  ;;  %v3516_v3 = vld [vmem:[#allocation11 + $0x5d8] sm:$0xff]  ;;  %v6019_v60 = vpack.c.bf16 %v3567_v26, %v3564_v24 }
 0x3d8   :  { %6208 = vmatprep.subr.bf16.mxu1 %v6207_v43  ;;  %v3519_v43 = vld [vmem:[#allocation11 + $0x5f0] sm:$0xff] }
 0x3d9   :  { %5958 = vmatpush1.bf16.msra.mxu0 %v5957_v1  ;;  %v5987_v6 = vpack.c.bf16 %v3519_v43, %v3516_v3  ;;  %v3515_v1 = vld [vmem:[#allocation11 + $0x5d0] sm:$0xff]  ;;  %v6023_v43 = vpack.c.bf16 %v3573_v37, %v3570_v54  ;;  %v3617_v54 = vld [vmem:[#allocation11 + $0x900] sm:$0xff]  ;;  %v3620_v37 = vld [vmem:[#allocation11 + $0x918] sm:$0xff] }
 0x3da   :  { %5960 = vmatprep.subr.bf16.mxu0 %v5959_v10  ;;  %v3525_v10 = vld [vmem:[#allocation11 + $0x620] sm:$0xff]  ;;  %v5989_v11 = vpack.c.bf16 %v3518_v8, %v3515_v1  ;;  %v3576_v1 = vld [vmem:[#allocation11 + $0x7b8] sm:$0xff]  ;;  %v3579_v8 = vld [vmem:[#allocation11 + $0x7d0] sm:$0xff] }
 0x3db   :  { %6210 = vmatpush3.bf16.msra.mxu1 %v6209_v14  ;;  %v5991_v20 = vpack.c.bf16 %v3525_v10, %v3522_v9  ;;  %v3528_v14 = vld [vmem:[#allocation11 + $0x638] sm:$0xff]  ;;  %v6027_v10 = vpack.c.bf16 %v3579_v8, %v3576_v1 }
 0x3dc   :  { %6212 = vmatprep.subr.bf16.mxu1 %v6211_v15  ;;  %v3531_v15 = vld [vmem:[#allocation11 + $0x650] sm:$0xff]  ;;  %v3624_v1 = vld [vmem:[#allocation11 + $0x938] sm:$0xff] }
 0x3dd   :  { %5962 = vmatpush1.bf16.msra.mxu0 %v5961_v18  ;;  %v5995_v17 = vpack.c.bf16 %v3531_v15, %v3528_v14  ;;  %v3527_v18 = vld [vmem:[#allocation11 + $0x630] sm:$0xff]  ;;  %v6031_v15 = vpack.c.bf16 %v3585_v2, %v3582_v31  ;;  %v6057_v31 = vpack.c.bf16 %v3620_v37, %v3617_v54 }
 0x3de   :  { %5964 = vmatprep.subr.bf16.mxu0 %v5963_v21  ;;  %v3537_v21 = vld [vmem:[#allocation11 + $0x680] sm:$0xff]  ;;  %v5997_v22 = vpack.c.bf16 %v3530_v56, %v3527_v18  ;;  %v3588_v18 = vld [vmem:[#allocation11 + $0x818] sm:$0xff]  ;;  %v3591_v56 = vld [vmem:[#allocation11 + $0x830] sm:$0xff] }
 0x3df   :  { %6214 = vmatpush3.bf16.msra.mxu1 %v6213_v34  ;;  %v5999_v23 = vpack.c.bf16 %v3537_v21, %v3534_v19  ;;  %v3540_v34 = vld [vmem:[#allocation11 + $0x698] sm:$0xff]  ;;  %v6035_v21 = vpack.c.bf16 %v3591_v56, %v3588_v18  ;;  %v3625_v18 = vld [vmem:[#allocation11 + $0x940] sm:$0xff] }
 0x3e0   :  { %6216 = vmatprep.subr.bf16.mxu1 %v6215_v36  ;;  %v3543_v36 = vld [vmem:[#allocation11 + $0x6b0] sm:$0xff]  ;;  %v3628_v56 = vld [vmem:[#allocation11 + $0x958] sm:$0xff] }
 0x3e1   :  { %5966 = vmatpush1.bf16.msra.mxu0 %v5965_v38  ;;  %v6001_v38 = vpack.c.bf16 %v3536_v29, %v3533_v28  ;;  %v3594_v28 = vld [vmem:[#allocation11 + $0x848] sm:$0xff]  ;;  %v3597_v29 = vld [vmem:[#allocation11 + $0x860] sm:$0xff] }
 0x3e2   :  { %5968 = vmatprep.subr.bf16.mxu0 %v5967_v0  ;;  %v6003_v0 = vpack.c.bf16 %v3543_v36, %v3540_v34  ;;  %v6039_v36 = vpack.c.bf16 %v3597_v29, %v3594_v28  ;;  %v3679_v28 = vld [vmem:[#allocation11 + $0xaf0] sm:$0xff]  ;;  %v3682_v29 = vld [vmem:[#allocation11 + $0xb08] sm:$0xff] }
 0x3e5   :  { %5970 = vmatpush1.bf16.msra.mxu0 %v5969_v42  ;;  %v6005_v42 = vpack.c.bf16 %v3542_v39, %v3539_v13  ;;  %v3600_v13 = vld [vmem:[#allocation11 + $0x878] sm:$0xff]  ;;  %v3603_v39 = vld [vmem:[#allocation11 + $0x890] sm:$0xff] }
 0x3e6   :  { %5972 = vmatprep.subr.bf16.mxu0 %v5971_v44  ;;  %v3548_v44 = vld [vmem:[#allocation11 + $0x6d8] sm:$0xff]  ;;  %v6043_v41 = vpack.c.bf16 %v3603_v39, %v3600_v13  ;;  %v3631_v13 = vld [vmem:[#allocation11 + $0x970] sm:$0xff]  ;;  %v3634_v39 = vld [vmem:[#allocation11 + $0x988] sm:$0xff] }
 0x3e9   :  { %5974 = vmatpush1.bf16.msra.mxu0 %v5973_v48  ;;  %v3551_v48 = vld [vmem:[#allocation11 + $0x6f0] sm:$0xff] }
 0x3ea   :  { %5976 = vmatprep.subr.bf16.mxu0 %v5975_v49  ;;  %v3554_v49 = vld [vmem:[#allocation11 + $0x708] sm:$0xff] }
 0x3eb   :  { %v6013_v55 = vpack.c.bf16 %v3554_v49, %v3551_v48  ;;  %v3612_v48 = vld [vmem:[#allocation11 + $0x8d8] sm:$0xff]  ;;  %v3615_v49 = vld [vmem:[#allocation11 + $0x8f0] sm:$0xff] }
 0x3ec   :  { %v6051_v61 = vpack.c.bf16 %v3615_v49, %v3612_v48  ;;  %v3638_v48 = vld [vmem:[#allocation11 + $0x9a8] sm:$0xff] }
 0x3ed   :  { %5978 = vmatpush1.bf16.msra.mxu0 %v5977_v58  ;;  %v3557_v58 = vld [vmem:[#allocation11 + $0x720] sm:$0xff] }
 0x3ee   :  { %5980 = vmatprep.subr.bf16.mxu0 %v5979_v59  ;;  %v3560_v59 = vld [vmem:[#allocation11 + $0x738] sm:$0xff] }
 0x3ef   :  { %v6017_v50 = vpack.c.bf16 %v3560_v59, %v3557_v58  ;;  %v3618_v58 = vld [vmem:[#allocation11 + $0x908] sm:$0xff]  ;;  %v3621_v59 = vld [vmem:[#allocation11 + $0x920] sm:$0xff] }
 0x3f0   :  { %v6055_v26 = vpack.c.bf16 %v3621_v59, %v3618_v58  ;;  %v3645_v58 = vld [vmem:[#allocation11 + $0x9e0] sm:$0xff]  ;;  %v3691_v59 = vld [vmem:[#allocation11 + $0xb50] sm:$0xff] }
 0x3f1   :  { %5982 = vmatpush1.bf16.msra.mxu0 %v5981_v62  ;;  %v3563_v62 = vld [vmem:[#allocation11 + $0x750] sm:$0xff] }
 0x3f2   :  { %5984 = vmatprep.subr.bf16.mxu0 %v5983_v63  ;;  %v3566_v63 = vld [vmem:[#allocation11 + $0x768] sm:$0xff] }
 0x3f3   :  { %v6021_v3 = vpack.c.bf16 %v3566_v63, %v3563_v62 }
 0x3f5   :  { %5986 = vmatpush1.bf16.msra.mxu0 %v5985_v32  ;;  %v3569_v32 = vld [vmem:[#allocation11 + $0x780] sm:$0xff] }
 0x3f6   :  { %5988 = vmatprep.subr.bf16.mxu0 %v5987_v6  ;;  %v3572_v6 = vld [vmem:[#allocation11 + $0x798] sm:$0xff] }
 0x3f7   :  { %v6025_v9 = vpack.c.bf16 %v3572_v6, %v3569_v32  ;;  %v3619_v32 = vld [vmem:[#allocation11 + $0x910] sm:$0xff]  ;;  %v3622_v6 = vld [vmem:[#allocation11 + $0x928] sm:$0xff] }
 0x3f8   :  { %v6217_v2 = vpack.c.bf16 %v3622_v6, %v3619_v32  ;;  %v3648_v32 = vld [vmem:[#allocation11 + $0x9f8] sm:$0xff]  ;;  %v3651_v6 = vld [vmem:[#allocation11 + $0xa10] sm:$0xff] }
 0x3f9   :  { %5990 = vmatpush1.bf16.msra.mxu0 %v5989_v11  ;;  %v3575_v11 = vld [vmem:[#allocation11 + $0x7b0] sm:$0xff] }
 0x3fa   :  { %5992 = vmatprep.subr.bf16.mxu0 %v5991_v20  ;;  %v3578_v20 = vld [vmem:[#allocation11 + $0x7c8] sm:$0xff] }
 0x3fb   :  { %v6029_v14 = vpack.c.bf16 %v3578_v20, %v3575_v11  ;;  %v3676_v11 = vld [vmem:[#allocation11 + $0xad8] sm:$0xff] }
 0x3fc   :  { %3866 = vmatmul.mubr.f32.vlgmr.msra.gmra.mrb[8].mxu0 %v3323_v5  ;;  %v3545_v5 = vld [vmem:[#allocation11 + $0x6c0] sm:$0xff] }
 0x3fd   :  { %5994 = vmatpush1.bf16.msra.mxu0 %v5993_v16  ;;  %v6009_v46 = vpack.c.bf16 %v3548_v44, %v3545_v5  ;;  %v3581_v16 = vld [vmem:[#allocation11 + $0x7e0] sm:$0xff]  ;;  %v3606_v5 = vld [vmem:[#allocation11 + $0x8a8] sm:$0xff] }
 0x3fe   :  { %5996 = vmatprep.subr.bf16.mxu0 %v5995_v17  ;;  %v3584_v17 = vld [vmem:[#allocation11 + $0x7f8] sm:$0xff]  ;;  %v3609_v44 = vld [vmem:[#allocation11 + $0x8c0] sm:$0xff] }
 0x3ff   :  { %v6033_v19 = vpack.c.bf16 %v3584_v17, %v3581_v16  ;;  %v6047_v45 = vpack.c.bf16 %v3609_v44, %v3606_v5  ;;  %v3626_v17 = vld [vmem:[#allocation11 + $0x948] sm:$0xff]  ;;  %v3639_v5 = vld [vmem:[#allocation11 + $0x9b0] sm:$0xff]  ;;  %v3685_v44 = vld [vmem:[#allocation11 + $0xb20] sm:$0xff] }
 0x401   :  { %5998 = vmatpush1.bf16.msra.mxu0 %v5997_v22  ;;  %v3587_v22 = vld [vmem:[#allocation11 + $0x810] sm:$0xff] }
 0x402   :  { %6000 = vmatprep.subr.bf16.mxu0 %v5999_v23  ;;  %v3590_v23 = vld [vmem:[#allocation11 + $0x828] sm:$0xff] }
 0x403   :  { %v6037_v34 = vpack.c.bf16 %v3590_v23, %v3587_v22  ;;  %v3633_v23 = vld [vmem:[#allocation11 + $0x980] sm:$0xff] }
 0x405   :  { %6002 = vmatpush1.bf16.msra.mxu0 %v6001_v38  ;;  %v3593_v38 = vld [vmem:[#allocation11 + $0x840] sm:$0xff] }
 0x406   :  { %6004 = vmatprep.subr.bf16.mxu0 %v6003_v0  ;;  %v3596_v0 = vld [vmem:[#allocation11 + $0x858] sm:$0xff] }
 0x407   :  { %v6041_v40 = vpack.c.bf16 %v3596_v0, %v3593_v38  ;;  %v3629_v38 = vld [vmem:[#allocation11 + $0x960] sm:$0xff]  ;;  %v3632_v0 = vld [vmem:[#allocation11 + $0x978] sm:$0xff] }
 0x409   :  { %6006 = vmatpush1.bf16.msra.mxu0 %v6005_v42  ;;  %v3599_v42 = vld [vmem:[#allocation11 + $0x870] sm:$0xff] }
 0x40a   :  { %6008 = vmatprep.subr.bf16.mxu0 %v6007_v47  ;;  %v3602_v47 = vld [vmem:[#allocation11 + $0x888] sm:$0xff] }
 0x40b   :  { %v6045_v12 = vpack.c.bf16 %v3602_v47, %v3599_v42  ;;  %v6223_v47 = vpack.c.bf16 %v3682_v29, %v3679_v28  ;;  %v3655_v29 = vld [vmem:[#allocation11 + $0xa30] sm:$0xff] }
 0x40d   :  { %6010 = vmatpush1.bf16.msra.mxu0 %v6009_v46  ;;  %v3605_v46 = vld [vmem:[#allocation11 + $0x8a0] sm:$0xff] }
 0x40e   :  { %6012 = vmatprep.subr.bf16.mxu0 %v6011_v7  ;;  %v3608_v7 = vld [vmem:[#allocation11 + $0x8b8] sm:$0xff] }
 0x40f   :  { %v6049_v53 = vpack.c.bf16 %v3608_v7, %v3605_v46  ;;  %v6225_v46 = vpack.c.bf16 %v3634_v39, %v3631_v13  ;;  %v3635_v7 = vld [vmem:[#allocation11 + $0x990] sm:$0xff] }
 0x411   :  { %6014 = vmatpush1.bf16.msra.mxu0 %v6013_v55  ;;  %v3611_v55 = vld [vmem:[#allocation11 + $0x8d0] sm:$0xff] }
 0x412   :  { %6016 = vmatprep.subr.bf16.mxu0 %v6015_v57  ;;  %v3614_v57 = vld [vmem:[#allocation11 + $0x8e8] sm:$0xff] }
 0x413   :  { %v6053_v24 = vpack.c.bf16 %v3614_v57, %v3611_v55  ;;  %v3640_v55 = vld [vmem:[#allocation11 + $0x9b8] sm:$0xff]  ;;  %v3642_v57 = vld [vmem:[#allocation11 + $0x9c8] sm:$0xff] }
 0x414   :  { %v6071_v54 = vpack.c.bf16 %v3645_v58, %v3642_v57 }
 0x415   :  { %6018 = vmatpush1.bf16.msra.mxu0 %v6017_v50  ;;  %v6802_v50 = vld [vmem:[#allocation10] sm:$0xff] }
 0x416   :  { %6020 = vmatprep.subr.bf16.mxu0 %v6019_v60  ;;  %v2164_v60 = vrot.slane %v6802_v50, %v521_v27  ;;  %v2168_v62 = vrot.slane %v6802_v50, %v525_v52  ;;  %v2176_v27 = vrot.slane %v6802_v50, %v533_v33  ;;  %v3623_v52 = vld [vmem:[#allocation11 + $0x930] sm:$0xff] }
 0x419   :  { %6022 = vmatpush1.bf16.msra.mxu0 %v6021_v3 }
 0x41a   :  { %6024 = vmatprep.subr.bf16.mxu0 %v6023_v43 }
 0x41d   :  { %6026 = vmatpush1.bf16.msra.mxu0 %v6025_v9  ;;  %v3627_v9 = vld [vmem:[#allocation11 + $0x950] sm:$0xff] }
 0x41e   :  { %6028 = vmatprep.subr.bf16.mxu0 %v6027_v10  ;;  %v3673_v10 = vld [vmem:[#allocation11 + $0xac0] sm:$0xff] }
 0x41f   :  { %v6219_v16 = vpack.c.bf16 %v3676_v11, %v3673_v10  ;;  %v3647_v11 = vld [vmem:[#allocation11 + $0x9f0] sm:$0xff] }
 0x421   :  { %6030 = vmatpush1.bf16.msra.mxu0 %v6029_v14 }
 0x422   :  { %6032 = vmatprep.subr.bf16.mxu0 %v6031_v15  ;;  %v6059_v15 = vpack.c.bf16 %v3627_v9, %v3624_v1  ;;  %v3697_v1 = vld [vmem:[#allocation11 + $0xb80] sm:$0xff] }
 0x425   :  { %6034 = vmatpush1.bf16.msra.mxu0 %v6033_v19 }
 0x426   :  { %6036 = vmatprep.subr.bf16.mxu0 %v6035_v21  ;;  %v3630_v21 = vld [vmem:[#allocation11 + $0x968] sm:$0xff] }
 0x427   :  { %v6063_v42 = vpack.c.bf16 %v3633_v23, %v3630_v21  ;;  %v3653_v21 = vld [vmem:[#allocation11 + $0xa20] sm:$0xff] }
 0x429   :  { %6038 = vmatpush1.bf16.msra.mxu0 %v6037_v34  ;;  %v6061_v34 = vpack.c.bf16 %v3626_v17, %v3623_v52  ;;  %v3652_v52 = vld [vmem:[#allocation11 + $0xa18] sm:$0xff]  ;;  %v3706_v17 = vld [vmem:[#allocation11 + $0xbc8] sm:$0xff] }
 0x42a   :  { %6040 = vmatprep.subr.bf16.mxu0 %v6039_v36  ;;  %v6221_v36 = vpack.c.bf16 %v3628_v56, %v3625_v18 }
 0x42d   :  { %6042 = vmatpush1.bf16.msra.mxu0 %v6041_v40  ;;  %v3636_v40 = vld [vmem:[#allocation11 + $0x998] sm:$0xff] }
 0x42e   :  { %6044 = vmatprep.subr.bf16.mxu0 %v6043_v41  ;;  %v6067_v49 = vpack.c.bf16 %v3639_v5, %v3636_v40  ;;  %v3659_v40 = vld [vmem:[#allocation11 + $0xa50] sm:$0xff]  ;;  %v3662_v5 = vld [vmem:[#allocation11 + $0xa68] sm:$0xff] }
 0x431   :  { %6046 = vmatpush1.bf16.msra.mxu0 %v6045_v12  ;;  %v3688_v12 = vld [vmem:[#allocation11 + $0xb38] sm:$0xff] }
 0x432   :  { %6048 = vmatprep.subr.bf16.mxu0 %v6047_v45  ;;  %v6065_v45 = vpack.c.bf16 %v3632_v0, %v3629_v38  ;;  %v3709_v38 = vld [vmem:[#allocation11 + $0xbe0] sm:$0xff]  ;;  %v3712_v0 = vld [vmem:[#allocation11 + $0xbf8] sm:$0xff] }
 0x435   :  { %6050 = vmatpush1.bf16.msra.mxu0 %v6049_v53  ;;  %v6227_v53 = vpack.c.bf16 %v3688_v12, %v3685_v44  ;;  %v3661_v44 = vld [vmem:[#allocation11 + $0xa60] sm:$0xff]  ;;  %v3664_v12 = vld [vmem:[#allocation11 + $0xa78] sm:$0xff] }
 0x436   :  { %6052 = vmatprep.subr.bf16.mxu0 %v6051_v61  ;;  %v3637_v61 = vld [vmem:[#allocation11 + $0x9a0] sm:$0xff] }
 0x439   :  { %6054 = vmatpush1.bf16.msra.mxu0 %v6053_v24  ;;  %v3694_v24 = vld [vmem:[#allocation11 + $0xb68] sm:$0xff] }
 0x43a   :  { %6056 = vmatprep.subr.bf16.mxu0 %v6055_v26  ;;  %v6069_v26 = vpack.c.bf16 %v3638_v48, %v3635_v7  ;;  %v6231_v37 = vpack.c.bf16 %v3694_v24, %v3691_v59  ;;  %v6085_v7 = vpack.c.bf16 %v3662_v5, %v3659_v40  ;;  %v6245_v48 = vpack.c.bf16 %v3664_v12, %v3661_v44  ;;  %v3671_v59 = vld [vmem:[#allocation11 + $0xab0] sm:$0xff]  ;;  %v3674_v24 = vld [vmem:[#allocation11 + $0xac8] sm:$0xff] }
 0x44f   :  { %v3032_v63 = vpop.f32.mrb[6].mxu0 }
 0x450   :  { %v6261_v3 = vadd.f32 %v3032_v63, %v2164_v60  ;;  %v3034_v43 = vpop.f32.mrb[7].mxu0  ;;  %v6229_v60 = vpack.c.bf16 %v3640_v55, %v3637_v61  ;;  %v3644_v63 = vld [vmem:[#allocation11 + $0x9d8] sm:$0xff]  ;;  %v3675_v61 = vld [vmem:[#allocation11 + $0xad0] sm:$0xff] }
 0x451   :  { %v6262_v8 = vadd.f32 %v3034_v43, %v2168_v62  ;;  %v3641_v62 = vld [vmem:[#allocation11 + $0x9c0] sm:$0xff]  ;;  %v3646_v43 = vld [vmem:[#allocation11 + $0x9e8] sm:$0xff] }
 0x452   :  { %v3325_v14 = vmax.f32 %v6261_v3, 0.0  ;;  %v3643_v3 = vld [vmem:[#allocation11 + $0x9d0] sm:$0xff]  ;;  %v6073_v9 = vpack.c.bf16 %v3644_v63, %v3641_v62 }
 0x453   :  { %v3326_v20 = vmax.f32 %v6262_v8, 0.0  ;;  %v3700_v8 = vld [vmem:[#allocation11 + $0xb98] sm:$0xff]  ;;  %v6233_v10 = vpack.c.bf16 %v3646_v43, %v3643_v3  ;;  %v3677_v3 = vld [vmem:[#allocation11 + $0xae0] sm:$0xff] }
 0x454   :  { %v3680_v43 = vld [vmem:[#allocation11 + $0xaf8] sm:$0xff] }
 0x455   :  { %3936 = vmatprep.mubr.f32.mxu0 %v3326_v20  ;;  %4218 = vmatprep.mubr.f32.mxu1 %v3326_v20  ;;  %v6813_v19 = vpop.f32.mrb[8].mxu1  ;;  %v3650_v20 = vld [vmem:[#allocation11 + $0xa08] sm:$0xff] }
 0x456   :  { %3937 = vmatmul.mubr.f32.vlgmr.msra.gmra.mrb[8].mxu0 %v3325_v14  ;;  %4219 = vmatmul.mubr.f32.vlgmr.msra.gmra.mrb[14].mxu1 %v3325_v14  ;;  %v3318_v22 = vpop.f32.mrb[9].mxu1  ;;  %v3654_v14 = vld [vmem:[#allocation11 + $0xa28] sm:$0xff]  ;;  %v6077_v18 = vpack.c.bf16 %v3650_v20, %v3647_v11  ;;  %v3693_v20 = vld [vmem:[#allocation11 + $0xb60] sm:$0xff] }
 0x457   :  { %6058 = vmatpush1.bf16.msra.mxu0 %v6057_v31  ;;  %6218 = vmatpush3.bf16.msra.mxu1 %v6217_v2  ;;  %v6264_v33 = vadd.f32 %v3318_v22, %v2176_v27  ;;  %v6075_v31 = vpack.c.bf16 %v3651_v6, %v3648_v32  ;;  %v6235_v2 = vpack.c.bf16 %v3700_v8, %v3697_v1  ;;  %v3649_v27 = vld [vmem:[#allocation11 + $0xa00] sm:$0xff]  ;;  %v3656_v22 = vld [vmem:[#allocation11 + $0xa38] sm:$0xff]  ;;  %v3687_v6 = vld [vmem:[#allocation11 + $0xb30] sm:$0xff] }
 0x458   :  { %6060 = vmatprep.subr.bf16.mxu0 %v6059_v15  ;;  %6220 = vmatprep.subr.bf16.mxu1 %v6219_v16  ;;  %v3657_v15 = vld [vmem:[#allocation11 + $0xa40] sm:$0xff]  ;;  %v3703_v16 = vld [vmem:[#allocation11 + $0xbb0] sm:$0xff]  ;;  %v6237_v56 = vpack.c.bf16 %v3652_v52, %v3649_v27  ;;  %v6081_v13 = vpack.c.bf16 %v3656_v22, %v3653_v21  ;;  %v3684_v32 = vld [vmem:[#allocation11 + $0xb18] sm:$0xff]  ;;  %v6097_v1 = vpack.c.bf16 %v3680_v43, %v3677_v3 }
 0x459   :  { %v3328_v41 = vmax.f32 %v6264_v33, 0.0  ;;  %v6079_v23 = vpack.c.bf16 %v3657_v15, %v3654_v14  ;;  %v6239_v28 = vpack.c.bf16 %v3706_v17, %v3703_v16  ;;  %v3658_v33 = vld [vmem:[#allocation11 + $0xa48] sm:$0xff]  ;;  %v6099_v8 = vpack.c.bf16 %v3687_v6, %v3684_v32  ;;  %v3689_v27 = vld [vmem:[#allocation11 + $0xb40] sm:$0xff]  ;;  %v3692_v52 = vld [vmem:[#allocation11 + $0xb58] sm:$0xff] }
 0x45a   :  { %v6241_v39 = vpack.c.bf16 %v3658_v33, %v3655_v29  ;;  %v3690_v11 = vld [vmem:[#allocation11 + $0xb48] sm:$0xff]  ;;  %v3696_v14 = vld [vmem:[#allocation11 + $0xb78] sm:$0xff]  ;;  %v3699_v15 = vld [vmem:[#allocation11 + $0xb90] sm:$0xff]  ;;  %v6105_v16 = vpack.c.bf16 %v3692_v52, %v3689_v27 }
 0x45b   :  { %6062 = vmatpush1.bf16.msra.mxu0 %v6061_v34  ;;  %6222 = vmatpush3.bf16.msra.mxu1 %v6221_v36  ;;  %v3660_v34 = vld [vmem:[#allocation11 + $0xa58] sm:$0xff]  ;;  %v3663_v36 = vld [vmem:[#allocation11 + $0xa70] sm:$0xff]  ;;  %v6107_v17 = vpack.c.bf16 %v3699_v15, %v3696_v14  ;;  %v3702_v21 = vld [vmem:[#allocation11 + $0xba8] sm:$0xff] }
 0x45c   :  { %4007 = vmatprep.mubr.f32.mxu0 %v3328_v41  ;;  %4288 = vmatprep.mubr.f32.mxu1 %v3328_v41  ;;  %v2172_v41 = vrot.slane %v6802_v50, %v529_v4  ;;  %v3665_v4 = vld [vmem:[#allocation11 + $0xa80] sm:$0xff]  ;;  %v3668_v50 = vld [vmem:[#allocation11 + $0xa98] sm:$0xff] }
 0x45d   :  { %6064 = vmatprep.subr.bf16.mxu0 %v6063_v42  ;;  %6224 = vmatprep.subr.bf16.mxu1 %v6223_v47  ;;  %v6083_v42 = vpack.c.bf16 %v3663_v36, %v3660_v34  ;;  %v6243_v47 = vpack.c.bf16 %v3712_v0, %v3709_v38  ;;  %v6089_v55 = vpack.c.bf16 %v3668_v50, %v3665_v4  ;;  %v3705_v22 = vld [vmem:[#allocation11 + $0xbc0] sm:$0xff]  ;;  %v3704_v33 = vld [vmem:[#allocation11 + $0xbb8] sm:$0xff]  ;;  %v3711_v36 = vld [vmem:[#allocation11 + $0xbf0] sm:$0xff] }
 0x45e   :  { %v3701_v29 = vld [vmem:[#allocation11 + $0xba0] sm:$0xff]  ;;  %v3708_v34 = vld [vmem:[#allocation11 + $0xbd8] sm:$0xff] }
 0x45f   :  { %6066 = vmatpush1.bf16.msra.mxu0 %v6065_v45  ;;  %6226 = vmatpush3.bf16.msra.mxu1 %v6225_v46  ;;  %v3666_v45 = vld [vmem:[#allocation11 + $0xa88] sm:$0xff]  ;;  %v3669_v46 = vld [vmem:[#allocation11 + $0xaa0] sm:$0xff]  ;;  %v6113_v38 = vpack.c.bf16 %v3704_v33, %v3701_v29  ;;  %v6115_v0 = vpack.c.bf16 %v3711_v36, %v3708_v34 }
 0x460   :  { %6068 = vmatprep.subr.bf16.mxu0 %v6067_v49  ;;  %6228 = vmatprep.subr.bf16.mxu1 %v6227_v53  ;;  %v6819_v49 = vadd.f32 %v6813_v19, %v2172_v41  ;;  %v6087_v25 = vpack.c.bf16 %v3669_v46, %v3666_v45  ;;  %v3672_v53 = vld [vmem:[#allocation11 + $0xab8] sm:$0xff]  ;;  %v3681_v19 = vld [vmem:[#allocation11 + $0xb00] sm:$0xff] }
 0x461   :  { %v6091_v58 = vpack.c.bf16 %v3675_v61, %v3672_v53  ;;  %v3713_v41 = vld [vmem:[#allocation13] sm:$0x7] }
 0x462   :  { %v3327_v57 = vmax.f32 %v6819_v49, 0.0 }
 0x463   :  { %6070 = vmatpush1.bf16.msra.mxu0 %v6069_v26  ;;  %6230 = vmatpush3.bf16.msra.mxu1 %v6229_v60  ;;  %v3678_v60 = vld [vmem:[#allocation11 + $0xae8] sm:$0xff] }
 0x464   :  { %6072 = vmatprep.subr.bf16.mxu0 %v6071_v54  ;;  %6232 = vmatprep.subr.bf16.mxu1 %v6231_v37  ;;  %v6093_v54 = vpack.c.bf16 %v3674_v24, %v3671_v59  ;;  %v6095_v37 = vpack.c.bf16 %v3681_v19, %v3678_v60 }
 0x467   :  { %6074 = vmatpush1.bf16.msra.mxu0 %v6073_v9  ;;  %6234 = vmatpush3.bf16.msra.mxu1 %v6233_v10  ;;  %v3683_v9 = vld [vmem:[#allocation11 + $0xb10] sm:$0xff]  ;;  %v3686_v10 = vld [vmem:[#allocation11 + $0xb28] sm:$0xff] }
 0x468   :  { %6076 = vmatprep.subr.bf16.mxu0 %v6075_v31  ;;  %6236 = vmatprep.subr.bf16.mxu1 %v6235_v2  ;;  %v6101_v31 = vpack.c.bf16 %v3686_v10, %v3683_v9  ;;  %v6103_v2 = vpack.c.bf16 %v3693_v20, %v3690_v11 }
 0x46b   :  { %6078 = vmatpush1.bf16.msra.mxu0 %v6077_v18  ;;  %6238 = vmatpush3.bf16.msra.mxu1 %v6237_v56  ;;  %v3695_v18 = vld [vmem:[#allocation11 + $0xb70] sm:$0xff]  ;;  %v3698_v56 = vld [vmem:[#allocation11 + $0xb88] sm:$0xff] }
 0x46c   :  { %6080 = vmatprep.subr.bf16.mxu0 %v6079_v23  ;;  %6240 = vmatprep.subr.bf16.mxu1 %v6239_v28  ;;  %v6109_v23 = vpack.c.bf16 %v3698_v56, %v3695_v18  ;;  %v6111_v28 = vpack.c.bf16 %v3705_v22, %v3702_v21 }
 0x46f   :  { %6082 = vmatpush1.bf16.msra.mxu0 %v6081_v13  ;;  %6242 = vmatpush3.bf16.msra.mxu1 %v6241_v39  ;;  %v3707_v13 = vld [vmem:[#allocation11 + $0xbd0] sm:$0xff]  ;;  %v3710_v39 = vld [vmem:[#allocation11 + $0xbe8] sm:$0xff] }
 0x470   :  { %6084 = vmatprep.subr.bf16.mxu0 %v6083_v42  ;;  %6244 = vmatprep.subr.bf16.mxu1 %v6243_v47  ;;  %v6117_v40 = vpack.c.bf16 %v3710_v39, %v3707_v13  ;;  %v3726_v42 = vrot.slane %v3713_v41, %v6688_v51  ;;  %v3718_v51 = vrot.slane %v3713_v41, %v6666_v30 }
 0x473   :  { %6086 = vmatpush1.bf16.msra.mxu0 %v6085_v7  ;;  %6246 = vmatpush3.bf16.msra.mxu1 %v6245_v48 }
 0x474   :  { %6088 = vmatprep.subr.bf16.mxu0 %v6087_v25 }
 0x475   :  { %v4347_v26 = vpop.f32.mrb[10].mxu1 }
 0x476   :  { %4289 = vmatmul.mubr.f32.vlgmr.msra.gmra.mrb[16].mxu1 %v3327_v57  ;;  %v4348_v62 = vpop.f32.mrb[11].mxu1 }
 0x477   :  { %6090 = vmatpush1.bf16.msra.mxu0 %v6089_v55  ;;  %v4349_v63 = vadd.f32 %v4348_v62, %v4347_v26  ;;  %v3722_v55 = vrot.slane %v3713_v41, %v6671_v35 }
 0x478   :  { %6092 = vmatprep.subr.bf16.mxu0 %v6091_v58 }
 0x479   :  { %v4081_v44 = vadd.f32 %v4349_v63, %v3726_v42 }
 0x47b   :  { %6094 = vmatpush1.bf16.msra.mxu0 %v6093_v54 }
 0x47c   :  { %6096 = vmatprep.subr.bf16.mxu0 %v6095_v37 }
 0x47f   :  { %6098 = vmatpush1.bf16.msra.mxu0 %v6097_v1 }
 0x480   :  { %6100 = vmatprep.subr.bf16.mxu0 %v6099_v8 }
 0x483   :  { %6102 = vmatpush1.bf16.msra.mxu0 %v6101_v31 }
 0x484   :  { %6104 = vmatprep.subr.bf16.mxu0 %v6103_v2 }
 0x487   :  { %6106 = vmatpush1.bf16.msra.mxu0 %v6105_v16 }
 0x488   :  { %6108 = vmatprep.subr.bf16.mxu0 %v6107_v17 }
 0x48b   :  { %6110 = vmatpush1.bf16.msra.mxu0 %v6109_v23 }
 0x48c   :  { %6112 = vmatprep.subr.bf16.mxu0 %v6111_v28 }
 0x48f   :  { %6114 = vmatpush1.bf16.msra.mxu0 %v6113_v38 }
 0x490   :  { %6116 = vmatprep.subr.bf16.mxu0 %v6115_v0 }
 0x493   :  { %6118 = vmatpush1.bf16.msra.mxu0 %v6117_v40 }
 0x495   :  { %v4382_v47 = vpop.f32.mrb[12].mxu1 }
 0x496   :  { %4008 = vmatmul.mubr.f32.vlgmr.msra.gmra.mrb[8].mxu0 %v3327_v57  ;;  %v4383_v5 = vpop.f32.mrb[13].mxu1 }
 0x497   :  { %v4384_v12 = vadd.f32 %v4383_v5, %v4382_v47 }
 0x499   :  { %v4151_v45 = vadd.f32 %v4384_v12, %v4081_v44 }
 0x529   :  { %v4417_v46 = vpop.f32.mrb[14].mxu1 }
 0x52a   :  { %v4418_v7 = vpop.f32.mrb[15].mxu1 }
 0x52b   :  { %v4419_v48 = vadd.f32 %v4418_v7, %v4417_v46 }
 0x52d   :  { %v4221_v25 = vadd.f32 %v4419_v48, %v4151_v45 }
 0x549   :  { %v4452_v4 = vpop.f32.mrb[16].mxu1 }
 0x54a   :  { %v4453_v50 = vpop.f32.mrb[17].mxu1 }
 0x54b   :  { %v4454_v53 = vadd.f32 %v4453_v50, %v4452_v4 }
 0x54d   :  { %v4291_v61 = vadd.f32 %v4454_v53, %v4221_v25 }
 0x54f   :  { %4296 = vst [vmem:[#allocation14 + $0x10] sm:$0xff] %v4291_v61 }
 0x569   :  { %v4009_v49 = vpop.f32.mrb[8].mxu0 }
 0x56a   :  { %v6265_v57 = vadd.f32 %v4009_v49, %v3718_v51  ;;  %v4011_v58 = vpop.f32.mrb[9].mxu0 }
 0x56b   :  { %v6266_v59 = vadd.f32 %v4011_v58, %v3722_v55 }
 0x56c   :  { %4294 = vst [vmem:[#allocation14] sm:$0xff] %v6265_v57 }
 0x56d   :  { %4295 = vst [vmem:[#allocation14 + $0x8] sm:$0xff] %v6266_v59 }
 0x56e   :  { %6486 = shalt.err (!%p6483_p4)
}
 0x56f   :  { %s6487_s11 = scalar_lea.hbm %s6848_s7, 384 }
 0x570   :  { %p6488_p5 = scmp.ne.s32.totalorder %s6848_s7, %s6487_s11  ;;  %p6491_p6 = scmp.lt.u32.totalorder %s6487_s11, %s6848_s7 }
 0x572   :  { %p6493_p7 = pnand %p6491_p6, %p6488_p5 }
 0x574   :  { %6496 = shalt.err (!%p6493_p7)
}
 0x575   :  { %4306 = dma.vmem_to_hbm [thread:$0]  %s4304_s13, 384, %s6848_s7, [#allocation4]  }
 0x576   :  { %6505 = dma.done.wait [#allocation4], 384  }
 0x577   :  { %6506 = vsyncadd [#allocation4], 4294966912 }
 0x578   :  { %4310 = vsyncpa [#allocation3], 1 }
 0x579   :  { %4311 = vsyncpa [#allocation6], 1 }
 0x57a   :  { %4312 = vsyncpa [#allocation9], 1 }
 0x57b   :  { %4313 = vsyncpa [#allocation12], 1 }
 0x57c   :  { %4314 = vsyncpa [#allocation4], 1 }

</bundles_post_ra>
